<compile_context>
chip_gen: v7x
topology: tpu7x:2x2x1
jax: 0.10.0
libtpu: 0.0.40
codegen_flags: <defaults>
</compile_context>

<pallas_src>
import functools

import jax
import jax.numpy as jnp
from jax.experimental import pallas as pl
from jax.experimental.pallas import tpu as pltpu


def _res_block_kernel(x_ref, w1_ref, b1_ref, w2_ref, b2_ref, mask_ref, sc_ref,
                      o_ref, xs_ref, ht_ref, *, H, W, C, pad):
    HW = H * W

    def conv3x3(img, w_ref, b_ref):
        # img: (C, HW) f32.  Stage the 9 shifted / masked taps into the
        # channels-major im2col scratch ht (9*C, HW) in bf16, then do one
        # fused K = 9*C MXU matmul: (C, 9C) @ (9C, HW) -> (C, HW) f32.
        xs_ref[:, pad:pad + HW] = img            # aligned store (pad % 128 == 0)
        for ky in range(3):
            for kx in range(3):
                t = ky * 3 + kx
                off = (ky - 1) * W + (kx - 1)
                # Statically-offset window.  Lanes whose source pixel is
                # outside the image may hold stale pad data; the per-tap
                # validity select below forces them to 0 (SAME padding).
                sh = xs_ref[:, pad + off:pad + off + HW]
                if t != 4:                       # center tap is always valid
                    m = mask_ref[t:t + 1, :]     # (1, HW) f32 {0, 1}
                    sh = jnp.where(m > 0.5, sh, 0.0)
                ht_ref[t * C:(t + 1) * C, :] = sh.astype(jnp.bfloat16)
        out = jnp.dot(w_ref[...], ht_ref[...],
                      preferred_element_type=jnp.float32)
        return out + b_ref[...]                  # (C, 1) bias, lane broadcast

    out1 = conv3x3(x_ref[0], w1_ref, b1_ref)

    # PReLU with a single shared alpha (nn.PReLU() default), in f32.
    alpha = sc_ref[0]
    mid = jnp.where(out1 > 0, out1, alpha * out1)

    out2 = conv3x3(mid, w2_ref, b2_ref)

    # residual: identity + out * res_scale.  x is re-read here (f32), and the
    # output last dim is HW -> lane-dense, unmasked stores.
    res_scale = sc_ref[1]
    o_ref[0] = (x_ref[0] + out2 * res_scale).astype(o_ref.dtype)


def residual_block_no_bn(x, w1, b1, w2, b2, alpha, res_scale=1.0):
    """x: (N, C, H, W) f32 (NCHW, as in PyTorch); w: (Cout, Cin, 3, 3) OIHW."""
    N, C, H, W = x.shape
    HW = H * W
    # Lane-aligned halo wide enough for the +/-(W+1) taps; keeps every window
    # read in-bounds and the center store 128-lane aligned.
    pad = ((W + 1 + 127) // 128) * 128

    x2 = x.reshape(N, C, HW)
    # im2col weight layout: W_mat[co, (ky*3+kx)*C + ci] = w[co, ci, ky, kx].
    w1m = jnp.transpose(w1, (0, 2, 3, 1)).reshape(C, 9 * C).astype(jnp.bfloat16)
    w2m = jnp.transpose(w2, (0, 2, 3, 1)).reshape(C, 9 * C).astype(jnp.bfloat16)
    b1m = b1.reshape(C, 1).astype(jnp.float32)
    b2m = b2.reshape(C, 1).astype(jnp.float32)
    scalars = jnp.array([alpha, res_scale], dtype=jnp.float32)

    # Per-tap validity masks over the flattened HW axis, lane-dense (9, HW).
    pidx = jnp.arange(HW, dtype=jnp.int32)
    row, col = pidx // W, pidx % W
    rows = []
    for ky in range(3):
        for kx in range(3):
            ok = jnp.ones((HW,), jnp.bool_)
            if ky == 0:
                ok = ok & (row >= 1)
            if ky == 2:
                ok = ok & (row <= H - 2)
            if kx == 0:
                ok = ok & (col >= 1)
            if kx == 2:
                ok = ok & (col <= W - 2)
            rows.append(ok)
    tap_masks = jnp.stack(rows).astype(jnp.float32)          # (9, HW)

    kernel = functools.partial(_res_block_kernel, H=H, W=W, C=C, pad=pad)

    grid_spec = pltpu.PrefetchScalarGridSpec(
        num_scalar_prefetch=0,
        grid=(N,),
        in_specs=[
            pl.BlockSpec((1, C, HW), lambda n: (n, 0, 0)),      # x (one image)
            pl.BlockSpec((C, 9 * C), lambda n: (0, 0)),         # w1 (im2col)
            pl.BlockSpec((C, 1), lambda n: (0, 0)),             # b1
            pl.BlockSpec((C, 9 * C), lambda n: (0, 0)),         # w2 (im2col)
            pl.BlockSpec((C, 1), lambda n: (0, 0)),             # b2
            pl.BlockSpec((9, HW), lambda n: (0, 0)),            # per-tap masks
            pl.BlockSpec(memory_space=pltpu.MemorySpace.SMEM),  # [alpha, res_scale]
        ],
        out_specs=pl.BlockSpec((1, C, HW), lambda n: (n, 0, 0)),
        scratch_shapes=[
            pltpu.VMEM((C, 2 * pad + HW), jnp.float32),         # padded staging
            pltpu.VMEM((9 * C, HW), jnp.bfloat16),              # im2col operand
        ],
    )

    out2d = pl.pallas_call(
        kernel,
        out_shape=jax.ShapeDtypeStruct((N, C, HW), x.dtype),
        grid_spec=grid_spec,
        compiler_params=pltpu.CompilerParams(
            dimension_semantics=("parallel",),
        ),
    )(x2, w1m, b1m, w2m, b2m, tap_masks, scalars)

    return out2d.reshape(N, C, H, W)


def _reference(x, w1, b1, w2, b2, alpha, res_scale):
    """Pure-JAX reference mirroring the kernel's bf16-input / f32-accum convs."""
    dn = ("NCHW", "OIHW", "NCHW")
    y = jax.lax.conv_general_dilated(
        x.astype(jnp.bfloat16), w1.astype(jnp.bfloat16), (1, 1), "SAME",
        dimension_numbers=dn, preferred_element_type=jnp.float32)
    y = y + b1.reshape(1, -1, 1, 1)
    y = jnp.where(y > 0, y, alpha * y)
    y = jax.lax.conv_general_dilated(
        y.astype(jnp.bfloat16), w2.astype(jnp.bfloat16), (1, 1), "SAME",
        dimension_numbers=dn, preferred_element_type=jnp.float32)
    y = y + b2.reshape(1, -1, 1, 1)
    return x + y * res_scale


if __name__ == "__main__":
    N, C, H, W = 2, 64, 16, 16        # channels=64 is the module default
    res_scale = 1.0

    key = jax.random.PRNGKey(0)
    kx, kw1, kb1, kw2, kb2 = jax.random.split(key, 5)

    x = jax.random.normal(kx, (N, C, H, W), jnp.float32)
    fan_in = 3 * 3 * C
    w1 = jax.random.normal(kw1, (C, C, 3, 3), jnp.float32) / jnp.sqrt(fan_in)
    b1 = 0.01 * jax.random.normal(kb1, (C,), jnp.float32)
    w2 = jax.random.normal(kw2, (C, C, 3, 3), jnp.float32) / jnp.sqrt(fan_in)
    b2 = 0.01 * jax.random.normal(kb2, (C,), jnp.float32)
    alpha = 0.25                      # PyTorch nn.PReLU() default init

    out = residual_block_no_bn(x, w1, b1, w2, b2, alpha, res_scale)
    out = jax.block_until_ready(out)

    ref = _reference(x, w1, b1, w2, b2, alpha, res_scale)
    assert out.shape == (N, C, H, W)
    err = float(jnp.max(jnp.abs(out - ref)))
    assert err < 5e-3, f"max abs err {err}"

    print("KERNEL_OK")
</pallas_src>

<mosaic_0001>
module attributes {stable_mosaic.version = 11 : i64} {
  func.func @_res_block_kernel(%arg0: i32, %arg1: memref<1x64x256xf32, #tpu.memory_space<vmem>>, %arg2: memref<64x576xbf16, #tpu.memory_space<vmem>>, %arg3: memref<64x1xf32, #tpu.memory_space<vmem>>, %arg4: memref<64x576xbf16, #tpu.memory_space<vmem>>, %arg5: memref<64x1xf32, #tpu.memory_space<vmem>>, %arg6: memref<9x256xf32, #tpu.memory_space<vmem>>, %arg7: memref<2xf32, #tpu.memory_space<smem>>, %arg8: memref<1x64x256xf32, #tpu.memory_space<vmem>>, %arg9: memref<64x512xf32, #tpu.memory_space<vmem>>, %arg10: memref<576x256xbf16, #tpu.memory_space<vmem>>) attributes {dimension_semantics = [#tpu.dimension_semantics<parallel>], iteration_bounds = array<i64: 2>, scalar_prefetch = 0 : i64, scratch_operands = 2 : i64, tpu.core_type = #tpu.core_type<tc>, window_params = [{transform_indices = @transform_0, window_bounds = array<i64: 1, 64, 256>}, {pipeline_mode = #tpu.pipeline_mode<synchronous>, transform_indices = @transform_1, window_bounds = array<i64: 64, 576>}, {pipeline_mode = #tpu.pipeline_mode<synchronous>, transform_indices = @transform_2, window_bounds = array<i64: 64, 1>}, {pipeline_mode = #tpu.pipeline_mode<synchronous>, transform_indices = @transform_3, window_bounds = array<i64: 64, 576>}, {pipeline_mode = #tpu.pipeline_mode<synchronous>, transform_indices = @transform_4, window_bounds = array<i64: 64, 1>}, {pipeline_mode = #tpu.pipeline_mode<synchronous>, transform_indices = @transform_5, window_bounds = array<i64: 9, 256>}, {transform_indices = @transform_6, window_bounds = array<i64: 2>}, {transform_indices = @transform_7, window_bounds = array<i64: 1, 64, 256>}]} {
    %c0 = arith.constant 0 : index
    %c0_0 = arith.constant 0 : index
    %c0_1 = arith.constant 0 : index
    %0 = vector.load %arg1[%c0, %c0_0, %c0_1] : memref<1x64x256xf32, #tpu.memory_space<vmem>>, vector<1x64x256xf32>
    %1 = vector.shape_cast %0 : vector<1x64x256xf32> to vector<64x256xf32>
    %c0_2 = arith.constant 0 : index
    %c128 = arith.constant 128 : index
    %2 = vector.load %arg9[%c0_2, %c128] : memref<64x512xf32, #tpu.memory_space<vmem>>, vector<64x256xf32>
    tpu.vector_store %arg9[%c0_2, %c128], %1 {strides = array<i32>} : memref<64x512xf32, #tpu.memory_space<vmem>>, vector<64x256xf32>,
    %c0_3 = arith.constant 0 : index
    %c111 = arith.constant 111 : index
    %3 = vector.load %arg9[%c0_3, %c111] : memref<64x512xf32, #tpu.memory_space<vmem>>, vector<64x256xf32>
    %c0_4 = arith.constant 0 : index
    %c0_5 = arith.constant 0 : index
    %4 = vector.load %arg6[%c0_4, %c0_5] : memref<9x256xf32, #tpu.memory_space<vmem>>, vector<1x256xf32>
    %cst = arith.constant 5.000000e-01 : f32
    %5 = vector.broadcast %cst : f32 to vector<1x256xf32>
    %6 = arith.cmpf ogt, %4, %5 : vector<1x256xf32>
    %cst_6 = arith.constant 0.000000e+00 : f32
    %7 = vector.shape_cast %6 : vector<1x256xi1> to vector<1x256xi1>
    %8 = vector.broadcast %7 : vector<1x256xi1> to vector<64x256xi1>
    %9 = vector.broadcast %cst_6 : f32 to vector<64x256xf32>
    %10 = arith.select %8, %3, %9 : vector<64x256xi1>, vector<64x256xf32>
    %11 = arith.truncf %10 : vector<64x256xf32> to vector<64x256xbf16>
    %c0_7 = arith.constant 0 : index
    %c0_8 = arith.constant 0 : index
    %12 = vector.load %arg10[%c0_7, %c0_8] : memref<576x256xbf16, #tpu.memory_space<vmem>>, vector<64x256xbf16>
    tpu.vector_store %arg10[%c0_7, %c0_8], %11 {strides = array<i32>} : memref<576x256xbf16, #tpu.memory_space<vmem>>, vector<64x256xbf16>,
    %c0_9 = arith.constant 0 : index
    %c112 = arith.constant 112 : index
    %13 = vector.load %arg9[%c0_9, %c112] : memref<64x512xf32, #tpu.memory_space<vmem>>, vector<64x256xf32>
    %c1 = arith.constant 1 : index
    %c0_10 = arith.constant 0 : index
    %14 = vector.load %arg6[%c1, %c0_10] : memref<9x256xf32, #tpu.memory_space<vmem>>, vector<1x256xf32>
    %cst_11 = arith.constant 5.000000e-01 : f32
    %15 = vector.broadcast %cst_11 : f32 to vector<1x256xf32>
    %16 = arith.cmpf ogt, %14, %15 : vector<1x256xf32>
    %cst_12 = arith.constant 0.000000e+00 : f32
    %17 = vector.shape_cast %16 : vector<1x256xi1> to vector<1x256xi1>
    %18 = vector.broadcast %17 : vector<1x256xi1> to vector<64x256xi1>
    %19 = vector.broadcast %cst_12 : f32 to vector<64x256xf32>
    %20 = arith.select %18, %13, %19 : vector<64x256xi1>, vector<64x256xf32>
    %21 = arith.truncf %20 : vector<64x256xf32> to vector<64x256xbf16>
    %c64 = arith.constant 64 : index
    %c0_13 = arith.constant 0 : index
    %22 = vector.load %arg10[%c64, %c0_13] : memref<576x256xbf16, #tpu.memory_space<vmem>>, vector<64x256xbf16>
    tpu.vector_store %arg10[%c64, %c0_13], %21 {strides = array<i32>} : memref<576x256xbf16, #tpu.memory_space<vmem>>, vector<64x256xbf16>,
    %c0_14 = arith.constant 0 : index
    %c113 = arith.constant 113 : index
    %23 = vector.load %arg9[%c0_14, %c113] : memref<64x512xf32, #tpu.memory_space<vmem>>, vector<64x256xf32>
    %c2 = arith.constant 2 : index
    %c0_15 = arith.constant 0 : index
    %24 = vector.load %arg6[%c2, %c0_15] : memref<9x256xf32, #tpu.memory_space<vmem>>, vector<1x256xf32>
    %cst_16 = arith.constant 5.000000e-01 : f32
    %25 = vector.broadcast %cst_16 : f32 to vector<1x256xf32>
    %26 = arith.cmpf ogt, %24, %25 : vector<1x256xf32>
    %cst_17 = arith.constant 0.000000e+00 : f32
    %27 = vector.shape_cast %26 : vector<1x256xi1> to vector<1x256xi1>
    %28 = vector.broadcast %27 : vector<1x256xi1> to vector<64x256xi1>
    %29 = vector.broadcast %cst_17 : f32 to vector<64x256xf32>
    %30 = arith.select %28, %23, %29 : vector<64x256xi1>, vector<64x256xf32>
    %31 = arith.truncf %30 : vector<64x256xf32> to vector<64x256xbf16>
    %c128_18 = arith.constant 128 : index
    %c0_19 = arith.constant 0 : index
    %32 = vector.load %arg10[%c128_18, %c0_19] : memref<576x256xbf16, #tpu.memory_space<vmem>>, vector<64x256xbf16>
    tpu.vector_store %arg10[%c128_18, %c0_19], %31 {strides = array<i32>} : memref<576x256xbf16, #tpu.memory_space<vmem>>, vector<64x256xbf16>,
    %c0_20 = arith.constant 0 : index
    %c127 = arith.constant 127 : index
    %33 = vector.load %arg9[%c0_20, %c127] : memref<64x512xf32, #tpu.memory_space<vmem>>, vector<64x256xf32>
    %c3 = arith.constant 3 : index
    %c0_21 = arith.constant 0 : index
    %34 = vector.load %arg6[%c3, %c0_21] : memref<9x256xf32, #tpu.memory_space<vmem>>, vector<1x256xf32>
    %cst_22 = arith.constant 5.000000e-01 : f32
    %35 = vector.broadcast %cst_22 : f32 to vector<1x256xf32>
    %36 = arith.cmpf ogt, %34, %35 : vector<1x256xf32>
    %cst_23 = arith.constant 0.000000e+00 : f32
    %37 = vector.shape_cast %36 : vector<1x256xi1> to vector<1x256xi1>
    %38 = vector.broadcast %37 : vector<1x256xi1> to vector<64x256xi1>
    %39 = vector.broadcast %cst_23 : f32 to vector<64x256xf32>
    %40 = arith.select %38, %33, %39 : vector<64x256xi1>, vector<64x256xf32>
    %41 = arith.truncf %40 : vector<64x256xf32> to vector<64x256xbf16>
    %c192 = arith.constant 192 : index
    %c0_24 = arith.constant 0 : index
    %42 = vector.load %arg10[%c192, %c0_24] : memref<576x256xbf16, #tpu.memory_space<vmem>>, vector<64x256xbf16>
    tpu.vector_store %arg10[%c192, %c0_24], %41 {strides = array<i32>} : memref<576x256xbf16, #tpu.memory_space<vmem>>, vector<64x256xbf16>,
    %c0_25 = arith.constant 0 : index
    %c128_26 = arith.constant 128 : index
    %43 = vector.load %arg9[%c0_25, %c128_26] : memref<64x512xf32, #tpu.memory_space<vmem>>, vector<64x256xf32>
    %44 = arith.truncf %43 : vector<64x256xf32> to vector<64x256xbf16>
    %c256 = arith.constant 256 : index
    %c0_27 = arith.constant 0 : index
    %45 = vector.load %arg10[%c256, %c0_27] : memref<576x256xbf16, #tpu.memory_space<vmem>>, vector<64x256xbf16>
    tpu.vector_store %arg10[%c256, %c0_27], %44 {strides = array<i32>} : memref<576x256xbf16, #tpu.memory_space<vmem>>, vector<64x256xbf16>,
    %c0_28 = arith.constant 0 : index
    %c129 = arith.constant 129 : index
    %46 = vector.load %arg9[%c0_28, %c129] : memref<64x512xf32, #tpu.memory_space<vmem>>, vector<64x256xf32>
    %c5 = arith.constant 5 : index
    %c0_29 = arith.constant 0 : index
    %47 = vector.load %arg6[%c5, %c0_29] : memref<9x256xf32, #tpu.memory_space<vmem>>, vector<1x256xf32>
    %cst_30 = arith.constant 5.000000e-01 : f32
    %48 = vector.broadcast %cst_30 : f32 to vector<1x256xf32>
    %49 = arith.cmpf ogt, %47, %48 : vector<1x256xf32>
    %cst_31 = arith.constant 0.000000e+00 : f32
    %50 = vector.shape_cast %49 : vector<1x256xi1> to vector<1x256xi1>
    %51 = vector.broadcast %50 : vector<1x256xi1> to vector<64x256xi1>
    %52 = vector.broadcast %cst_31 : f32 to vector<64x256xf32>
    %53 = arith.select %51, %46, %52 : vector<64x256xi1>, vector<64x256xf32>
    %54 = arith.truncf %53 : vector<64x256xf32> to vector<64x256xbf16>
    %c320 = arith.constant 320 : index
    %c0_32 = arith.constant 0 : index
    %55 = vector.load %arg10[%c320, %c0_32] : memref<576x256xbf16, #tpu.memory_space<vmem>>, vector<64x256xbf16>
    tpu.vector_store %arg10[%c320, %c0_32], %54 {strides = array<i32>} : memref<576x256xbf16, #tpu.memory_space<vmem>>, vector<64x256xbf16>,
    %c0_33 = arith.constant 0 : index
    %c143 = arith.constant 143 : index
    %56 = vector.load %arg9[%c0_33, %c143] : memref<64x512xf32, #tpu.memory_space<vmem>>, vector<64x256xf32>
    %c6 = arith.constant 6 : index
    %c0_34 = arith.constant 0 : index
    %57 = vector.load %arg6[%c6, %c0_34] : memref<9x256xf32, #tpu.memory_space<vmem>>, vector<1x256xf32>
    %cst_35 = arith.constant 5.000000e-01 : f32
    %58 = vector.broadcast %cst_35 : f32 to vector<1x256xf32>
    %59 = arith.cmpf ogt, %57, %58 : vector<1x256xf32>
    %cst_36 = arith.constant 0.000000e+00 : f32
    %60 = vector.shape_cast %59 : vector<1x256xi1> to vector<1x256xi1>
    %61 = vector.broadcast %60 : vector<1x256xi1> to vector<64x256xi1>
    %62 = vector.broadcast %cst_36 : f32 to vector<64x256xf32>
    %63 = arith.select %61, %56, %62 : vector<64x256xi1>, vector<64x256xf32>
    %64 = arith.truncf %63 : vector<64x256xf32> to vector<64x256xbf16>
    %c384 = arith.constant 384 : index
    %c0_37 = arith.constant 0 : index
    %65 = vector.load %arg10[%c384, %c0_37] : memref<576x256xbf16, #tpu.memory_space<vmem>>, vector<64x256xbf16>
    tpu.vector_store %arg10[%c384, %c0_37], %64 {strides = array<i32>} : memref<576x256xbf16, #tpu.memory_space<vmem>>, vector<64x256xbf16>,
    %c0_38 = arith.constant 0 : index
    %c144 = arith.constant 144 : index
    %66 = vector.load %arg9[%c0_38, %c144] : memref<64x512xf32, #tpu.memory_space<vmem>>, vector<64x256xf32>
    %c7 = arith.constant 7 : index
    %c0_39 = arith.constant 0 : index
    %67 = vector.load %arg6[%c7, %c0_39] : memref<9x256xf32, #tpu.memory_space<vmem>>, vector<1x256xf32>
    %cst_40 = arith.constant 5.000000e-01 : f32
    %68 = vector.broadcast %cst_40 : f32 to vector<1x256xf32>
    %69 = arith.cmpf ogt, %67, %68 : vector<1x256xf32>
    %cst_41 = arith.constant 0.000000e+00 : f32
    %70 = vector.shape_cast %69 : vector<1x256xi1> to vector<1x256xi1>
    %71 = vector.broadcast %70 : vector<1x256xi1> to vector<64x256xi1>
    %72 = vector.broadcast %cst_41 : f32 to vector<64x256xf32>
    %73 = arith.select %71, %66, %72 : vector<64x256xi1>, vector<64x256xf32>
    %74 = arith.truncf %73 : vector<64x256xf32> to vector<64x256xbf16>
    %c448 = arith.constant 448 : index
    %c0_42 = arith.constant 0 : index
    %75 = vector.load %arg10[%c448, %c0_42] : memref<576x256xbf16, #tpu.memory_space<vmem>>, vector<64x256xbf16>
    tpu.vector_store %arg10[%c448, %c0_42], %74 {strides = array<i32>} : memref<576x256xbf16, #tpu.memory_space<vmem>>, vector<64x256xbf16>,
    %c0_43 = arith.constant 0 : index
    %c145 = arith.constant 145 : index
    %76 = vector.load %arg9[%c0_43, %c145] : memref<64x512xf32, #tpu.memory_space<vmem>>, vector<64x256xf32>
    %c8 = arith.constant 8 : index
    %c0_44 = arith.constant 0 : index
    %77 = vector.load %arg6[%c8, %c0_44] : memref<9x256xf32, #tpu.memory_space<vmem>>, vector<1x256xf32>
    %cst_45 = arith.constant 5.000000e-01 : f32
    %78 = vector.broadcast %cst_45 : f32 to vector<1x256xf32>
    %79 = arith.cmpf ogt, %77, %78 : vector<1x256xf32>
    %cst_46 = arith.constant 0.000000e+00 : f32
    %80 = vector.shape_cast %79 : vector<1x256xi1> to vector<1x256xi1>
    %81 = vector.broadcast %80 : vector<1x256xi1> to vector<64x256xi1>
    %82 = vector.broadcast %cst_46 : f32 to vector<64x256xf32>
    %83 = arith.select %81, %76, %82 : vector<64x256xi1>, vector<64x256xf32>
    %84 = arith.truncf %83 : vector<64x256xf32> to vector<64x256xbf16>
    %c512 = arith.constant 512 : index
    %c0_47 = arith.constant 0 : index
    %85 = vector.load %arg10[%c512, %c0_47] : memref<576x256xbf16, #tpu.memory_space<vmem>>, vector<64x256xbf16>
    tpu.vector_store %arg10[%c512, %c0_47], %84 {strides = array<i32>} : memref<576x256xbf16, #tpu.memory_space<vmem>>, vector<64x256xbf16>,
    %c0_48 = arith.constant 0 : index
    %c0_49 = arith.constant 0 : index
    %86 = vector.load %arg2[%c0_48, %c0_49] : memref<64x576xbf16, #tpu.memory_space<vmem>>, vector<64x576xbf16>
    %c0_50 = arith.constant 0 : index
    %c0_51 = arith.constant 0 : index
    %87 = vector.load %arg10[%c0_50, %c0_51] : memref<576x256xbf16, #tpu.memory_space<vmem>>, vector<576x256xbf16>
    %cst_52 = arith.constant dense<0.000000e+00> : vector<64x256xf32>
    %88 = tpu.matmul %86, %87, %cst_52 {dimension_numbers = #tpu.dot_dimension_numbers<[1], [0], [0], [1], [0, 0, 1, 1], [], []>} : vector<64x576xbf16>, vector<576x256xbf16>, vector<64x256xf32> -> vector<64x256xf32>
    %c0_53 = arith.constant 0 : index
    %c0_54 = arith.constant 0 : index
    %89 = vector.load %arg3[%c0_53, %c0_54] : memref<64x1xf32, #tpu.memory_space<vmem>>, vector<64x1xf32>
    %90 = vector.broadcast %89 : vector<64x1xf32> to vector<64x256xf32>
    %91 = arith.addf %88, %90 : vector<64x256xf32>
    %c0_55 = arith.constant 0 : index
    %92 = memref.load %arg7[%c0_55] : memref<2xf32, #tpu.memory_space<smem>>
    %cst_56 = arith.constant 0.000000e+00 : f32
    %93 = vector.broadcast %cst_56 : f32 to vector<64x256xf32>
    %94 = arith.cmpf ogt, %91, %93 : vector<64x256xf32>
    %95 = vector.broadcast %92 : f32 to vector<64x256xf32>
    %96 = arith.mulf %95, %91 : vector<64x256xf32>
    %97 = arith.select %94, %91, %96 : vector<64x256xi1>, vector<64x256xf32>
    %c0_57 = arith.constant 0 : index
    %c128_58 = arith.constant 128 : index
    %98 = vector.load %arg9[%c0_57, %c128_58] : memref<64x512xf32, #tpu.memory_space<vmem>>, vector<64x256xf32>
    tpu.vector_store %arg9[%c0_57, %c128_58], %97 {strides = array<i32>} : memref<64x512xf32, #tpu.memory_space<vmem>>, vector<64x256xf32>,
    %c0_59 = arith.constant 0 : index
    %c111_60 = arith.constant 111 : index
    %99 = vector.load %arg9[%c0_59, %c111_60] : memref<64x512xf32, #tpu.memory_space<vmem>>, vector<64x256xf32>
    %c0_61 = arith.constant 0 : index
    %c0_62 = arith.constant 0 : index
    %100 = vector.load %arg6[%c0_61, %c0_62] : memref<9x256xf32, #tpu.memory_space<vmem>>, vector<1x256xf32>
    %cst_63 = arith.constant 5.000000e-01 : f32
    %101 = vector.broadcast %cst_63 : f32 to vector<1x256xf32>
    %102 = arith.cmpf ogt, %100, %101 : vector<1x256xf32>
    %cst_64 = arith.constant 0.000000e+00 : f32
    %103 = vector.shape_cast %102 : vector<1x256xi1> to vector<1x256xi1>
    %104 = vector.broadcast %103 : vector<1x256xi1> to vector<64x256xi1>
    %105 = vector.broadcast %cst_64 : f32 to vector<64x256xf32>
    %106 = arith.select %104, %99, %105 : vector<64x256xi1>, vector<64x256xf32>
    %107 = arith.truncf %106 : vector<64x256xf32> to vector<64x256xbf16>
    %c0_65 = arith.constant 0 : index
    %c0_66 = arith.constant 0 : index
    %108 = vector.load %arg10[%c0_65, %c0_66] : memref<576x256xbf16, #tpu.memory_space<vmem>>, vector<64x256xbf16>
    tpu.vector_store %arg10[%c0_65, %c0_66], %107 {strides = array<i32>} : memref<576x256xbf16, #tpu.memory_space<vmem>>, vector<64x256xbf16>,
    %c0_67 = arith.constant 0 : index
    %c112_68 = arith.constant 112 : index
    %109 = vector.load %arg9[%c0_67, %c112_68] : memref<64x512xf32, #tpu.memory_space<vmem>>, vector<64x256xf32>
    %c1_69 = arith.constant 1 : index
    %c0_70 = arith.constant 0 : index
    %110 = vector.load %arg6[%c1_69, %c0_70] : memref<9x256xf32, #tpu.memory_space<vmem>>, vector<1x256xf32>
    %cst_71 = arith.constant 5.000000e-01 : f32
    %111 = vector.broadcast %cst_71 : f32 to vector<1x256xf32>
    %112 = arith.cmpf ogt, %110, %111 : vector<1x256xf32>
    %cst_72 = arith.constant 0.000000e+00 : f32
    %113 = vector.shape_cast %112 : vector<1x256xi1> to vector<1x256xi1>
    %114 = vector.broadcast %113 : vector<1x256xi1> to vector<64x256xi1>
    %115 = vector.broadcast %cst_72 : f32 to vector<64x256xf32>
    %116 = arith.select %114, %109, %115 : vector<64x256xi1>, vector<64x256xf32>
    %117 = arith.truncf %116 : vector<64x256xf32> to vector<64x256xbf16>
    %c64_73 = arith.constant 64 : index
    %c0_74 = arith.constant 0 : index
    %118 = vector.load %arg10[%c64_73, %c0_74] : memref<576x256xbf16, #tpu.memory_space<vmem>>, vector<64x256xbf16>
    tpu.vector_store %arg10[%c64_73, %c0_74], %117 {strides = array<i32>} : memref<576x256xbf16, #tpu.memory_space<vmem>>, vector<64x256xbf16>,
    %c0_75 = arith.constant 0 : index
    %c113_76 = arith.constant 113 : index
    %119 = vector.load %arg9[%c0_75, %c113_76] : memref<64x512xf32, #tpu.memory_space<vmem>>, vector<64x256xf32>
    %c2_77 = arith.constant 2 : index
    %c0_78 = arith.constant 0 : index
    %120 = vector.load %arg6[%c2_77, %c0_78] : memref<9x256xf32, #tpu.memory_space<vmem>>, vector<1x256xf32>
    %cst_79 = arith.constant 5.000000e-01 : f32
    %121 = vector.broadcast %cst_79 : f32 to vector<1x256xf32>
    %122 = arith.cmpf ogt, %120, %121 : vector<1x256xf32>
    %cst_80 = arith.constant 0.000000e+00 : f32
    %123 = vector.shape_cast %122 : vector<1x256xi1> to vector<1x256xi1>
    %124 = vector.broadcast %123 : vector<1x256xi1> to vector<64x256xi1>
    %125 = vector.broadcast %cst_80 : f32 to vector<64x256xf32>
    %126 = arith.select %124, %119, %125 : vector<64x256xi1>, vector<64x256xf32>
    %127 = arith.truncf %126 : vector<64x256xf32> to vector<64x256xbf16>
    %c128_81 = arith.constant 128 : index
    %c0_82 = arith.constant 0 : index
    %128 = vector.load %arg10[%c128_81, %c0_82] : memref<576x256xbf16, #tpu.memory_space<vmem>>, vector<64x256xbf16>
    tpu.vector_store %arg10[%c128_81, %c0_82], %127 {strides = array<i32>} : memref<576x256xbf16, #tpu.memory_space<vmem>>, vector<64x256xbf16>,
    %c0_83 = arith.constant 0 : index
    %c127_84 = arith.constant 127 : index
    %129 = vector.load %arg9[%c0_83, %c127_84] : memref<64x512xf32, #tpu.memory_space<vmem>>, vector<64x256xf32>
    %c3_85 = arith.constant 3 : index
    %c0_86 = arith.constant 0 : index
    %130 = vector.load %arg6[%c3_85, %c0_86] : memref<9x256xf32, #tpu.memory_space<vmem>>, vector<1x256xf32>
    %cst_87 = arith.constant 5.000000e-01 : f32
    %131 = vector.broadcast %cst_87 : f32 to vector<1x256xf32>
    %132 = arith.cmpf ogt, %130, %131 : vector<1x256xf32>
    %cst_88 = arith.constant 0.000000e+00 : f32
    %133 = vector.shape_cast %132 : vector<1x256xi1> to vector<1x256xi1>
    %134 = vector.broadcast %133 : vector<1x256xi1> to vector<64x256xi1>
    %135 = vector.broadcast %cst_88 : f32 to vector<64x256xf32>
    %136 = arith.select %134, %129, %135 : vector<64x256xi1>, vector<64x256xf32>
    %137 = arith.truncf %136 : vector<64x256xf32> to vector<64x256xbf16>
    %c192_89 = arith.constant 192 : index
    %c0_90 = arith.constant 0 : index
    %138 = vector.load %arg10[%c192_89, %c0_90] : memref<576x256xbf16, #tpu.memory_space<vmem>>, vector<64x256xbf16>
    tpu.vector_store %arg10[%c192_89, %c0_90], %137 {strides = array<i32>} : memref<576x256xbf16, #tpu.memory_space<vmem>>, vector<64x256xbf16>,
    %c0_91 = arith.constant 0 : index
    %c128_92 = arith.constant 128 : index
    %139 = vector.load %arg9[%c0_91, %c128_92] : memref<64x512xf32, #tpu.memory_space<vmem>>, vector<64x256xf32>
    %140 = arith.truncf %139 : vector<64x256xf32> to vector<64x256xbf16>
    %c256_93 = arith.constant 256 : index
    %c0_94 = arith.constant 0 : index
    %141 = vector.load %arg10[%c256_93, %c0_94] : memref<576x256xbf16, #tpu.memory_space<vmem>>, vector<64x256xbf16>
    tpu.vector_store %arg10[%c256_93, %c0_94], %140 {strides = array<i32>} : memref<576x256xbf16, #tpu.memory_space<vmem>>, vector<64x256xbf16>,
    %c0_95 = arith.constant 0 : index
    %c129_96 = arith.constant 129 : index
    %142 = vector.load %arg9[%c0_95, %c129_96] : memref<64x512xf32, #tpu.memory_space<vmem>>, vector<64x256xf32>
    %c5_97 = arith.constant 5 : index
    %c0_98 = arith.constant 0 : index
    %143 = vector.load %arg6[%c5_97, %c0_98] : memref<9x256xf32, #tpu.memory_space<vmem>>, vector<1x256xf32>
    %cst_99 = arith.constant 5.000000e-01 : f32
    %144 = vector.broadcast %cst_99 : f32 to vector<1x256xf32>
    %145 = arith.cmpf ogt, %143, %144 : vector<1x256xf32>
    %cst_100 = arith.constant 0.000000e+00 : f32
    %146 = vector.shape_cast %145 : vector<1x256xi1> to vector<1x256xi1>
    %147 = vector.broadcast %146 : vector<1x256xi1> to vector<64x256xi1>
    %148 = vector.broadcast %cst_100 : f32 to vector<64x256xf32>
    %149 = arith.select %147, %142, %148 : vector<64x256xi1>, vector<64x256xf32>
    %150 = arith.truncf %149 : vector<64x256xf32> to vector<64x256xbf16>
    %c320_101 = arith.constant 320 : index
    %c0_102 = arith.constant 0 : index
    %151 = vector.load %arg10[%c320_101, %c0_102] : memref<576x256xbf16, #tpu.memory_space<vmem>>, vector<64x256xbf16>
    tpu.vector_store %arg10[%c320_101, %c0_102], %150 {strides = array<i32>} : memref<576x256xbf16, #tpu.memory_space<vmem>>, vector<64x256xbf16>,
    %c0_103 = arith.constant 0 : index
    %c143_104 = arith.constant 143 : index
    %152 = vector.load %arg9[%c0_103, %c143_104] : memref<64x512xf32, #tpu.memory_space<vmem>>, vector<64x256xf32>
    %c6_105 = arith.constant 6 : index
    %c0_106 = arith.constant 0 : index
    %153 = vector.load %arg6[%c6_105, %c0_106] : memref<9x256xf32, #tpu.memory_space<vmem>>, vector<1x256xf32>
    %cst_107 = arith.constant 5.000000e-01 : f32
    %154 = vector.broadcast %cst_107 : f32 to vector<1x256xf32>
    %155 = arith.cmpf ogt, %153, %154 : vector<1x256xf32>
    %cst_108 = arith.constant 0.000000e+00 : f32
    %156 = vector.shape_cast %155 : vector<1x256xi1> to vector<1x256xi1>
    %157 = vector.broadcast %156 : vector<1x256xi1> to vector<64x256xi1>
    %158 = vector.broadcast %cst_108 : f32 to vector<64x256xf32>
    %159 = arith.select %157, %152, %158 : vector<64x256xi1>, vector<64x256xf32>
    %160 = arith.truncf %159 : vector<64x256xf32> to vector<64x256xbf16>
    %c384_109 = arith.constant 384 : index
    %c0_110 = arith.constant 0 : index
    %161 = vector.load %arg10[%c384_109, %c0_110] : memref<576x256xbf16, #tpu.memory_space<vmem>>, vector<64x256xbf16>
    tpu.vector_store %arg10[%c384_109, %c0_110], %160 {strides = array<i32>} : memref<576x256xbf16, #tpu.memory_space<vmem>>, vector<64x256xbf16>,
    %c0_111 = arith.constant 0 : index
    %c144_112 = arith.constant 144 : index
    %162 = vector.load %arg9[%c0_111, %c144_112] : memref<64x512xf32, #tpu.memory_space<vmem>>, vector<64x256xf32>
    %c7_113 = arith.constant 7 : index
    %c0_114 = arith.constant 0 : index
    %163 = vector.load %arg6[%c7_113, %c0_114] : memref<9x256xf32, #tpu.memory_space<vmem>>, vector<1x256xf32>
    %cst_115 = arith.constant 5.000000e-01 : f32
    %164 = vector.broadcast %cst_115 : f32 to vector<1x256xf32>
    %165 = arith.cmpf ogt, %163, %164 : vector<1x256xf32>
    %cst_116 = arith.constant 0.000000e+00 : f32
    %166 = vector.shape_cast %165 : vector<1x256xi1> to vector<1x256xi1>
    %167 = vector.broadcast %166 : vector<1x256xi1> to vector<64x256xi1>
    %168 = vector.broadcast %cst_116 : f32 to vector<64x256xf32>
    %169 = arith.select %167, %162, %168 : vector<64x256xi1>, vector<64x256xf32>
    %170 = arith.truncf %169 : vector<64x256xf32> to vector<64x256xbf16>
    %c448_117 = arith.constant 448 : index
    %c0_118 = arith.constant 0 : index
    %171 = vector.load %arg10[%c448_117, %c0_118] : memref<576x256xbf16, #tpu.memory_space<vmem>>, vector<64x256xbf16>
    tpu.vector_store %arg10[%c448_117, %c0_118], %170 {strides = array<i32>} : memref<576x256xbf16, #tpu.memory_space<vmem>>, vector<64x256xbf16>,
    %c0_119 = arith.constant 0 : index
    %c145_120 = arith.constant 145 : index
    %172 = vector.load %arg9[%c0_119, %c145_120] : memref<64x512xf32, #tpu.memory_space<vmem>>, vector<64x256xf32>
    %c8_121 = arith.constant 8 : index
    %c0_122 = arith.constant 0 : index
    %173 = vector.load %arg6[%c8_121, %c0_122] : memref<9x256xf32, #tpu.memory_space<vmem>>, vector<1x256xf32>
    %cst_123 = arith.constant 5.000000e-01 : f32
    %174 = vector.broadcast %cst_123 : f32 to vector<1x256xf32>
    %175 = arith.cmpf ogt, %173, %174 : vector<1x256xf32>
    %cst_124 = arith.constant 0.000000e+00 : f32
    %176 = vector.shape_cast %175 : vector<1x256xi1> to vector<1x256xi1>
    %177 = vector.broadcast %176 : vector<1x256xi1> to vector<64x256xi1>
    %178 = vector.broadcast %cst_124 : f32 to vector<64x256xf32>
    %179 = arith.select %177, %172, %178 : vector<64x256xi1>, vector<64x256xf32>
    %180 = arith.truncf %179 : vector<64x256xf32> to vector<64x256xbf16>
    %c512_125 = arith.constant 512 : index
    %c0_126 = arith.constant 0 : index
    %181 = vector.load %arg10[%c512_125, %c0_126] : memref<576x256xbf16, #tpu.memory_space<vmem>>, vector<64x256xbf16>
    tpu.vector_store %arg10[%c512_125, %c0_126], %180 {strides = array<i32>} : memref<576x256xbf16, #tpu.memory_space<vmem>>, vector<64x256xbf16>,
    %c0_127 = arith.constant 0 : index
    %c0_128 = arith.constant 0 : index
    %182 = vector.load %arg4[%c0_127, %c0_128] : memref<64x576xbf16, #tpu.memory_space<vmem>>, vector<64x576xbf16>
    %c0_129 = arith.constant 0 : index
    %c0_130 = arith.constant 0 : index
    %183 = vector.load %arg10[%c0_129, %c0_130] : memref<576x256xbf16, #tpu.memory_space<vmem>>, vector<576x256xbf16>
    %cst_131 = arith.constant dense<0.000000e+00> : vector<64x256xf32>
    %184 = tpu.matmul %182, %183, %cst_131 {dimension_numbers = #tpu.dot_dimension_numbers<[1], [0], [0], [1], [0, 0, 1, 1], [], []>} : vector<64x576xbf16>, vector<576x256xbf16>, vector<64x256xf32> -> vector<64x256xf32>
    %c0_132 = arith.constant 0 : index
    %c0_133 = arith.constant 0 : index
    %185 = vector.load %arg5[%c0_132, %c0_133] : memref<64x1xf32, #tpu.memory_space<vmem>>, vector<64x1xf32>
    %186 = vector.broadcast %185 : vector<64x1xf32> to vector<64x256xf32>
    %187 = arith.addf %184, %186 : vector<64x256xf32>
    %c1_134 = arith.constant 1 : index
    %188 = memref.load %arg7[%c1_134] : memref<2xf32, #tpu.memory_space<smem>>
    %c0_135 = arith.constant 0 : index
    %c0_136 = arith.constant 0 : index
    %c0_137 = arith.constant 0 : index
    %189 = vector.load %arg1[%c0_135, %c0_136, %c0_137] : memref<1x64x256xf32, #tpu.memory_space<vmem>>, vector<1x64x256xf32>
    %190 = vector.shape_cast %189 : vector<1x64x256xf32> to vector<64x256xf32>
    %191 = vector.broadcast %188 : f32 to vector<64x256xf32>
    %192 = arith.mulf %187, %191 : vector<64x256xf32>
    %193 = arith.addf %190, %192 : vector<64x256xf32>
    %c0_138 = arith.constant 0 : index
    %c0_139 = arith.constant 0 : index
    %c0_140 = arith.constant 0 : index
    %194 = vector.load %arg8[%c0_138, %c0_139, %c0_140] : memref<1x64x256xf32, #tpu.memory_space<vmem>>, vector<1x64x256xf32>
    %195 = vector.shape_cast %194 : vector<1x64x256xf32> to vector<64x256xf32>
    %196 = vector.shape_cast %193 : vector<64x256xf32> to vector<1x64x256xf32>
    tpu.vector_store %arg8[%c0_138, %c0_139, %c0_140], %196 {strides = array<i32>} : memref<1x64x256xf32, #tpu.memory_space<vmem>>, vector<1x64x256xf32>,
    return
  }
  func.func @transform_0(%arg0: i32) -> (i32, i32, i32) {
    %c0_i32 = arith.constant 0 : i32
    %c0_i32_0 = arith.constant 0 : i32
    %c0_i32_1 = arith.constant 0 : i32
    return %arg0, %c0_i32, %c0_i32_0 : i32, i32, i32
  }
  func.func @transform_1(%arg0: i32) -> (i32, i32) {
    %c0_i32 = arith.constant 0 : i32
    %c0_i32_0 = arith.constant 0 : i32
    %c0_i32_1 = arith.constant 0 : i32
    return %c0_i32, %c0_i32_0 : i32, i32
  }
  func.func @transform_2(%arg0: i32) -> (i32, i32) {
    %c0_i32 = arith.constant 0 : i32
    %c0_i32_0 = arith.constant 0 : i32
    %c0_i32_1 = arith.constant 0 : i32
    return %c0_i32, %c0_i32_0 : i32, i32
  }
  func.func @transform_3(%arg0: i32) -> (i32, i32) {
    %c0_i32 = arith.constant 0 : i32
    %c0_i32_0 = arith.constant 0 : i32
    %c0_i32_1 = arith.constant 0 : i32
    return %c0_i32, %c0_i32_0 : i32, i32
  }
  func.func @transform_4(%arg0: i32) -> (i32, i32) {
    %c0_i32 = arith.constant 0 : i32
    %c0_i32_0 = arith.constant 0 : i32
    %c0_i32_1 = arith.constant 0 : i32
    return %c0_i32, %c0_i32_0 : i32, i32
  }
  func.func @transform_5(%arg0: i32) -> (i32, i32) {
    %c0_i32 = arith.constant 0 : i32
    %c0_i32_0 = arith.constant 0 : i32
    %c0_i32_1 = arith.constant 0 : i32
    return %c0_i32, %c0_i32_0 : i32, i32
  }
  func.func @transform_6(%arg0: i32) -> i32 {
    %c0_i32 = arith.constant 0 : i32
    %c0_i32_0 = arith.constant 0 : i32
    return %c0_i32 : i32
  }
  func.func @transform_7(%arg0: i32) -> (i32, i32, i32) {
    %c0_i32 = arith.constant 0 : i32
    %c0_i32_0 = arith.constant 0 : i32
    %c0_i32_1 = arith.constant 0 : i32
    return %arg0, %c0_i32, %c0_i32_0 : i32, i32, i32
  }
}

</mosaic_0001>

<bundles_post_ra>
// kernel: tpu_custom_call.1
= control target key start
LH: loop header
LB: loop body
LE: loop exit
PB: predicated region body
PF: predicated region fallthrough
CT: control target
= control target key end

     0   :  { %s8500_s0 = inlined_call_operand.hbm [shape: f32[2,64,256], index: 0, kind: input, shape index: {}]   ;;  %s8501_s1 = inlined_call_operand.hbm [shape: bf16[64,576], index: 1, kind: input, shape index: {}]   ;;  %s8502_s2 = inlined_call_operand.vmem [shape: f32[64,1], index: 2, kind: input, shape index: {}]   ;;  %s8503_s3 = inlined_call_operand.hbm [shape: bf16[64,576], index: 3, kind: input, shape index: {}]   ;;  %s8504_s4 = inlined_call_operand.vmem [shape: f32[64,1], index: 4, kind: input, shape index: {}]   ;;  %s8505_s5 = inlined_call_operand.vmem [shape: f32[9,256], index: 5, kind: input, shape index: {}]   ;;  %s8506_s6 = inlined_call_operand.vmem [shape: f32[2], index: 6, kind: input, shape index: {}]   ;;  %s8507_s7 = inlined_call_operand.hbm [shape: f32[2,64,256], index: 7, kind: output, shape index: {}]  }
   0x1   :  { %8514 = sst [smem:[#allocation17_spill]] %s8506_s6 }
   0x2   :  { %12 = vsyncpa [#allocation5], 0 }
   0x3   :  { %14 = vsyncpa [#allocation5 + $0x1], 0 }
   0x4   :  { %15 = vsyncpa [#allocation9], 0 }
   0x5   :  { %16 = vsyncpa [#allocation7], 0 }
   0x6   :  { %17 = vsyncpa [#allocation6], 0 }
   0x7   :  { %19 = vsyncpa [#allocation6 + $0x1], 0  ;;  %s6331_s24 = smov 0   ;;  %s6333_s25 = smov 0  }
   0x8   :  { %s6335_s26 = smov 0   ;;  %s6337_s27 = smov 0  }
   0x9 LB: > { %s6352_s28 = sadd.s32 4294967295, %s6270_s27   ;;  %s4421_s29 = sadd.s32 4294967294, %s6270_s27   ;;  %s6270_s27 = sphi %s6337_s27, %s8637_s27   ;;  %s6266_s26 = sphi %s6335_s26, %s8636_s26   ;;  %s6262_s25 = sphi %s6333_s25, %s8635_s25   ;;  %s6258_s24 = sphi %s6331_s24, %s8634_s24  }
   0xa   : > { %p45_p0 = scmp.ne.s32.totalorder %s6262_s25, %s6258_s24  ;;  %p8508_p1 = scmp.eq.s32.totalorder %s6352_s28, 0 }
   0xb   : > { %p201_p3 = scmp.eq.s32.totalorder %s4421_s29, 1  ;;  %p4422_p5 = scmp.ge.s32.totalorder %s6270_s27, 1 }
   0xc   : > { %p6361_p4 = por %p8508_p1, %p45_p0  ;;  %p208_p7 = scmp.lt.s32.totalorder %s6270_s27, 3 }
   0xd   : > { %p6366_p6 = por %p201_p3, %p45_p0  ;;  %s6272_s10 = smov [#allocation8]  }
   0xe   : > { %s8515_s30 = scalar_select %p6361_p4, 1, 0 }
   0xf   : > { %s8516_s8 = scalar_select %p6366_p6, 1, 0 }
  0x10   : > { %p6371_p8 = pnand %p4422_p5, %p208_p7  ;;  %s220_s11 = sshll.u32 %s6272_s10, 4  ;;  %s6375_s11 = int_to_ptr.vmem [resolvable:$true] %s220_s11 }
  0x11   : > { %s6273_s13 = smov [#allocation10]   ;;  %s8519_s6 = sld [smem:[#allocation17_spill]] }
  0x12   : > { %p5002_p9 = pneg %p6371_p8  ;;  %s236_s14 = sshll.u32 %s6273_s13, 4  ;;  %s6386_s14 = int_to_ptr.vmem [resolvable:$true] %s236_s14 }
  0x13   : > { %s6095_s20 = scalar_lea.hbm %s8501_s1, 2560 }
  0x14   : > { %p6382_p11 = pnand %p5002_p9, %p8508_p1  ;;  %p6096_p12 = scmp.ne.s32.totalorder %s8501_s1, %s6095_s20 }
  0x15   : > { %p6102_p5 = scmp.lt.u32.totalorder %s6095_s20, %s8501_s1 }
  0x16   : > { %p6401_p13 = pneg %p6382_p11 }
  0x17   : > { %s256_s17 = sshll.u32 %s8519_s6, 4  ;;  %s6391_s17 = int_to_ptr.vmem [resolvable:$true] %s256_s17 }
  0x18   : > { %p6098_p0 = pnand %p6401_p13, %p6096_p12 }
  0x1a   : > { %p6099_p3 = pneg %p6098_p0 }
  0x1c   : > { %p6104_p7 = pnand %p6102_p5, %p6099_p3 }
  0x1e   : > { %6107 = shalt.err (!%p6104_p7)
}
  0x1f   : > { %s6108_s13 = scalar_lea.vmem %s6375_s11, 2560  ;;  %p6116_p2 = scmp.lt.s32.totalorder %s6375_s11, %s6375_s11 }
  0x20   : > { %p6109_p9 = scmp.ne.s32.totalorder %s6375_s11, %s6108_s13  ;;  %p6117_p6 = scmp.lt.s32.totalorder %s6108_s13, %s6108_s13 }
  0x22   : > { %p6111_p10 = pnand %p6109_p9, %p6401_p13  ;;  %p6118_p12 = por %p6117_p6, %p6116_p2 }
  0x24   : > { %p6112_p1 = pneg %p6111_p10 }
  0x26   : > { %p6119_p0 = pnand %p6118_p12, %p6112_p1 }
  0x28   : > { %6122 = shalt.err (!%p6119_p0)
}
  0x29   : > { %s6274_s15 = smov 320   ;;  %s6275_s16 = smov 20  }
  0x2a   : > { %5005 = dma.hbm_to_vmem [thread:$0]  (!%p6382_p11), %s8501_s1, 2560, %s6375_s11, [#allocation9], %s6274_s15, %s6274_s15, %s6275_s16  }
  0x2b   : > { %s6123_s22 = scalar_lea.hbm %s8503_s3, 2560 }
  0x2c   : > { %p6124_p2 = scmp.ne.s32.totalorder %s8503_s3, %s6123_s22  ;;  %p6130_p10 = scmp.lt.u32.totalorder %s6123_s22, %s8503_s3 }
  0x2e   : > { %p6126_p1 = pnand %p6124_p2, %p6401_p13 }
  0x30   : > { %p6127_p6 = pneg %p6126_p1 }
  0x32   : > { %p6132_p3 = pnand %p6130_p10, %p6127_p6 }
  0x34   : > { %6135 = shalt.err (!%p6132_p3)
}
  0x35   : > { %s6136_s11 = scalar_lea.vmem %s6386_s14, 2560  ;;  %p6144_p12 = scmp.lt.s32.totalorder %s6386_s14, %s6386_s14 }
  0x36   : > { %p6137_p5 = scmp.ne.s32.totalorder %s6386_s14, %s6136_s11  ;;  %p6145_p0 = scmp.lt.s32.totalorder %s6136_s11, %s6136_s11 }
  0x38   : > { %p6139_p7 = pnand %p6137_p5, %p6401_p13  ;;  %p6146_p2 = por %p6145_p0, %p6144_p12 }
  0x3a   : > { %p6140_p9 = pneg %p6139_p7 }
  0x3c   : > { %p6147_p1 = pnand %p6146_p2, %p6140_p9 }
  0x3e   : > { %6150 = shalt.err (!%p6147_p1)
}
  0x3f   : > { %5008 = dma.hbm_to_vmem [thread:$0]  (!%p6382_p11), %s8503_s3, 2560, %s6386_s14, [#allocation9], %s6274_s15, %s6274_s15, %s6275_s16  }
  0x40   : > { %s6151_s19 = scalar_lea.vmem %s6391_s17, 16  ;;  %p6159_p5 = scmp.lt.s32.totalorder %s6391_s17, %s6391_s17 }
  0x41   : > { %p6152_p6 = scmp.ne.s32.totalorder %s6391_s17, %s6151_s19  ;;  %p6160_p7 = scmp.lt.s32.totalorder %s6151_s19, %s6151_s19 }
  0x43   : > { %p6154_p10 = pnand %p6152_p6, %p6401_p13  ;;  %p6161_p9 = por %p6160_p7, %p6159_p5 }
  0x45   : > { %p6155_p3 = pneg %p6154_p10 }
  0x47   : > { %p6162_p12 = pnand %p6161_p9, %p6155_p3 }
  0x49   : > { %6165 = shalt.err (!%p6162_p12)
}
  0x4a   : > { %s6276_s20 = smov [#allocation11]   ;;  %s6455_s14 = sadd.s32 1, %s6270_s27  }
  0x4b   : > { %5011 = dma.vmem_to_smem (!%p6382_p11), %s6391_s17, 16, %s6276_s20, [#allocation7]  }
  0x4c   : > { %s29_s23 = ssub.s32 %s6270_s27, %s6455_s14  ;;  %s32_s15 = sadd.s32 1, %s6266_s26 }
  0x4d   : > { %p30_p13 = scmp.eq.s32.totalorder %s29_s23, 0  ;;  %p39_p0 = scmp.ne.s32.totalorder %s6266_s26, %s6262_s25 }
  0x4e   : > { %p40_p2 = scmp.eq.s32.totalorder %s6270_s27, 0  ;;  %p5023_p1 = scmp.lt.s32.totalorder %s6270_s27, 2 }
  0x4f   : > { %s6465_s12 = scalar_select %p30_p13, %s6266_s26, %s32_s15  }
  0x50   : > { %p41_p6 = por %p40_p2, %p39_p0  ;;  %p8521_p10 = scmp.eq.s32.totalorder %s6352_s28, 1 }
  0x51   : > { %s267_s21 = sand.u32 1, %s6266_s26   ;;  %s4504_s22 = sshll.u32 %s6270_s27, 11 }
  0x52   : > { %p6469_p3 = por %p8521_p10, %p39_p0  ;;  %s4427_s17 = sshll.u32 %s267_s21, 7 }
  0x53   : > { %s6478_s13 = scalar_lea.hbm %s8500_s0, %s4504_s22  ;;  %s271_s11 = scalar_lea.vmem [#allocation4], %s4427_s17 }
  0x54   : > { %s8522_s16 = scalar_select %p6469_p3, 1, 0 }
  0x55   : > { %s278_s6 = sshll.u32 %s271_s11, 4  ;;  %p6480_p11 = pnand %p5023_p1, %p41_p6  ;;  %s6484_s6 = int_to_ptr.vmem [resolvable:$true] %s278_s6 }
  0x56   : > { %s6486_s19 = scalar_lea.sflag [#allocation5], %s267_s21  ;;  %s6166_s20 = scalar_lea.hbm %s6478_s13, 2048 }
  0x57   : > { %p6167_p5 = scmp.ne.s32.totalorder %s6478_s13, %s6166_s20  ;;  %p6168_p7 = pneg %p6480_p11 }
  0x58   : > { %s6171_s22 = scalar_lea.hbm %s8500_s0, 4096  ;;  %p6172_p13 = scmp.lt.u32.totalorder %s6478_s13, %s8500_s0 }
  0x59   : > { %p6169_p9 = pnand %p6168_p7, %p6167_p5  ;;  %p6173_p0 = scmp.lt.u32.totalorder %s6171_s22, %s6166_s20 }
  0x5a   : > { %p6175_p1 = scmp.lt.u32.totalorder %s6166_s20, %s6478_s13 }
  0x5b   : > { %p6170_p12 = pneg %p6169_p9  ;;  %p6174_p2 = por %p6173_p0, %p6172_p13 }
  0x5d   : > { %p6176_p6 = por %p6175_p1, %p6174_p2 }
  0x5f   : > { %p6177_p10 = pnand %p6176_p6, %p6170_p12 }
  0x61   : > { %6180 = shalt.err (!%p6177_p10)
}
  0x62   : > { %s6181_s21 = scalar_lea.vmem %s6484_s6, 2048  ;;  %s6277_s10 = smov [#allocation4]  }
  0x63   : > { %p6182_p5 = scmp.ne.s32.totalorder %s6484_s6, %s6181_s21  ;;  %s6186_s11 = sshll.u32 %s6277_s10, 4  ;;  %s6187_s11 = int_to_ptr.vmem [resolvable:$false] %s6186_s11 }
  0x64   : > { %s6188_s23 = scalar_lea.vmem %s6187_s11, 4096  ;;  %p6189_p4 = scmp.lt.s32.totalorder %s6484_s6, %s6187_s11 }
  0x65   : > { %p6184_p9 = pnand %p6182_p5, %p6168_p7  ;;  %p6190_p13 = scmp.lt.s32.totalorder %s6188_s23, %s6181_s21 }
  0x67   : > { %p6185_p3 = pneg %p6184_p9  ;;  %p6191_p0 = por %p6190_p13, %p6189_p4 }
  0x69   : > { %p6192_p2 = pnand %p6191_p0, %p6185_p3 }
  0x6b   : > { %6195 = shalt.err (!%p6192_p2)
}
  0x6c   : > { %s6278_s20 = smov 256   ;;  %s6279_s15 = smov 16  }
  0x6d   : > { %5015 = dma.hbm_to_vmem [thread:$0]  (!%p6480_p11), %s6478_s13, 2048, %s6484_s6, %s6486_s19, %s6278_s20, %s6278_s20, %s6279_s15  }
  0x6e   : > { %290 = sbr.rel (%p6371_p8) target bundleno = 1237 (0x4d5), region = 48  ;;  %s6517_s22 = sand.u32 (!%p6371_p8), 1, %s6262_s25  }
  0x6f   : > { %s8511_s17 = sshll.u32 (!%p6371_p8), %s6517_s22, 7  ;;  %s293_s29 = scalar_lea.sflag (!%p6371_p8), [#allocation5], %s6517_s22 }
  0x70   : > { %s6523_s21 = scalar_lea.vmem (!%p6371_p8), [#allocation4], %s8511_s17  ;;  %p8524_p4 = scmp.ne.s32.totalorder (!%p6371_p8), %s8515_s30, 0 }
  0x75   : > { %6241 = dma.done.wait (%p8524_p4), %s293_s29, 2048  }
  0x76   : > { %6243 = vsyncadd (%p8524_p4), %s293_s29, 4294965248  ;;  %p8525_p3 = scmp.eq.s32.totalorder %s6352_s28, 0 }
  0x78   : > { %6245 = dma.done.wait (%p8525_p3), [#allocation9], 5120   ;;  %p8526_p8 = pmov %p8525_p3 }
  0x79   : > { %p8527_p11 = pmov %p8525_p3 }
  0x7a   : > { %6247 = vsyncadd (%p8526_p8), [#allocation9], 4294962176 }
  0x7b   : > { %6249 = dma.done.wait (%p8527_p11), [#allocation7], 16   ;;  %p8528_p7 = pmov %p8525_p3 }
  0x7d   : > { %6251 = vsyncadd (%p8528_p7), [#allocation7], 4294967280 }
  0x7e   : > { %313 = sfence }
  0x7f   : > { %v373_v0 = vld [vmem:[#allocation2] sm:$0xff]  ;;  %v6541_v4 = vld [vmem:[%s6523_s21 + $0x8] sm:$0xff]  ;;  %v343_v8 = vld [vmem:[%s6523_s21 + $0x10] sm:$0xff]  ;;  %v6280_v11 = vmov 0   ;;  %s6281_s30 = smov 17   ;;  %s6282_s9 = smov 16   ;;  %v400_v52 = vlaneseq }
  0x80   : > { %v376_v1 = vld [vmem:[#allocation2 + $0x20] sm:$0xff]  ;;  %358 = vst [vmem:[#allocation2 + $0x10] sm:$0xff] %v6541_v4  ;;  %v6549_v9 = vld [vmem:[%s6523_s21 + $0x18] sm:$0xff]  ;;  %5558 = vset.pattern.permute.xlu1 %v6280_v11  ;;  %5557 = vset.pattern.permute.xlu0 %v6280_v11  ;;  %359 = vst [vmem:[#allocation2 + $0x28] sm:$0xff] %v343_v8  ;;  %s6283_s13 = smov 15   ;;  %s6284_s6 = smov 1  }
  0x81   : > { %v341_v2 = vld [vmem:[%s6523_s21] sm:$0xff]  ;;  %v6538_v3 = vpack.i.bf16 %v376_v1, %v373_v0  ;;  %360 = vst [vmem:[#allocation2 + $0x30] sm:$0xff] %v6549_v9  ;;  %v6560_v13 = vld [vmem:[%s6523_s21 + $0x28] sm:$0xff]  ;;  %v347_v14 = vld [vmem:[%s6523_s21 + $0x30] sm:$0xff]  ;;  %v6571_v17 = vpack.i.bf16 %v6549_v9, %v343_v8  ;;  %s6285_s18 = smov 127   ;;  %v401_v57 = vshrl.u32 %v400_v52, 7 }
  0x82   : > { %357 = vst [vmem:[#allocation2 + $0x8] sm:$0xff] %v341_v2  ;;  %v379_v5 = vld [vmem:[#allocation2 + $0x40] sm:$0xff]  ;;  %v6545_v7 = vpack.i.bf16 %v6541_v4, %v341_v2  ;;  %v6564_v15 = vld [vmem:[%s6523_s21 + $0x38] sm:$0xff]  ;;  %v6566_v16 = vpack.i.bf16 %v343_v8, %v341_v2  ;;  %362 = vst [vmem:[#allocation2 + $0x50] sm:$0xff] %v6560_v13  ;;  %vm482_vm1 = vcmask 138240   ;;  %s6286_s11 = smov 113  }
  0x83   : > { %v382_v6 = vld [vmem:[#allocation2 + $0x60] sm:$0xff]  ;;  %5078 = vrot.lane.b32.xlu1 %v6538_v3, %s6281_s30  ;;  %363 = vst [vmem:[#allocation2 + $0x68] sm:$0xff] %v347_v14  ;;  %364 = vst [vmem:[#allocation2 + $0x70] sm:$0xff] %v6564_v15  ;;  %v351_v18 = vld [vmem:[%s6523_s21 + $0x50] sm:$0xff]  ;;  %v5102_v29 = vpack.i.bf16 %v6564_v15, %v347_v14  ;;  %v6730_v60 = vsub.s32 1, %v401_v57  ;;  %v6735_v62 = vsub.s32 0, %v401_v57 }
  0x84   : > { %v345_v10 = vld [vmem:[%s6523_s21 + $0x20] sm:$0xff]  ;;  %v6556_v12 = vpack.i.bf16 %v382_v6, %v379_v5  ;;  %5088 = vrot.lane.b32.xlu0 %v6545_v7, %s6281_s30  ;;  %v6577_v19 = vld [vmem:[%s6523_s21 + $0x58] sm:$0xff]  ;;  %367 = vst [vmem:[#allocation2 + $0xa8] sm:$0xff] %v351_v18  ;;  %v6584_v22 = vld [vmem:[%s6523_s21 + $0x48] sm:$0xff]  ;;  %vm657_vm7 = vcmask 130048   ;;  %s6287_s15 = smov 112  }
  0x85   : > { %361 = vst [vmem:[#allocation2 + $0x48] sm:$0xff] %v345_v10  ;;  %v349_v20 = vld [vmem:[%s6523_s21 + $0x40] sm:$0xff]  ;;  %v6580_v21 = vpack.i.bf16 %v347_v14, %v345_v10  ;;  %368 = vst [vmem:[#allocation2 + $0xb0] sm:$0xff] %v6577_v19  ;;  %v6588_v24 = vld [vmem:[%s6523_s21 + $0x68] sm:$0xff]  ;;  %v5097_v26 = vpack.i.bf16 %v6560_v13, %v345_v10  ;;  %v5112_v31 = vpack.i.bf16 %v6577_v19, %v351_v18  ;;  %vm832_vm13 = vcmask 121856   ;;  %s8512_s10 = smov 111  }
  0x86   : > { %365 = vst [vmem:[#allocation2 + $0x88] sm:$0xff] %v349_v20  ;;  %v353_v23 = vld [vmem:[%s6523_s21 + $0x60] sm:$0xff]  ;;  %v6590_v25 = vpack.i.bf16 %v351_v18, %v349_v20  ;;  %366 = vst [vmem:[#allocation2 + $0x90] sm:$0xff] %v6584_v22  ;;  %v355_v27 = vld [vmem:[%s6523_s21 + $0x70] sm:$0xff]  ;;  %v5107_v33 = vpack.i.bf16 %v6584_v22, %v349_v20  ;;  %s2280_s17 = sld [smem:[#allocation11]]  ;;  %s4498_s29 = sld [smem:[#allocation11 + $0x1]] }
  0x87   : > { %369 = vst [vmem:[#allocation2 + $0xc8] sm:$0xff] %v353_v23  ;;  %370 = vst [vmem:[#allocation2 + $0xd0] sm:$0xff] %v6588_v24  ;;  %5083 = vrot.lane.b32.xlu1 %v6556_v12, %s6281_s30  ;;  %v6599_v28 = vld [vmem:[%s6523_s21 + $0x78] sm:$0xff]  ;;  %v6605_v30 = vpack.i.bf16 %v355_v27, %v353_v23  ;;  %v385_v32 = vld [vmem:[#allocation2 + $0x80] sm:$0xff]  ;;  %v5122_v36 = vpack.i.bf16 %v6588_v24, %v353_v23  ;;  %s8630_s19 = sshll.u32 %s6517_s22, 7  ;;  %p8631_p1 = scmp.ne.s32.totalorder %s8522_s16, 0 }
  0x88   : > { %5093 = vrot.lane.b32.xlu0 %v6571_v17, %s6281_s30  ;;  %371 = vst [vmem:[#allocation2 + $0xe8] sm:$0xff] %v355_v27  ;;  %372 = vst [vmem:[#allocation2 + $0xf0] sm:$0xff] %v6599_v28  ;;  %v388_v34 = vld [vmem:[#allocation2 + $0xa0] sm:$0xff]  ;;  %v5127_v40 = vpack.i.bf16 %v6599_v28, %v355_v27  ;;  %v6665_v42 = vld [vmem:[#allocation2 + $0x38] sm:$0xff] }
  0x89   : > { %v391_v35 = vld [vmem:[#allocation2 + $0xc0] sm:$0xff]  ;;  %v5117_v37 = vpack.i.bf16 %v388_v34, %v385_v32  ;;  %v6667_v43 = vld [vmem:[#allocation2 + $0x18] sm:$0xff]  ;;  %v6672_v44 = vpack.i.bf16 %v6665_v42, %v6549_v9 }
  0x8a   : > { %v394_v38 = vld [vmem:[#allocation2 + $0xe0] sm:$0xff]  ;;  %v6677_v45 = vpack.i.bf16 %v6667_v43, %v6541_v4  ;;  %v6679_v46 = vld [vmem:[#allocation2 + $0x58] sm:$0xff] }
  0x8b   : > { %5098 = vrot.lane.b32.xlu1 %v5097_v26, %s6281_s30  ;;  %v5132_v39 = vpack.i.bf16 %v394_v38, %v391_v35  ;;  %v6041_v41 = vld [vmem:[#allocation8 + $0x4] ss:$20 sps:$4 sm:$0xff]   ;;  %v6685_v47 = vpack.i.bf16 %v6679_v46, %v6560_v13  ;;  %v397_v56 = vld [vmem:[%s8505_s5] ss:$8 sm:$0x3] }
  0x8c   : > { %5103 = vrot.lane.b32.xlu0 %v5102_v29, %s6281_s30  ;;  %2093 = vmatprep.mubr.bf16.mxu0 %v6041_v41  ;;  %v6689_v48 = vld [vmem:[#allocation2 + $0x78] sm:$0xff]  ;;  %vm398_vm0 = vcmp.gt.f32.partialorder %v397_v56, 0.5 }
  0x8d   : > { %v6697_v49 = vpack.i.bf16 %v6689_v48, %v6564_v15  ;;  %v6699_v50 = vld [vmem:[#allocation2 + $0xb8] sm:$0xff]  ;;  %v399_v61 = vsel %vm398_vm0, 1, %v6280_v11 }
  0x8e   : > { %v6701_v51 = vld [vmem:[#allocation2 + $0x98] sm:$0xff]  ;;  %v6707_v53 = vpack.i.bf16 %v6699_v50, %v6577_v19  ;;  %v407_v2 = vrot.slane %v399_v61, %v6730_v60 }
  0x8f   : > { %5113 = vrot.lane.b32.xlu1 %v5112_v31, %s6281_s30  ;;  %v6713_v54 = vpack.i.bf16 %v6701_v51, %v6584_v22  ;;  %v6715_v55 = vld [vmem:[#allocation2 + $0xd8] sm:$0xff] }
  0x90   : > { %5108 = vrot.lane.b32.xlu0 %v5107_v33, %s6281_s30  ;;  %v6724_v58 = vpack.i.bf16 %v6715_v55, %v6588_v24  ;;  %v6728_v59 = vld [vmem:[#allocation2 + $0xf8] sm:$0xff]  ;;  %vm409_vm2 = vcmp.eq.s32.totalorder %v407_v2, 1 }
  0x91   : > { %v6741_v63 = vpack.i.bf16 %v6728_v59, %v6599_v28  ;;  %vm6755_vm4 = vmpackc.low %vm409_vm2, %vm409_vm2 }
  0x93   : > { %5123 = vrot.lane.b32.xlu1 %v5122_v36, %s6281_s30 }
  0x94   : > { %5118 = vrot.lane.b32.xlu0 %v5117_v37, %s6281_s30 }
  0x97   : > { %5133 = vrot.lane.b32.xlu1 %v5132_v39, %s6281_s30 }
  0x98   : > { %5128 = vrot.lane.b32.xlu0 %v5127_v40, %s6281_s30 }
  0x9b   : > { %5143 = vrot.lane.b32.xlu1 %v6571_v17, %s6282_s9 }
  0x9c   : > { %5138 = vrot.lane.b32.xlu0 %v6545_v7, %s6282_s9 }
  0x9f   : > { %5153 = vrot.lane.b32.xlu1 %v5097_v26, %s6282_s9 }
  0xa0   : > { %5148 = vrot.lane.b32.xlu0 %v6538_v3, %s6282_s9 }
  0xa3   : > { %5163 = vrot.lane.b32.xlu1 %v6556_v12, %s6282_s9 }
  0xa4   : > { %5158 = vrot.lane.b32.xlu0 %v5102_v29, %s6282_s9 }
  0xa7   : > { %5173 = vrot.lane.b32.xlu1 %v5112_v31, %s6282_s9 }
  0xa8   : > { %5168 = vrot.lane.b32.xlu0 %v5107_v33, %s6282_s9 }
  0xab   : > { %5183 = vrot.lane.b32.xlu1 %v5122_v36, %s6282_s9 }
  0xac   : > { %5178 = vrot.lane.b32.xlu0 %v5117_v37, %s6282_s9 }
  0xaf   : > { %5193 = vrot.lane.b32.xlu1 %v5132_v39, %s6282_s9 }
  0xb0   : > { %5188 = vrot.lane.b32.xlu0 %v5127_v40, %s6282_s9 }
  0xb3   : > { %5203 = vrot.lane.b32.xlu1 %v6571_v17, %s6283_s13 }
  0xb4   : > { %5198 = vrot.lane.b32.xlu0 %v6545_v7, %s6283_s13 }
  0xb7   : > { %5213 = vrot.lane.b32.xlu1 %v5097_v26, %s6283_s13 }
  0xb8   : > { %5208 = vrot.lane.b32.xlu0 %v6538_v3, %s6283_s13 }
  0xbb   : > { %5223 = vrot.lane.b32.xlu1 %v6556_v12, %s6283_s13 }
  0xbc   : > { %5218 = vrot.lane.b32.xlu0 %v5102_v29, %s6283_s13 }
  0xbf   : > { %5233 = vrot.lane.b32.xlu1 %v5112_v31, %s6283_s13 }
  0xc0   : > { %5228 = vrot.lane.b32.xlu0 %v5107_v33, %s6283_s13 }
  0xc3   : > { %5243 = vrot.lane.b32.xlu1 %v5122_v36, %s6283_s13 }
  0xc4   : > { %5238 = vrot.lane.b32.xlu0 %v5117_v37, %s6283_s13 }
  0xc7   : > { %5253 = vrot.lane.b32.xlu1 %v5132_v39, %s6283_s13 }
  0xc8   : > { %5248 = vrot.lane.b32.xlu0 %v5127_v40, %s6283_s13 }
  0xcb   : > { %5263 = vrot.lane.b32.xlu1 %v6571_v17, %s6284_s6 }
  0xcc   : > { %5258 = vrot.lane.b32.xlu0 %v6545_v7, %s6284_s6 }
  0xcf   : > { %5273 = vrot.lane.b32.xlu1 %v5097_v26, %s6284_s6 }
  0xd0   : > { %5268 = vrot.lane.b32.xlu0 %v6538_v3, %s6284_s6  ;;  %v403_v3 = vrot.slane %v399_v61, %v6735_v62 }
  0xd2   : > { %vm408_vm3 = vcmp.eq.s32.totalorder %v403_v3, 1 }
  0xd3   : > { %5283 = vrot.lane.b32.xlu1 %v6556_v12, %s6284_s6  ;;  %vm6761_vm5 = vmpackc.low %vm408_vm3, %vm408_vm3 }
  0xd4   : > { %5278 = vrot.lane.b32.xlu0 %v5102_v29, %s6284_s6  ;;  %v4436_v29 = vld [vmem:[%s8505_s5 + $0x1] ss:$8 sm:$0x3] }
  0xd5   : > { %vm573_vm6 = vcmp.gt.f32.partialorder %v4436_v29, 0.5 }
  0xd6   : > { %v574_v3 = vsel %vm573_vm6, 1, %v6280_v11 }
  0xd7   : > { %5293 = vrot.lane.b32.xlu1 %v5112_v31, %s6284_s6 }
  0xd8   : > { %5288 = vrot.lane.b32.xlu0 %v5107_v33, %s6284_s6 }
  0xdb   : > { %5303 = vrot.lane.b32.xlu1 %v5122_v36, %s6284_s6 }
  0xdc   : > { %5298 = vrot.lane.b32.xlu0 %v5117_v37, %s6284_s6 }
  0xdf   : > { %5313 = vrot.lane.b32.xlu1 %v5132_v39, %s6284_s6 }
  0xe0   : > { %5308 = vrot.lane.b32.xlu0 %v5127_v40, %s6284_s6 }
  0xe3   : > { %5323 = vrot.lane.b32.xlu1 %v6672_v44, %s6285_s18 }
  0xe4   : > { %5318 = vrot.lane.b32.xlu0 %v6677_v45, %s6285_s18 }
  0xe7   : > { %5333 = vrot.lane.b32.xlu1 %v6685_v47, %s6285_s18 }
  0xe8   : > { %5328 = vrot.lane.b32.xlu0 %v6566_v16, %s6285_s18 }
  0xeb   : > { %5343 = vrot.lane.b32.xlu1 %v6580_v21, %s6285_s18 }
  0xec   : > { %5338 = vrot.lane.b32.xlu0 %v6697_v49, %s6285_s18 }
  0xef   : > { %5353 = vrot.lane.b32.xlu1 %v6707_v53, %s6285_s18 }
  0xf0   : > { %5348 = vrot.lane.b32.xlu0 %v6713_v54, %s6285_s18 }
  0xf3   : > { %5363 = vrot.lane.b32.xlu1 %v6724_v58, %s6285_s18 }
  0xf4   : > { %5358 = vrot.lane.b32.xlu0 %v6590_v25, %s6285_s18 }
  0xf5   : > { %v5079_v0 = vpop.permute.xlu1 %5078 }
  0xf6   : > { %v5089_v1 = vpop.permute.xlu0 %5088  ;;  %v5080_v6 = vunpack.i.l.bf16 %v5079_v0  ;;  %v5081_v9 = vunpack.i.h.bf16 %v5079_v0 }
  0xf7   : > { %5373 = vrot.lane.b32.xlu1 %v6605_v30, %s6285_s18  ;;  %v5091_v4 = vunpack.i.h.bf16 %v5089_v1  ;;  %v5090_v5 = vunpack.i.l.bf16 %v5089_v1 }
  0xf8   : > { %5368 = vrot.lane.b32.xlu0 %v6741_v63, %s6285_s18 }
  0xf9   : > { %v5084_v7 = vpop.permute.xlu1 %5083  ;;  %v484_v13 = vsel %vm482_vm1, %v5090_v5, %v5091_v4  ;;  %v483_v19 = vsel %vm482_vm1, %v5080_v6, %v5090_v5 }
  0xfa   : > { %v5094_v8 = vpop.permute.xlu0 %5093  ;;  %v5085_v14 = vunpack.i.l.bf16 %v5084_v7  ;;  %v5086_v31 = vunpack.i.h.bf16 %v5084_v7 }
  0xfb   : > { %v5096_v10 = vunpack.i.h.bf16 %v5094_v8  ;;  %v5095_v12 = vunpack.i.l.bf16 %v5094_v8  ;;  %5383 = vrot.lane.b32.xlu1 %v6672_v44, %s6286_s11  ;;  %v582_v8 = vrot.slane %v574_v3, %v6730_v60 }
  0xfc   : > { %5378 = vrot.lane.b32.xlu0 %v6677_v45, %s6286_s11 }
  0xfd   : > { %v5099_v15 = vpop.permute.xlu1 %5098  ;;  %v486_v17 = vsel %vm482_vm1, %v5095_v12, %v5096_v10  ;;  %v485_v20 = vsel %vm482_vm1, %v5081_v9, %v5095_v12  ;;  %vm6807_vm8 = vcmp.eq.s32.totalorder %v582_v8, 1 }
  0xfe   : > { %v5101_v22 = vunpack.i.h.bf16 %v5099_v15  ;;  %v5100_v23 = vunpack.i.l.bf16 %v5099_v15  ;;  %v5104_v24 = vpop.permute.xlu0 %5103  ;;  %v4507_v26 = vpack.c.bf16 %v486_v17, %v484_v13  ;;  %v4510_v28 = vpack.c.bf16 %v485_v20, %v483_v19  ;;  %vm6828_vm9 = vmpackc.low %vm6807_vm8, %vm6807_vm8 }
  0xff   : > { %v5106_v32 = vunpack.i.h.bf16 %v5104_v24  ;;  %v5105_v33 = vunpack.i.l.bf16 %v5104_v24  ;;  %5393 = vrot.lane.b32.xlu1 %v6685_v47, %s6286_s11 }
 0x100   : > { %v487_v34 = vsel %vm482_vm1, %v5085_v14, %v5100_v23  ;;  %v488_v35 = vsel %vm482_vm1, %v5100_v23, %v5101_v22  ;;  %5388 = vrot.lane.b32.xlu0 %v6566_v16, %s6286_s11  ;;  %4508 = vmatprep.subr.msk.bf16.mxu0 %vm6755_vm4, %v4507_v26 }
 0x101   : > { %v489_v36 = vsel %vm482_vm1, %v5086_v31, %v5105_v33  ;;  %v490_v37 = vsel %vm482_vm1, %v5105_v33, %v5106_v32  ;;  %v5114_v38 = vpop.permute.xlu1 %5113  ;;  %4511 = vmatpush1.bf16.msk.msra.mxu0 %vm6761_vm5, %v4510_v28  ;;  %v578_v33 = vrot.slane %v574_v3, %v6735_v62 }
 0x102   : > { %v5116_v39 = vunpack.i.h.bf16 %v5114_v38  ;;  %v5115_v40 = vunpack.i.l.bf16 %v5114_v38  ;;  %v5109_v41 = vpop.permute.xlu0 %5108  ;;  %v4513_v52 = vpack.c.bf16 %v490_v37, %v488_v35  ;;  %v4516_v56 = vpack.c.bf16 %v489_v36, %v487_v34 }
 0x103   : > { %v5111_v57 = vunpack.i.h.bf16 %v5109_v41  ;;  %v5110_v61 = vunpack.i.l.bf16 %v5109_v41  ;;  %5403 = vrot.lane.b32.xlu1 %v6580_v21, %s6286_s11  ;;  %vm583_vm10 = vcmp.eq.s32.totalorder %v578_v33, 1 }
 0x104   : > { %v494_v0 = vsel %vm482_vm1, %v5115_v40, %v5116_v39  ;;  %5398 = vrot.lane.b32.xlu0 %v6697_v49, %s6286_s11  ;;  %4514 = vmatprep.subr.msk.bf16.mxu0 %vm6755_vm4, %v4513_v52  ;;  %vm6840_vm11 = vmpackc.low %vm583_vm10, %vm583_vm10 }
 0x105   : > { %v492_v1 = vsel %vm482_vm1, %v5110_v61, %v5111_v57  ;;  %v5124_v2 = vpop.permute.xlu1 %5123  ;;  %4517 = vmatpush1.bf16.msk.msra.mxu0 %vm6761_vm5, %v4516_v56 }
 0x106   : > { %v5119_v4 = vpop.permute.xlu0 %5118  ;;  %v4519_v5 = vpack.c.bf16 %v494_v0, %v492_v1  ;;  %v5126_v9 = vunpack.i.h.bf16 %v5124_v2  ;;  %v5125_v10 = vunpack.i.l.bf16 %v5124_v2 }
 0x107   : > { %v5121_v6 = vunpack.i.h.bf16 %v5119_v4  ;;  %v5120_v7 = vunpack.i.l.bf16 %v5119_v4  ;;  %5413 = vrot.lane.b32.xlu1 %v6707_v53, %s6286_s11 }
 0x108   : > { %5408 = vrot.lane.b32.xlu0 %v6713_v54, %s6286_s11  ;;  %4520 = vmatprep.subr.msk.bf16.mxu0 %vm6755_vm4, %v4519_v5  ;;  %v496_v28 = vsel %vm482_vm1, %v5125_v10, %v5126_v9 }
 0x109   : > { %v493_v12 = vsel %vm482_vm1, %v5121_v6, %v5115_v40  ;;  %v491_v13 = vsel %vm482_vm1, %v5120_v7, %v5110_v61  ;;  %v5134_v14 = vpop.permute.xlu1 %5133 }
 0x10a   : > { %v5136_v15 = vunpack.i.h.bf16 %v5134_v14  ;;  %v5135_v17 = vunpack.i.l.bf16 %v5134_v14  ;;  %v5129_v19 = vpop.permute.xlu0 %5128  ;;  %v4522_v20 = vpack.c.bf16 %v493_v12, %v491_v13 }
 0x10b   : > { %v5131_v22 = vunpack.i.h.bf16 %v5129_v19  ;;  %v5130_v23 = vunpack.i.l.bf16 %v5129_v19  ;;  %5423 = vrot.lane.b32.xlu1 %v6724_v58, %s6286_s11 }
 0x10c   : > { %v495_v24 = vsel %vm482_vm1, %v5135_v17, %v5125_v10  ;;  %5418 = vrot.lane.b32.xlu0 %v6590_v25, %s6286_s11  ;;  %4523 = vmatpush1.bf16.msk.msra.mxu0 %vm6761_vm5, %v4522_v20 }
 0x10d   : > { %v497_v29 = vsel %vm482_vm1, %v5136_v15, %v5130_v23  ;;  %v498_v31 = vsel %vm482_vm1, %v5130_v23, %v5131_v22  ;;  %v5144_v32 = vpop.permute.xlu1 %5143 }
 0x10e   : > { %v5146_v34 = vunpack.i.h.bf16 %v5144_v32  ;;  %v5145_v35 = vunpack.i.l.bf16 %v5144_v32  ;;  %v5139_v36 = vpop.permute.xlu0 %5138  ;;  %v4525_v37 = vpack.c.bf16 %v498_v31, %v496_v28  ;;  %v4528_v38 = vpack.c.bf16 %v497_v29, %v495_v24 }
 0x10f   : > { %v5141_v39 = vunpack.i.h.bf16 %v5139_v36  ;;  %v5140_v40 = vunpack.i.l.bf16 %v5139_v36  ;;  %5433 = vrot.lane.b32.xlu1 %v6605_v30, %s6286_s11 }
 0x110   : > { %v661_v41 = vsel %vm657_vm7, %v5145_v35, %v5146_v34  ;;  %5428 = vrot.lane.b32.xlu0 %v6741_v63, %s6286_s11  ;;  %4526 = vmatprep.subr.msk.bf16.mxu0 %vm6755_vm4, %v4525_v37  ;;  %vm1007_vm4 = vcmask 7168  }
 0x111   : > { %v659_v52 = vsel %vm657_vm7, %v5140_v40, %v5141_v39  ;;  %v5154_v56 = vpop.permute.xlu1 %5153  ;;  %4529 = vmatpush1.bf16.msk.msra.mxu0 %vm6761_vm5, %v4528_v38 }
 0x112   : > { %v5149_v61 = vpop.permute.xlu0 %5148  ;;  %v4531_v0 = vpack.c.bf16 %v661_v41, %v659_v52  ;;  %v5156_v18 = vunpack.i.h.bf16 %v5154_v56  ;;  %v5155_v27 = vunpack.i.l.bf16 %v5154_v56 }
 0x113   : > { %v5151_v1 = vunpack.i.h.bf16 %v5149_v61  ;;  %v5150_v2 = vunpack.i.l.bf16 %v5149_v61  ;;  %5443 = vrot.lane.b32.xlu1 %v6672_v44, %s6287_s15 }
 0x114   : > { %5438 = vrot.lane.b32.xlu0 %v6677_v45, %s6287_s15  ;;  %4532 = vmatprep.subr.msk.bf16.mxu0 %vm6828_vm9, %v4531_v0  ;;  %v4437_v45 = vld [vmem:[%s8505_s5 + $0x2] ss:$8 sm:$0x3]  ;;  %v663_v14 = vsel %vm657_vm7, %v5155_v27, %v5156_v18 }
 0x115   : > { %v660_v3 = vsel %vm657_vm7, %v5151_v1, %v5145_v35  ;;  %v658_v4 = vsel %vm657_vm7, %v5150_v2, %v5140_v40  ;;  %v5164_v5 = vpop.permute.xlu1 %5163  ;;  %vm748_vm12 = vcmp.gt.f32.partialorder %v4437_v45, 0.5  ;;  %v6884_v1 = vld [vmem:[#allocation2 + $0x30] sm:$0xff] }
 0x116   : > { %v5166_v7 = vunpack.i.h.bf16 %v5164_v5  ;;  %v5165_v8 = vunpack.i.l.bf16 %v5164_v5  ;;  %v5159_v44 = vpop.permute.xlu0 %5158  ;;  %v4534_v9 = vpack.c.bf16 %v660_v3, %v658_v4  ;;  %v749_v32 = vsel %vm748_vm12, 1, %v6280_v11  ;;  %v6893_v4 = vld [vmem:[#allocation2 + $0x10] sm:$0xff] }
 0x117   : > { %v5161_v10 = vunpack.i.h.bf16 %v5159_v44  ;;  %v5160_v12 = vunpack.i.l.bf16 %v5159_v44  ;;  %5453 = vrot.lane.b32.xlu1 %v6685_v47, %s6287_s15 }
 0x118   : > { %v662_v13 = vsel %vm657_vm7, %v5165_v8, %v5155_v27  ;;  %5448 = vrot.lane.b32.xlu0 %v6566_v16, %s6287_s15  ;;  %4535 = vmatpush1.bf16.msk.msra.mxu0 %vm6840_vm11, %v4534_v9 }
 0x119   : > { %v664_v15 = vsel %vm657_vm7, %v5166_v7, %v5160_v12  ;;  %v665_v17 = vsel %vm657_vm7, %v5160_v12, %v5161_v10  ;;  %v5174_v19 = vpop.permute.xlu1 %5173  ;;  %v5502_v12 = vpack.i.bf16 %v6665_v42, %v6884_v1  ;;  %v6919_v42 = vld [vmem:[#allocation2 + $0x8] sm:$0xff] }
 0x11a   : > { %v5176_v20 = vunpack.i.h.bf16 %v5174_v19  ;;  %v5175_v22 = vunpack.i.l.bf16 %v5174_v19  ;;  %v5169_v23 = vpop.permute.xlu0 %5168  ;;  %v4537_v47 = vpack.c.bf16 %v665_v17, %v663_v14  ;;  %v4540_v24 = vpack.c.bf16 %v664_v15, %v662_v13  ;;  %v6907_v15 = vld [vmem:[#allocation2 + $0x50] sm:$0xff] }
 0x11b   : > { %v5171_v26 = vunpack.i.h.bf16 %v5169_v23  ;;  %v5170_v28 = vunpack.i.l.bf16 %v5169_v23  ;;  %5463 = vrot.lane.b32.xlu1 %v6580_v21, %s6287_s15  ;;  %v5497_v14 = vpack.i.bf16 %v6667_v43, %v6893_v4  ;;  %v5512_v23 = vpack.i.bf16 %v6679_v46, %v6907_v15 }
 0x11c   : > { %v669_v16 = vsel %vm657_vm7, %v5175_v22, %v5176_v20  ;;  %5458 = vrot.lane.b32.xlu0 %v6697_v49, %s6287_s15  ;;  %4538 = vmatprep.subr.msk.bf16.mxu0 %vm6828_vm9, %v4537_v47  ;;  %v757_v49 = vrot.slane %v749_v32, %v6730_v60  ;;  %v6999_v20 = vld [vmem:[#allocation2 + $0xe8] sm:$0xff] }
 0x11d   : > { %v667_v29 = vsel %vm657_vm7, %v5170_v28, %v5171_v26  ;;  %v5184_v31 = vpop.permute.xlu1 %5183  ;;  %4541 = vmatpush1.bf16.msk.msra.mxu0 %vm6840_vm11, %v4540_v24  ;;  %v6935_v24 = vld [vmem:[#allocation2 + $0x48] sm:$0xff] }
 0x11e   : > { %v5179_v33 = vpop.permute.xlu0 %5178  ;;  %v4543_v34 = vpack.c.bf16 %v669_v16, %v667_v29  ;;  %v5186_v36 = vunpack.i.h.bf16 %v5184_v31  ;;  %v5185_v37 = vunpack.i.l.bf16 %v5184_v31  ;;  %vm6886_vm14 = vcmp.eq.s32.totalorder %v757_v49, 1  ;;  %v6937_v26 = vld [vmem:[#allocation2 + $0x68] sm:$0xff] }
 0x11f   : > { %v5181_v35 = vunpack.i.h.bf16 %v5179_v33  ;;  %v5180_v21 = vunpack.i.l.bf16 %v5179_v33  ;;  %5473 = vrot.lane.b32.xlu1 %v6707_v53, %s6287_s15  ;;  %vm6915_vm15 = vmpackc.low %vm6886_vm14, %vm6886_vm14  ;;  %v6948_v33 = vld [vmem:[#allocation2 + $0x70] sm:$0xff] }
 0x120   : > { %5468 = vrot.lane.b32.xlu0 %v6713_v54, %s6287_s15  ;;  %4544 = vmatprep.subr.msk.bf16.mxu0 %vm6828_vm9, %v4543_v34  ;;  %v671_v18 = vsel %vm657_vm7, %v5185_v37, %v5186_v36  ;;  %v4438_v36 = vld [vmem:[%s8505_s5 + $0x3] ss:$8 sm:$0x3] }
 0x121   : > { %v668_v38 = vsel %vm657_vm7, %v5181_v35, %v5175_v22  ;;  %v666_v39 = vsel %vm657_vm7, %v5180_v21, %v5170_v28  ;;  %v5194_v40 = vpop.permute.xlu1 %5193  ;;  %vm923_vm3 = vcmp.gt.f32.partialorder %v4438_v36, 0.5 }
 0x122   : > { %v5196_v41 = vunpack.i.h.bf16 %v5194_v40  ;;  %v5195_v52 = vunpack.i.l.bf16 %v5194_v40  ;;  %v5189_v56 = vpop.permute.xlu0 %5188  ;;  %v4546_v61 = vpack.c.bf16 %v668_v38, %v666_v39  ;;  %v5522_v39 = vpack.i.bf16 %v6937_v26, %v6935_v24 }
 0x123   : > { %v5191_v53 = vunpack.i.h.bf16 %v5189_v56  ;;  %v5190_v0 = vunpack.i.l.bf16 %v5189_v56  ;;  %5483 = vrot.lane.b32.xlu1 %v6724_v58, %s6287_s15 }
 0x124   : > { %v670_v54 = vsel %vm657_vm7, %v5195_v52, %v5185_v37  ;;  %5478 = vrot.lane.b32.xlu0 %v6590_v25, %s6287_s15  ;;  %4547 = vmatpush1.bf16.msk.msra.mxu0 %vm6840_vm11, %v4546_v61  ;;  %v753_v25 = vrot.slane %v749_v32, %v6735_v62  ;;  %v6962_v52 = vld [vmem:[#allocation2 + $0xb0] sm:$0xff] }
 0x125   : > { %v672_v27 = vsel %vm657_vm7, %v5196_v41, %v5190_v0  ;;  %v673_v58 = vsel %vm657_vm7, %v5190_v0, %v5191_v53  ;;  %v5204_v3 = vpop.permute.xlu1 %5203  ;;  %v5517_v41 = vpack.i.bf16 %v6689_v48, %v6948_v33  ;;  %v5532_v48 = vpack.i.bf16 %v6699_v50, %v6962_v52  ;;  %v6985_v50 = vld [vmem:[#allocation2 + $0xa8] sm:$0xff] }
 0x126   : > { %v5206_v5 = vunpack.i.h.bf16 %v5204_v3  ;;  %v5205_v7 = vunpack.i.l.bf16 %v5204_v3  ;;  %v5199_v8 = vpop.permute.xlu0 %5198  ;;  %v4549_v44 = vpack.c.bf16 %v673_v58, %v671_v18  ;;  %v4552_v9 = vpack.c.bf16 %v672_v27, %v670_v54  ;;  %v6967_v54 = vld [vmem:[#allocation2 + $0x90] sm:$0xff] }
 0x127   : > { %v5201_v45 = vunpack.i.h.bf16 %v5199_v8  ;;  %v5200_v10 = vunpack.i.l.bf16 %v5199_v8  ;;  %5493 = vrot.lane.b32.xlu1 %v6605_v30, %s6287_s15  ;;  %vm6923_vm0 = vcmp.eq.s32.totalorder %v753_v25, 1  ;;  %v5527_v8 = vpack.i.bf16 %v6701_v51, %v6967_v54 }
 0x128   : > { %v836_v13 = vsel %vm832_vm13, %v5205_v7, %v5206_v5  ;;  %5488 = vrot.lane.b32.xlu0 %v6741_v63, %s6287_s15  ;;  %4550 = vmatprep.subr.msk.bf16.mxu0 %vm6828_vm9, %v4549_v44  ;;  %v6921_v63 = vld [vmem:[#allocation2 + $0x28] sm:$0xff]  ;;  %vm6944_vm2 = vmpackc.low %vm6923_vm0, %vm6923_vm0  ;;  %v6978_v44 = vld [vmem:[#allocation2 + $0xd0] sm:$0xff] }
 0x129   : > { %v834_v17 = vsel %vm832_vm13, %v5200_v10, %v5201_v45  ;;  %v5214_v19 = vpop.permute.xlu1 %5213  ;;  %4553 = vmatpush1.bf16.msk.msra.mxu0 %vm6840_vm11, %v4552_v9  ;;  %v5507_v47 = vpack.i.bf16 %v6921_v63, %v6919_v42  ;;  %v5542_v51 = vpack.i.bf16 %v6715_v55, %v6978_v44  ;;  %vm1214_vm11 = vcmask 1039360  }
 0x12a   : > { %v5209_v43 = vpop.permute.xlu0 %5208  ;;  %v4555_v57 = vpack.c.bf16 %v836_v13, %v834_v17  ;;  %v5216_v28 = vunpack.i.h.bf16 %v5214_v19  ;;  %v5215_v16 = vunpack.i.l.bf16 %v5214_v19 }
 0x12b   : > { %v5211_v22 = vunpack.i.h.bf16 %v5209_v43  ;;  %v5210_v6 = vunpack.i.l.bf16 %v5209_v43  ;;  %5503 = vrot.lane.b32.xlu1 %v5502_v12, %s8512_s10  ;;  %v924_v12 = vsel %vm923_vm3, 1, %v6280_v11  ;;  %vm1389_vm3 = vcmask 924672  }
 0x12c   : > { %5498 = vrot.lane.b32.xlu0 %v5497_v14, %s8512_s10  ;;  %4556 = vmatprep.subr.msk.bf16.mxu0 %vm6915_vm15, %v4555_v57  ;;  %v838_v56 = vsel %vm832_vm13, %v5215_v16, %v5216_v28  ;;  %v6997_v57 = vld [vmem:[#allocation2 + $0xc8] sm:$0xff] }
 0x12d   : > { %v835_v29 = vsel %vm832_vm13, %v5211_v22, %v5205_v7  ;;  %v833_v31 = vsel %vm832_vm13, %v5210_v6, %v5200_v10  ;;  %v5224_v32 = vpop.permute.xlu1 %5223  ;;  %v6983_v10 = vld [vmem:[#allocation2 + $0x88] sm:$0xff]  ;;  %v932_v22 = vrot.slane %v924_v12, %v6730_v60 }
 0x12e   : > { %v5226_v34 = vunpack.i.h.bf16 %v5224_v32  ;;  %v5225_v35 = vunpack.i.l.bf16 %v5224_v32  ;;  %v5219_v21 = vpop.permute.xlu0 %5218  ;;  %v4558_v49 = vpack.c.bf16 %v835_v29, %v833_v31  ;;  %v5537_v43 = vpack.i.bf16 %v6985_v50, %v6983_v10 }
 0x12f   : > { %v5221_v37 = vunpack.i.h.bf16 %v5219_v21  ;;  %v5220_v38 = vunpack.i.l.bf16 %v5219_v21  ;;  %5513 = vrot.lane.b32.xlu1 %v5512_v23, %s8512_s10  ;;  %vm7015_vm5 = vcmp.eq.s32.totalorder %v932_v22, 1 }
 0x130   : > { %v837_v40 = vsel %vm832_vm13, %v5225_v35, %v5215_v16  ;;  %5508 = vrot.lane.b32.xlu0 %v5507_v47, %s8512_s10  ;;  %4559 = vmatpush1.bf16.msk.msra.mxu0 %vm6944_vm2, %v4558_v49  ;;  %v7004_v16 = vld [vmem:[#allocation2 + $0xf0] sm:$0xff]  ;;  %v5552_v49 = vpack.i.bf16 %v6999_v20, %v6997_v57  ;;  %vm7034_vm6 = vmpackc.low %vm7015_vm5, %vm7015_vm5 }
 0x131   : > { %v839_v61 = vsel %vm832_vm13, %v5226_v34, %v5220_v38  ;;  %v840_v53 = vsel %vm832_vm13, %v5220_v38, %v5221_v37  ;;  %v5234_v0 = vpop.permute.xlu1 %5233  ;;  %v5547_v37 = vpack.i.bf16 %v6728_v59, %v7004_v16 }
 0x132   : > { %v5236_v2 = vunpack.i.h.bf16 %v5234_v0  ;;  %v5235_v18 = vunpack.i.l.bf16 %v5234_v0  ;;  %v5229_v27 = vpop.permute.xlu0 %5228  ;;  %v4561_v58 = vpack.c.bf16 %v840_v53, %v838_v56  ;;  %v4564_v3 = vpack.c.bf16 %v839_v61, %v837_v40 }
 0x133   : > { %v5231_v25 = vunpack.i.h.bf16 %v5229_v27  ;;  %v5230_v5 = vunpack.i.l.bf16 %v5229_v27  ;;  %5523 = vrot.lane.b32.xlu1 %v5522_v39, %s8512_s10  ;;  %v928_v61 = vrot.slane %v924_v12, %v6735_v62 }
 0x134   : > { %v844_v7 = vsel %vm832_vm13, %v5235_v18, %v5236_v2  ;;  %5518 = vrot.lane.b32.xlu0 %v5517_v41, %s8512_s10  ;;  %4562 = vmatprep.subr.msk.bf16.mxu0 %vm6915_vm15, %v4561_v58 }
 0x135   : > { %v842_v9 = vsel %vm832_vm13, %v5230_v5, %v5231_v25  ;;  %v5244_v45 = vpop.permute.xlu1 %5243  ;;  %4565 = vmatpush1.bf16.msk.msra.mxu0 %vm6944_vm2, %v4564_v3  ;;  %vm933_vm8 = vcmp.eq.s32.totalorder %v928_v61, 1 }
 0x136   : > { %v5239_v13 = vpop.permute.xlu0 %5238  ;;  %v4567_v14 = vpack.c.bf16 %v844_v7, %v842_v9  ;;  %v5246_v6 = vunpack.i.h.bf16 %v5244_v45  ;;  %v5245_v23 = vunpack.i.l.bf16 %v5244_v45  ;;  %vm7042_vm9 = vmpackc.low %vm933_vm8, %vm933_vm8 }
 0x137   : > { %v5241_v17 = vunpack.i.h.bf16 %v5239_v13  ;;  %v5240_v19 = vunpack.i.l.bf16 %v5239_v13  ;;  %5533 = vrot.lane.b32.xlu1 %v5532_v48, %s8512_s10  ;;  %v1901_v48 = vld [vmem:[%s8502_s2 + $0x8] sm:$0xff] }
 0x138   : > { %5528 = vrot.lane.b32.xlu0 %v5527_v8, %s8512_s10  ;;  %4568 = vmatprep.subr.msk.bf16.mxu0 %vm6915_vm15, %v4567_v14  ;;  %v846_v39 = vsel %vm832_vm13, %v5245_v23, %v5246_v6 }
 0x139   : > { %v843_v47 = vsel %vm832_vm13, %v5241_v17, %v5235_v18  ;;  %v841_v55 = vsel %vm832_vm13, %v5240_v19, %v5230_v5  ;;  %v5254_v28 = vpop.permute.xlu1 %5253  ;;  %v1900_v17 = vld [vmem:[%s8502_s2] sm:$0xff] }
 0x13a   : > { %v5256_v29 = vunpack.i.h.bf16 %v5254_v28  ;;  %v5255_v31 = vunpack.i.l.bf16 %v5254_v28  ;;  %v5249_v32 = vpop.permute.xlu0 %5248  ;;  %v4570_v34 = vpack.c.bf16 %v843_v47, %v841_v55 }
 0x13b   : > { %v5251_v35 = vunpack.i.h.bf16 %v5249_v32  ;;  %v5250_v21 = vunpack.i.l.bf16 %v5249_v32  ;;  %5543 = vrot.lane.b32.xlu1 %v5542_v51, %s8512_s10 }
 0x13c   : > { %v845_v36 = vsel %vm832_vm13, %v5255_v31, %v5245_v23  ;;  %5538 = vrot.lane.b32.xlu0 %v5537_v43, %s8512_s10  ;;  %4571 = vmatpush1.bf16.msk.msra.mxu0 %vm6944_vm2, %v4570_v34 }
 0x13d   : > { %v847_v40 = vsel %vm832_vm13, %v5256_v29, %v5250_v21  ;;  %v848_v41 = vsel %vm832_vm13, %v5250_v21, %v5251_v35  ;;  %v5264_v56 = vpop.permute.xlu1 %5263 }
 0x13e   : > { %v5266_v53 = vunpack.i.h.bf16 %v5264_v56  ;;  %v5265_v0 = vunpack.i.l.bf16 %v5264_v56  ;;  %v5259_v2 = vpop.permute.xlu0 %5258  ;;  %v4573_v18 = vpack.c.bf16 %v848_v41, %v846_v39  ;;  %v4576_v27 = vpack.c.bf16 %v847_v40, %v845_v36 }
 0x13f   : > { %v5261_v58 = vunpack.i.h.bf16 %v5259_v2  ;;  %v5260_v59 = vunpack.i.l.bf16 %v5259_v2  ;;  %5553 = vrot.lane.b32.xlu1 %v5552_v49, %s8512_s10 }
 0x140   : > { %v1011_v3 = vsel %vm1007_vm4, %v5265_v0, %v5266_v53  ;;  %4574 = vmatprep.subr.msk.bf16.mxu0 %vm6915_vm15, %v4573_v18  ;;  %5548 = vrot.lane.b32.xlu0 %v5547_v37, %s8512_s10 }
 0x141   : > { %v1009_v25 = vsel %vm1007_vm4, %v5260_v59, %v5261_v58  ;;  %v5274_v5 = vpop.permute.xlu1 %5273  ;;  %4577 = vmatpush1.bf16.msk.msra.mxu0 %vm6944_vm2, %v4576_v27 }
 0x142   : > { %v5269_v7 = vpop.permute.xlu0 %5268  ;;  %v4579_v8 = vpack.c.bf16 %v1011_v3, %v1009_v25  ;;  %v5276_v45 = vunpack.i.h.bf16 %v5274_v5  ;;  %v5275_v12 = vunpack.i.l.bf16 %v5274_v5 }
 0x143   : > { %v5271_v30 = vunpack.i.h.bf16 %v5269_v7  ;;  %v5270_v9 = vunpack.i.l.bf16 %v5269_v7  ;;  %1915 = vperm.xlu1 %5558, %v1901_v48  }
 0x144   : > { %4580 = vmatprep.subr.msk.bf16.mxu0 %vm7034_vm6, %v4579_v8  ;;  %v1013_v55 = vsel %vm1007_vm4, %v5275_v12, %v5276_v45  ;;  %1910 = vperm.xlu0 %5557, %v1900_v17  }
 0x145   : > { %v1010_v46 = vsel %vm1007_vm4, %v5271_v30, %v5265_v0  ;;  %v1008_v13 = vsel %vm1007_vm4, %v5270_v9, %v5260_v59  ;;  %v5284_v14 = vpop.permute.xlu1 %5283 }
 0x146   : > { %v5286_v19 = vunpack.i.h.bf16 %v5284_v14  ;;  %v5285_v51 = vunpack.i.l.bf16 %v5284_v14  ;;  %v5279_v43 = vpop.permute.xlu0 %5278  ;;  %v4582_v22 = vpack.c.bf16 %v1010_v46, %v1008_v13 }
 0x147   : > { %v5281_v6 = vunpack.i.h.bf16 %v5279_v43  ;;  %v5280_v23 = vunpack.i.l.bf16 %v5279_v43  ;;  %v4439_v43 = vld [vmem:[%s8505_s5 + $0x5] ss:$8 sm:$0x3] }
 0x148   : > { %v1012_v47 = vsel %vm1007_vm4, %v5285_v51, %v5275_v12  ;;  %4583 = vmatpush1.bf16.msk.msra.mxu0 %vm7042_vm9, %v4582_v22  ;;  %v1089_v51 = vpack.c.bf16 %v6884_v1, %v6893_v4  ;;  %v6039_v22 = vld [vmem:[#allocation8] ss:$20 sps:$4 sm:$0xff]   ;;  %vm1130_vm10 = vcmp.gt.f32.partialorder %v4439_v43, 0.5  ;;  %v1091_v1 = vpack.c.bf16 %v6948_v33, %v6907_v15 }
 0x149   : > { %v1014_v28 = vsel %vm1007_vm4, %v5286_v19, %v5280_v23  ;;  %v1015_v29 = vsel %vm1007_vm4, %v5280_v23, %v5281_v6  ;;  %v5294_v31 = vpop.permute.xlu1 %5293  ;;  %v1088_v23 = vpack.c.bf16 %v6921_v63, %v6919_v42  ;;  %v1131_v4 = vsel %vm1130_vm10, 1, %v6280_v11 }
 0x14a   : > { %v5296_v32 = vunpack.i.h.bf16 %v5294_v31  ;;  %v5295_v34 = vunpack.i.l.bf16 %v5294_v31  ;;  %v5289_v35 = vpop.permute.xlu0 %5288  ;;  %v4585_v21 = vpack.c.bf16 %v1015_v29, %v1013_v55  ;;  %v4588_v49 = vpack.c.bf16 %v1014_v28, %v1012_v47  ;;  %v6042_v47 = vld [vmem:[#allocation8 + $0x2c] ss:$20 sps:$4 sm:$0xff]   ;;  %v1902_v29 = vld [vmem:[%s8502_s2 + $0x10] sm:$0xff] }
 0x14b   : > { %v5291_v36 = vunpack.i.h.bf16 %v5289_v35  ;;  %v5290_v37 = vunpack.i.l.bf16 %v5289_v35  ;;  %v1090_v42 = vpack.c.bf16 %v6937_v26, %v6935_v24  ;;  %v1093_v15 = vpack.c.bf16 %v6962_v52, %v6967_v54  ;;  %v4440_v52 = vld [vmem:[%s8505_s5 + $0x6] ss:$8 sm:$0x3]  ;;  %v6044_v54 = vld [vmem:[#allocation8 + $0x28] ss:$20 sps:$4 sm:$0xff]   ;;  %1920 = vperm.xlu1 %5558, %v1902_v29  }
 0x14c   : > { %v1019_v38 = vsel %vm1007_vm4, %v5295_v34, %v5296_v32  ;;  %4586 = vmatprep.subr.msk.bf16.mxu0 %vm7034_vm6, %v4585_v21  ;;  %v1139_v33 = vrot.slane %v1131_v4, %v6730_v60  ;;  %vm1305_vm14 = vcmp.gt.f32.partialorder %v4440_v52, 0.5 }
 0x14d   : > { %v1017_v39 = vsel %vm1007_vm4, %v5290_v37, %v5291_v36  ;;  %v5304_v40 = vpop.permute.xlu1 %5303  ;;  %4589 = vmatpush1.bf16.msk.msra.mxu0 %vm7042_vm9, %v4588_v49  ;;  %v1092_v49 = vpack.c.bf16 %v6985_v50, %v6983_v10  ;;  %v6045_v36 = vld [vmem:[#allocation8 + $0x54] ss:$20 sps:$4 sm:$0xff]   ;;  %v1904_v10 = vld [vmem:[%s8502_s2 + $0x20] sm:$0xff] }
 0x14e   : > { %v5299_v41 = vpop.permute.xlu0 %5298  ;;  %v4591_v56 = vpack.c.bf16 %v1019_v38, %v1017_v39  ;;  %v5306_v0 = vunpack.i.h.bf16 %v5304_v40  ;;  %v5305_v2 = vunpack.i.l.bf16 %v5304_v40  ;;  %v1095_v39 = vpack.c.bf16 %v7004_v16, %v6978_v44 }
 0x14f   : > { %v5301_v61 = vunpack.i.h.bf16 %v5299_v41  ;;  %v5300_v53 = vunpack.i.l.bf16 %v5299_v41  ;;  %v1094_v40 = vpack.c.bf16 %v6999_v20, %v6997_v57  ;;  %v1135_v41 = vrot.slane %v1131_v4, %v6735_v62  ;;  %v1905_v20 = vld [vmem:[%s8502_s2 + $0x28] sm:$0xff]  ;;  %1930 = vperm.xlu1 %5558, %v1904_v10  }
 0x150   : > { %4592 = vmatprep.subr.msk.bf16.mxu0 %vm7034_vm6, %v4591_v56  ;;  %v1021_v9 = vsel %vm1007_vm4, %v5305_v2, %v5306_v0  ;;  %vm7127_vm12 = vcmp.eq.s32.totalorder %v1139_v33, 1  ;;  %v6050_v56 = vld [vmem:[#allocation8 + $0x78] ss:$20 sps:$4 sm:$0xff]  }
 0x151   : > { %v1018_v18 = vsel %vm1007_vm4, %v5301_v61, %v5295_v34  ;;  %v1016_v27 = vsel %vm1007_vm4, %v5300_v53, %v5290_v37  ;;  %v5314_v58 = vpop.permute.xlu1 %5313  ;;  %v1903_v34 = vld [vmem:[%s8502_s2 + $0x18] sm:$0xff]  ;;  %vm7154_vm15 = vmpackc.low %vm7127_vm12, %vm7127_vm12  ;;  %vm7160_vm0 = vcmp.eq.s32.totalorder %v1135_v41, 1  ;;  %vm1564_vm12 = vcmask 916480  }
 0x152   : > { %v5316_v59 = vunpack.i.h.bf16 %v5314_v58  ;;  %v5315_v3 = vunpack.i.l.bf16 %v5314_v58  ;;  %v5309_v25 = vpop.permute.xlu0 %5308  ;;  %v4594_v5 = vpack.c.bf16 %v1018_v18, %v1016_v27  ;;  %1925 = vperm.xlu0 %5557, %v1903_v34   ;;  %vm7184_vm2 = vmpackc.low %vm7160_vm0, %vm7160_vm0 }
 0x153   : > { %v5311_v7 = vunpack.i.h.bf16 %v5309_v25  ;;  %v5310_v8 = vunpack.i.l.bf16 %v5309_v25 }
 0x154   : > { %v1020_v30 = vsel %vm1007_vm4, %v5315_v3, %v5305_v2  ;;  %4595 = vmatpush1.bf16.msk.msra.mxu0 %vm7042_vm9, %v4594_v5  ;;  %v4441_v5 = vld [vmem:[%s8505_s5 + $0x7] ss:$8 sm:$0x3] }
 0x155   : > { %v1022_v45 = vsel %vm1007_vm4, %v5316_v59, %v5310_v8  ;;  %v1023_v12 = vsel %vm1007_vm4, %v5310_v8, %v5311_v7  ;;  %v7068_v46 = vpop.permute.xlu1 %5323  ;;  %vm1480_vm10 = vcmp.gt.f32.partialorder %v4441_v5, 0.5 }
 0x156   : > { %v7070_v13 = vpop.permute.xlu0 %5318  ;;  %v4597_v14 = vpack.c.bf16 %v1023_v12, %v1021_v9  ;;  %v4600_v19 = vpack.c.bf16 %v1022_v45, %v1020_v30  ;;  %v5326_v31 = vunpack.i.h.bf16 %v7068_v46  ;;  %v5325_v32 = vunpack.i.l.bf16 %v7068_v46  ;;  %1935 = vperm.xlu0 %5557, %v1905_v20   ;;  %v1906_v9 = vld [vmem:[%s8502_s2 + $0x30] sm:$0xff]  ;;  %v2346_v45 = vld [vmem:[#allocation2] sm:$0xff] }
 0x157   : > { %v5321_v24 = vunpack.i.h.bf16 %v7070_v13  ;;  %v5320_v26 = vunpack.i.l.bf16 %v7070_v13  ;;  %v2349_v12 = vld [vmem:[#allocation2 + $0x20] sm:$0xff]  ;;  %v7169_v13 = vsel %vm1305_vm14, 1, %v6280_v11  ;;  %1940 = vperm.xlu1 %5558, %v1906_v9  }
 0x158   : > { %4598 = vmatprep.subr.msk.bf16.mxu0 %vm7034_vm6, %v4597_v14  ;;  %v1218_v50 = vsel %vm1214_vm11, %v5325_v32, %v5326_v31  ;;  %v6047_v14 = vld [vmem:[#allocation8 + $0x50] ss:$20 sps:$4 sm:$0xff]  }
 0x159   : > { %v7079_v6 = vpop.permute.xlu1 %5333  ;;  %4601 = vmatpush1.bf16.msk.msra.mxu0 %vm7042_vm9, %v4600_v19  ;;  %v1216_v44 = vsel %vm1214_vm11, %v5320_v26, %v5321_v24  ;;  %v1907_v19 = vld [vmem:[%s8502_s2 + $0x38] sm:$0xff]  ;;  %v1314_v24 = vrot.slane %v7169_v13, %v6730_v60 }
 0x15a   : > { %v5329_v55 = vpop.permute.xlu0 %5328  ;;  %2134 = vmatprep.subr.bf16.mxu0 %v1089_v51  ;;  %v5336_v16 = vunpack.i.h.bf16 %v7079_v6  ;;  %v5335_v57 = vunpack.i.l.bf16 %v7079_v6  ;;  %v4603_v46 = vpack.c.bf16 %v1218_v50, %v1216_v44  ;;  %1945 = vperm.xlu0 %5557, %v1907_v19   ;;  %v6053_v50 = vld [vmem:[#allocation8 + $0xc] ss:$20 sps:$4 sm:$0xff]  }
 0x15b   : > { %v5331_v35 = vunpack.i.h.bf16 %v5329_v55  ;;  %v5330_v37 = vunpack.i.l.bf16 %v5329_v55  ;;  %vm7211_vm5 = vcmp.eq.s32.totalorder %v1314_v24, 1  ;;  %v1481_v24 = vsel %vm1480_vm10, 1, %v6280_v11 }
 0x15c   : > { %2094 = vmatmul.mubr.bf16.vlgmr.msra.gmra.mrb[0].mxu0 %v6039_v22  ;;  %v1220_v51 = vsel %vm1214_vm11, %v5335_v57, %v5336_v16  ;;  %vm7230_vm8 = vmpackc.low %vm7211_vm5, %vm7211_vm5 }
 0x15d   : > { %v7094_v28 = vpop.permute.xlu1 %5343  ;;  %2135 = vmatpush1.bf16.msra.mxu0 %v1088_v23  ;;  %2103 = vmatprep.mubr.bf16.mxu0 %v6042_v47  ;;  %v1217_v61 = vsel %vm1214_vm11, %v5331_v35, %v5325_v32  ;;  %v1215_v27 = vsel %vm1214_vm11, %v5330_v37, %v5320_v26  ;;  %v6048_v47 = vld [vmem:[#allocation8 + $0x7c] ss:$20 sps:$4 sm:$0xff]  }
 0x15e   : > { %v7098_v63 = vpop.permute.xlu0 %5338  ;;  %2136 = vmatprep.subr.bf16.mxu0 %v1091_v1  ;;  %v5345_v53 = vunpack.i.l.bf16 %v7094_v28  ;;  %v5346_v58 = vunpack.i.h.bf16 %v7094_v28  ;;  %v4606_v43 = vpack.c.bf16 %v1217_v61, %v1215_v27  ;;  %v7188_v28 = vpack.i.bf16 %v2349_v12, %v2346_v45 }
 0x15f   : > { %v5341_v0 = vunpack.i.h.bf16 %v7098_v63  ;;  %v5340_v2 = vunpack.i.l.bf16 %v7098_v63 }
 0x160   : > { %v1219_v22 = vsel %vm1214_vm11, %v5345_v53, %v5335_v57  ;;  %5560 = vrot.lane.b32.xlu1 %v7188_v28, %s6281_s30  ;;  %v1310_v57 = vrot.slane %v7169_v13, %v6735_v62 }
 0x161   : > { %v7116_v21 = vpop.permute.xlu1 %5353  ;;  %2137 = vmatpush1.bf16.msra.mxu0 %v1090_v42  ;;  %v1222_v6 = vsel %vm1214_vm11, %v5340_v2, %v5341_v0  ;;  %v1221_v55 = vsel %vm1214_vm11, %v5346_v58, %v5340_v2 }
 0x162   : > { %v7120_v38 = vpop.permute.xlu0 %5348  ;;  %2138 = vmatprep.subr.bf16.mxu0 %v1093_v15  ;;  %v5356_v59 = vunpack.i.h.bf16 %v7116_v21  ;;  %v5355_v3 = vunpack.i.l.bf16 %v7116_v21  ;;  %v4609_v29 = vpack.c.bf16 %v1222_v6, %v1220_v51  ;;  %v4612_v31 = vpack.c.bf16 %v1221_v55, %v1219_v22 }
 0x163   : > { %v5351_v7 = vunpack.i.h.bf16 %v7120_v38  ;;  %v5350_v8 = vunpack.i.l.bf16 %v7120_v38  ;;  %vm7223_vm6 = vcmp.eq.s32.totalorder %v1310_v57, 1 }
 0x164   : > { %2104 = vmatmul.mubr.bf16.gmra.mrb[4].mxu0 %v6044_v54  ;;  %v1226_v1 = vsel %vm1214_vm11, %v5355_v3, %v5356_v59  ;;  %vm7247_vm9 = vmpackc.low %vm7223_vm6, %vm7223_vm6  ;;  %vm1739_vm6 = vcmask 908288  }
 0x165   : > { %v7145_v18 = vpop.permute.xlu1 %5363  ;;  %2139 = vmatpush1.bf16.msra.mxu0 %v1092_v49  ;;  %2113 = vmatprep.mubr.bf16.mxu0 %v6045_v36  ;;  %v1224_v42 = vsel %vm1214_vm11, %v5350_v8, %v5351_v7 }
 0x166   : > { %v5359_v25 = vpop.permute.xlu0 %5358  ;;  %2140 = vmatprep.subr.bf16.mxu0 %v1095_v39  ;;  %v5366_v26 = vunpack.i.h.bf16 %v7145_v18  ;;  %v5365_v52 = vunpack.i.l.bf16 %v7145_v18  ;;  %v4615_v35 = vpack.c.bf16 %v1226_v1, %v1224_v42 }
 0x167   : > { %v5361_v4 = vunpack.i.h.bf16 %v5359_v25  ;;  %v5360_v63 = vunpack.i.l.bf16 %v5359_v25 }
 0x168   : > { %v1228_v44 = vsel %vm1214_vm11, %v5365_v52, %v5366_v26 }
 0x169   : > { %v5374_v23 = vpop.permute.xlu1 %5373  ;;  %2141 = vmatpush1.bf16.msra.mxu0 %v1094_v40  ;;  %v1225_v54 = vsel %vm1214_vm11, %v5361_v4, %v5355_v3  ;;  %v1223_v21 = vsel %vm1214_vm11, %v5360_v63, %v5350_v8 }
 0x16a   : > { %v5369_v48 = vpop.permute.xlu0 %5368  ;;  %4604 = vmatprep.subr.msk.bf16.mxu0 %vm7154_vm15, %v4603_v46  ;;  %v5376_v49 = vunpack.i.h.bf16 %v5374_v23  ;;  %v5375_v36 = vunpack.i.l.bf16 %v5374_v23  ;;  %v4618_v61 = vpack.c.bf16 %v1225_v54, %v1223_v21  ;;  %v1489_v21 = vrot.slane %v1481_v24, %v6730_v60 }
 0x16b   : > { %v5371_v15 = vunpack.i.h.bf16 %v5369_v48  ;;  %v5370_v33 = vunpack.i.l.bf16 %v5369_v48 }
 0x16c   : > { %2114 = vmatmul.mubr.bf16.gmra.mrb[8].mxu0 %v6047_v14  ;;  %v1227_v53 = vsel %vm1214_vm11, %v5375_v36, %v5365_v52  ;;  %vm7269_vm14 = vcmp.eq.s32.totalorder %v1489_v21, 1 }
 0x16d   : > { %v5384_v32 = vpop.permute.xlu1 %5383  ;;  %4607 = vmatpush1.bf16.msk.msra.mxu0 %vm7184_vm2, %v4606_v43  ;;  %2123 = vmatprep.mubr.bf16.mxu0 %v6048_v47  ;;  %v1230_v37 = vsel %vm1214_vm11, %v5370_v33, %v5371_v15  ;;  %v1229_v0 = vsel %vm1214_vm11, %v5376_v49, %v5370_v33 }
 0x16e   : > { %v5379_v34 = vpop.permute.xlu0 %5378  ;;  %4610 = vmatprep.subr.msk.bf16.mxu0 %vm7154_vm15, %v4609_v29  ;;  %v5386_v38 = vunpack.i.h.bf16 %v5384_v32  ;;  %v5385_v39 = vunpack.i.l.bf16 %v5384_v32  ;;  %v4621_v2 = vpack.c.bf16 %v1230_v37, %v1228_v44  ;;  %v4624_v25 = vpack.c.bf16 %v1229_v0, %v1227_v53 }
 0x16f   : > { %v5381_v40 = vunpack.i.h.bf16 %v5379_v34  ;;  %v5380_v41 = vunpack.i.l.bf16 %v5379_v34 }
 0x170   : > { %v1393_v18 = vsel %vm1389_vm3, %v5385_v39, %v5386_v38 }
 0x171   : > { %v5394_v10 = vpop.permute.xlu1 %5393  ;;  %4613 = vmatpush1.bf16.msk.msra.mxu0 %vm7184_vm2, %v4612_v31  ;;  %v1391_v27 = vsel %vm1389_vm3, %v5380_v41, %v5381_v40 }
 0x172   : > { %v5389_v16 = vpop.permute.xlu0 %5388  ;;  %4616 = vmatprep.subr.msk.bf16.mxu0 %vm7154_vm15, %v4615_v35  ;;  %v5396_v7 = vunpack.i.h.bf16 %v5394_v10  ;;  %v5395_v9 = vunpack.i.l.bf16 %v5394_v10  ;;  %v4627_v13 = vpack.c.bf16 %v1393_v18, %v1391_v27 }
 0x173   : > { %v5391_v58 = vunpack.i.h.bf16 %v5389_v16  ;;  %v5390_v59 = vunpack.i.l.bf16 %v5389_v16 }
 0x174   : > { %2124 = vmatmul.mubr.bf16.gmra.mrb[12].mxu0 %v6050_v56  ;;  %v1395_v4 = vsel %vm1389_vm3, %v5395_v9, %v5396_v7 }
 0x175   : > { %v5404_v3 = vpop.permute.xlu1 %5403  ;;  %4619 = vmatpush1.bf16.msk.msra.mxu0 %vm7184_vm2, %v4618_v61  ;;  %2166 = vmatprep.mubr.bf16.mxu0 %v6053_v50  ;;  %v1392_v14 = vsel %vm1389_vm3, %v5391_v58, %v5385_v39  ;;  %v1390_v19 = vsel %vm1389_vm3, %v5390_v59, %v5380_v41 }
 0x176   : > { %v5399_v8 = vpop.permute.xlu0 %5398  ;;  %4622 = vmatprep.subr.msk.bf16.mxu0 %vm7154_vm15, %v4621_v2  ;;  %v5406_v51 = vunpack.i.h.bf16 %v5404_v3  ;;  %v5405_v43 = vunpack.i.l.bf16 %v5404_v3  ;;  %v4630_v48 = vpack.c.bf16 %v1392_v14, %v1390_v19  ;;  %v1485_v2 = vrot.slane %v1481_v24, %v6735_v62  ;;  %vm7288_vm15 = vmpackc.low %vm7269_vm14, %vm7269_vm14 }
 0x177   : > { %v5401_v45 = vunpack.i.h.bf16 %v5399_v8  ;;  %v5400_v12 = vunpack.i.l.bf16 %v5399_v8 }
 0x178   : > { %v1394_v63 = vsel %vm1389_vm3, %v5405_v43, %v5395_v9  ;;  %vm1490_vm0 = vcmp.eq.s32.totalorder %v1485_v2, 1 }
 0x179   : > { %v1397_v22 = vsel %vm1389_vm3, %v5400_v12, %v5401_v45  ;;  %v5414_v6 = vpop.permute.xlu1 %5413  ;;  %4625 = vmatpush1.bf16.msk.msra.mxu0 %vm7184_vm2, %v4624_v25  ;;  %v1396_v15 = vsel %vm1389_vm3, %v5406_v51, %v5400_v12  ;;  %vm7296_vm2 = vmpackc.low %vm1490_vm0, %vm1490_vm0 }
 0x17a   : > { %v5416_v23 = vunpack.i.h.bf16 %v5414_v6  ;;  %v5415_v47 = vunpack.i.l.bf16 %v5414_v6  ;;  %v5409_v55 = vpop.permute.xlu0 %5408  ;;  %4628 = vmatprep.subr.msk.bf16.mxu0 %vm7230_vm8, %v4627_v13  ;;  %v4633_v33 = vpack.c.bf16 %v1397_v22, %v1395_v4  ;;  %v4636_v52 = vpack.c.bf16 %v1396_v15, %v1394_v63  ;;  %v4442_v4 = vld [vmem:[%s8505_s5 + $0x10] ss:$8 sm:$0x3] }
 0x17b   : > { %v5411_v42 = vunpack.i.h.bf16 %v5409_v55  ;;  %v5410_v17 = vunpack.i.l.bf16 %v5409_v55  ;;  %vm1655_vm5 = vcmp.gt.f32.partialorder %v4442_v4, 0.5 }
 0x17c   : > { %v1401_v29 = vsel %vm1389_vm3, %v5415_v47, %v5416_v23 }
 0x17d   : > { %v1399_v31 = vsel %vm1389_vm3, %v5410_v17, %v5411_v42  ;;  %v5424_v32 = vpop.permute.xlu1 %5423  ;;  %4631 = vmatpush1.bf16.msk.msra.mxu0 %vm7247_vm9, %v4630_v48 }
 0x17e   : > { %v5419_v26 = vpop.permute.xlu0 %5418  ;;  %4634 = vmatprep.subr.msk.bf16.mxu0 %vm7230_vm8, %v4633_v33  ;;  %v4639_v35 = vpack.c.bf16 %v1401_v29, %v1399_v31  ;;  %v5426_v49 = vunpack.i.h.bf16 %v5424_v32  ;;  %v5425_v36 = vunpack.i.l.bf16 %v5424_v32 }
 0x17f   : > { %v5421_v54 = vunpack.i.h.bf16 %v5419_v26  ;;  %v5420_v34 = vunpack.i.l.bf16 %v5419_v26 }
 0x180   : > { %v1403_v20 = vsel %vm1389_vm3, %v5425_v36, %v5426_v49 }
 0x181   : > { %v1400_v37 = vsel %vm1389_vm3, %v5421_v54, %v5415_v47  ;;  %v1398_v38 = vsel %vm1389_vm3, %v5420_v34, %v5410_v17  ;;  %v5434_v39 = vpop.permute.xlu1 %5433  ;;  %4637 = vmatpush1.bf16.msk.msra.mxu0 %vm7247_vm9, %v4636_v52 }
 0x182   : > { %v4642_v40 = vpack.c.bf16 %v1400_v37, %v1398_v38  ;;  %v5436_v41 = vunpack.i.h.bf16 %v5434_v39  ;;  %v5435_v56 = vunpack.i.l.bf16 %v5434_v39  ;;  %v5429_v10 = vpop.permute.xlu0 %5428  ;;  %4640 = vmatprep.subr.msk.bf16.mxu0 %vm7230_vm8, %v4639_v35 }
 0x183   : > { %v5431_v50 = vunpack.i.h.bf16 %v5429_v10  ;;  %v5430_v44 = vunpack.i.l.bf16 %v5429_v10 }
 0x184   : > { %v1402_v16 = vsel %vm1389_vm3, %v5435_v56, %v5425_v36  ;;  %v1656_v36 = vsel %vm1655_vm5, 1, %v6280_v11 }
 0x185   : > { %v1404_v61 = vsel %vm1389_vm3, %v5436_v41, %v5430_v44  ;;  %v1405_v53 = vsel %vm1389_vm3, %v5430_v44, %v5431_v50  ;;  %v5444_v0 = vpop.permute.xlu1 %5443  ;;  %4643 = vmatpush1.bf16.msk.msra.mxu0 %vm7247_vm9, %v4642_v40  ;;  %v1664_v41 = vrot.slane %v1656_v36, %v6730_v60 }
 0x186   : > { %v4648_v18 = vpack.c.bf16 %v1404_v61, %v1402_v16  ;;  %v5446_v27 = vunpack.i.h.bf16 %v5444_v0  ;;  %v5445_v58 = vunpack.i.l.bf16 %v5444_v0  ;;  %v5439_v59 = vpop.permute.xlu0 %5438  ;;  %v4645_v3 = vpack.c.bf16 %v1405_v53, %v1403_v20 }
 0x187   : > { %v5441_v25 = vunpack.i.h.bf16 %v5439_v59  ;;  %v5440_v7 = vunpack.i.l.bf16 %v5439_v59 }
 0x188   : > { %v1568_v8 = vsel %vm1564_vm12, %v5445_v58, %v5446_v27  ;;  %4646 = vmatprep.subr.msk.bf16.mxu0 %vm7230_vm8, %v4645_v3  ;;  %v1660_v27 = vrot.slane %v1656_v36, %v6735_v62  ;;  %vm1666_vm8 = vcmp.eq.s32.totalorder %v1664_v41, 1 }
 0x189   : > { %v1566_v30 = vsel %vm1564_vm12, %v5440_v7, %v5441_v25  ;;  %v5454_v9 = vpop.permute.xlu1 %5453  ;;  %4649 = vmatpush1.bf16.msk.msra.mxu0 %vm7247_vm9, %v4648_v18  ;;  %vm7334_vm9 = vmpackc.low %vm1666_vm8, %vm1666_vm8 }
 0x18a   : > { %v5449_v12 = vpop.permute.xlu0 %5448  ;;  %v4651_v13 = vpack.c.bf16 %v1568_v8, %v1566_v30  ;;  %v5456_v46 = vunpack.i.h.bf16 %v5454_v9  ;;  %v5455_v19 = vunpack.i.l.bf16 %v5454_v9  ;;  %vm1665_vm10 = vcmp.eq.s32.totalorder %v1660_v27, 1 }
 0x18b   : > { %v5451_v5 = vunpack.i.h.bf16 %v5449_v12  ;;  %v5450_v14 = vunpack.i.l.bf16 %v5449_v12  ;;  %vm7342_vm14 = vmpackc.low %vm1665_vm10, %vm1665_vm10 }
 0x18c   : > { %4652 = vmatprep.subr.msk.bf16.mxu0 %vm7288_vm15, %v4651_v13  ;;  %v1570_v63 = vsel %vm1564_vm12, %v5455_v19, %v5456_v46  ;;  %v6051_v46 = vld [vmem:[#allocation8 + $0x8] ss:$20 sps:$4 sm:$0xff]  }
 0x18d   : > { %v1567_v51 = vsel %vm1564_vm12, %v5451_v5, %v5445_v58  ;;  %v1565_v43 = vsel %vm1564_vm12, %v5450_v14, %v5440_v7  ;;  %v5464_v22 = vpop.permute.xlu1 %5463 }
 0x18e   : > { %v4654_v23 = vpack.c.bf16 %v1567_v51, %v1565_v43  ;;  %v5466_v47 = vunpack.i.h.bf16 %v5464_v22  ;;  %v5465_v55 = vunpack.i.l.bf16 %v5464_v22  ;;  %v5459_v1 = vpop.permute.xlu0 %5458  ;;  %v6054_v22 = vld [vmem:[#allocation8 + $0x34] ss:$20 sps:$4 sm:$0xff]  }
 0x18f   : > { %v5461_v48 = vunpack.i.h.bf16 %v5459_v1  ;;  %v5460_v42 = vunpack.i.l.bf16 %v5459_v1  ;;  %v6065_v43 = vld [vmem:[#allocation8 + $0x60] ss:$20 sps:$4 sm:$0xff]  }
 0x190   : > { %v1569_v17 = vsel %vm1564_vm12, %v5465_v55, %v5455_v19  ;;  %4655 = vmatpush1.bf16.msk.msra.mxu0 %vm7296_vm2, %v4654_v23 }
 0x191   : > { %v1571_v15 = vsel %vm1564_vm12, %v5466_v47, %v5460_v42  ;;  %v1572_v33 = vsel %vm1564_vm12, %v5460_v42, %v5461_v48  ;;  %v5474_v29 = vpop.permute.xlu1 %5473 }
 0x192   : > { %v4660_v31 = vpack.c.bf16 %v1571_v15, %v1569_v17  ;;  %v5476_v32 = vunpack.i.h.bf16 %v5474_v29  ;;  %v5475_v24 = vunpack.i.l.bf16 %v5474_v29  ;;  %v5469_v26 = vpop.permute.xlu0 %5468  ;;  %v4657_v52 = vpack.c.bf16 %v1572_v33, %v1570_v63 }
 0x193   : > { %v5471_v54 = vunpack.i.h.bf16 %v5469_v26  ;;  %v5470_v34 = vunpack.i.l.bf16 %v5469_v26 }
 0x194   : > { %v1576_v35 = vsel %vm1564_vm12, %v5475_v24, %v5476_v32  ;;  %4658 = vmatprep.subr.msk.bf16.mxu0 %vm7288_vm15, %v4657_v52  ;;  %v6056_v52 = vld [vmem:[#allocation8 + $0x30] ss:$20 sps:$4 sm:$0xff]  }
 0x195   : > { %v1574_v21 = vsel %vm1564_vm12, %v5470_v34, %v5471_v54  ;;  %v5484_v49 = vpop.permute.xlu1 %5483  ;;  %4661 = vmatpush1.bf16.msk.msra.mxu0 %vm7296_vm2, %v4660_v31 }
 0x196   : > { %v5479_v37 = vpop.permute.xlu0 %5478  ;;  %v4663_v38 = vpack.c.bf16 %v1576_v35, %v1574_v21  ;;  %v5486_v56 = vunpack.i.h.bf16 %v5484_v49  ;;  %v5485_v10 = vunpack.i.l.bf16 %v5484_v49  ;;  %v6057_v21 = vld [vmem:[#allocation8 + $0x5c] ss:$20 sps:$4 sm:$0xff]  }
 0x197   : > { %v5481_v39 = vunpack.i.h.bf16 %v5479_v37  ;;  %v5480_v40 = vunpack.i.l.bf16 %v5479_v37 }
 0x198   : > { %4664 = vmatprep.subr.msk.bf16.mxu0 %vm7288_vm15, %v4663_v38  ;;  %v1578_v58 = vsel %vm1564_vm12, %v5485_v10, %v5486_v56 }
 0x199   : > { %v1575_v50 = vsel %vm1564_vm12, %v5481_v39, %v5475_v24  ;;  %v1573_v44 = vsel %vm1564_vm12, %v5480_v40, %v5470_v34  ;;  %v5494_v16 = vpop.permute.xlu1 %5493 }
 0x19a   : > { %v4666_v57 = vpack.c.bf16 %v1575_v50, %v1573_v44  ;;  %v5496_v20 = vunpack.i.h.bf16 %v5494_v16  ;;  %v5495_v61 = vunpack.i.l.bf16 %v5494_v16  ;;  %v5489_v53 = vpop.permute.xlu0 %5488 }
 0x19b   : > { %v5491_v0 = vunpack.i.h.bf16 %v5489_v53  ;;  %v5490_v2 = vunpack.i.l.bf16 %v5489_v53 }
 0x19c   : > { %v1577_v18 = vsel %vm1564_vm12, %v5495_v61, %v5485_v10  ;;  %4667 = vmatpush1.bf16.msk.msra.mxu0 %vm7296_vm2, %v4666_v57 }
 0x19d   : > { %v1579_v59 = vsel %vm1564_vm12, %v5496_v20, %v5490_v2  ;;  %v1580_v3 = vsel %vm1564_vm12, %v5490_v2, %v5491_v0  ;;  %v5504_v25 = vpop.permute.xlu1 %5503  ;;  %v6059_v0 = vld [vmem:[#allocation8 + $0x58] ss:$20 sps:$4 sm:$0xff]  }
 0x19e   : > { %v4672_v7 = vpack.c.bf16 %v1579_v59, %v1577_v18  ;;  %v5506_v8 = vunpack.i.h.bf16 %v5504_v25  ;;  %v5505_v30 = vunpack.i.l.bf16 %v5504_v25  ;;  %v5499_v9 = vpop.permute.xlu0 %5498  ;;  %v4669_v12 = vpack.c.bf16 %v1580_v3, %v1578_v58  ;;  %v6060_v58 = vld [vmem:[#allocation8 + $0x84] ss:$20 sps:$4 sm:$0xff]  }
 0x19f   : > { %v5501_v13 = vunpack.i.h.bf16 %v5499_v9  ;;  %v5500_v5 = vunpack.i.l.bf16 %v5499_v9 }
 0x1a0   : > { %v1743_v14 = vsel %vm1739_vm6, %v5505_v30, %v5506_v8  ;;  %4670 = vmatprep.subr.msk.bf16.mxu0 %vm7288_vm15, %v4669_v12  ;;  %vm2048_vm15 = vcmask 523264  }
 0x1a1   : > { %v1741_v19 = vsel %vm1739_vm6, %v5500_v5, %v5501_v13  ;;  %4673 = vmatpush1.bf16.msk.msra.mxu0 %vm7296_vm2, %v4672_v7  ;;  %v5514_v51 = vpop.permute.xlu1 %5513 }
 0x1a2   : > { %v5509_v23 = vpop.permute.xlu0 %5508  ;;  %v4675_v47 = vpack.c.bf16 %v1743_v14, %v1741_v19  ;;  %v5516_v55 = vunpack.i.h.bf16 %v5514_v51  ;;  %v5515_v1 = vunpack.i.l.bf16 %v5514_v51  ;;  %v6062_v19 = vld [vmem:[#allocation8 + $0x80] ss:$20 sps:$4 sm:$0xff]   ;;  %v6063_v51 = vld [vmem:[#allocation8 + $0x10] ss:$20 sps:$4 sm:$0xff]  }
 0x1a3   : > { %v5511_v4 = vunpack.i.h.bf16 %v5509_v23  ;;  %v5510_v45 = vunpack.i.l.bf16 %v5509_v23  ;;  %v6066_v23 = vld [vmem:[#allocation8 + $0x88] ss:$20 sps:$4 sm:$0xff]  }
 0x1a4   : > { %2167 = vmatmul.mubr.bf16.vlgmr.msra.gmra.mrb[0].mxu0 %v6051_v46  ;;  %4676 = vmatprep.subr.msk.bf16.mxu0 %vm7334_vm9, %v4675_v47  ;;  %v1745_v31 = vsel %vm1739_vm6, %v5515_v1, %v5516_v55  ;;  %v2358_v47 = vld [vmem:[#allocation2 + $0x80] sm:$0xff] }
 0x1a5   : > { %v1742_v6 = vsel %vm1739_vm6, %v5511_v4, %v5505_v30  ;;  %v1740_v48 = vsel %vm1739_vm6, %v5510_v45, %v5500_v5  ;;  %v5524_v42 = vpop.permute.xlu1 %5523  ;;  %2176 = vmatprep.mubr.bf16.mxu0 %v6054_v22  ;;  %v6064_v22 = vld [vmem:[#allocation8 + $0x38] ss:$20 sps:$4 sm:$0xff]   ;;  %v2361_v55 = vld [vmem:[#allocation2 + $0xa0] sm:$0xff] }
 0x1a6   : > { %v4678_v63 = vpack.c.bf16 %v1742_v6, %v1740_v48  ;;  %v5526_v15 = vunpack.i.h.bf16 %v5524_v42  ;;  %v5525_v33 = vunpack.i.l.bf16 %v5524_v42  ;;  %v5519_v29 = vpop.permute.xlu0 %5518  ;;  %v2352_v4 = vld [vmem:[#allocation2 + $0x40] sm:$0xff] }
 0x1a7   : > { %v5521_v32 = vunpack.i.h.bf16 %v5519_v29  ;;  %v5520_v24 = vunpack.i.l.bf16 %v5519_v29  ;;  %v2355_v45 = vld [vmem:[#allocation2 + $0x60] sm:$0xff] }
 0x1a8   : > { %v1744_v26 = vsel %vm1739_vm6, %v5525_v33, %v5515_v1  ;;  %4679 = vmatpush1.bf16.msk.msra.mxu0 %vm7342_vm14, %v4678_v63  ;;  %v7380_v1 = vpack.i.bf16 %v2361_v55, %v2358_v47  ;;  %v7384_v6 = vpack.i.bf16 %v2355_v45, %v2352_v4  ;;  %v2364_v48 = vld [vmem:[#allocation2 + $0xc0] sm:$0xff]  ;;  %v7402_v33 = vstv %s2280_s17  ;;  %s8406_s17 = scalar_lea.vmem [#allocation12], %s8630_s19 }
 0x1a9   : > { %v1746_v54 = vsel %vm1739_vm6, %v5526_v15, %v5520_v24  ;;  %v1747_v34 = vsel %vm1739_vm6, %v5520_v24, %v5521_v32  ;;  %v5534_v35 = vpop.permute.xlu1 %5533  ;;  %v2367_v42 = vld [vmem:[#allocation2 + $0xe0] sm:$0xff] }
 0x1aa   : > { %v4684_v49 = vpack.c.bf16 %v1746_v54, %v1744_v26  ;;  %v5529_v36 = vpop.permute.xlu0 %5528  ;;  %v4681_v37 = vpack.c.bf16 %v1747_v34, %v1745_v31  ;;  %v5536_v38 = vunpack.i.h.bf16 %v5534_v35  ;;  %v5535_v39 = vunpack.i.l.bf16 %v5534_v35  ;;  %5570 = vrot.lane.b32.xlu1 %v7380_v1, %s6281_s30  ;;  %5565 = vrot.lane.b32.xlu0 %v7384_v6, %s6281_s30 }
 0x1ab   : > { %v5531_v40 = vunpack.i.h.bf16 %v5529_v36  ;;  %v5530_v41 = vunpack.i.l.bf16 %v5529_v36  ;;  %v7390_v17 = vpack.i.bf16 %v2367_v42, %v2364_v48 }
 0x1ac   : > { %2177 = vmatmul.mubr.bf16.gmra.mrb[4].mxu0 %v6056_v52  ;;  %4682 = vmatprep.subr.msk.bf16.mxu0 %vm7334_vm9, %v4681_v37  ;;  %v1751_v56 = vsel %vm1739_vm6, %v5535_v39, %v5536_v38 }
 0x1ad   : > { %v1749_v10 = vsel %vm1739_vm6, %v5530_v41, %v5531_v40  ;;  %4685 = vmatpush1.bf16.msk.msra.mxu0 %vm7342_vm14, %v4684_v49  ;;  %v5544_v50 = vpop.permute.xlu1 %5543  ;;  %2186 = vmatprep.mubr.bf16.mxu0 %v6057_v21 }
 0x1ae   : > { %v5539_v44 = vpop.permute.xlu0 %5538  ;;  %v4687_v16 = vpack.c.bf16 %v1751_v56, %v1749_v10  ;;  %v5546_v61 = vunpack.i.h.bf16 %v5544_v50  ;;  %v5545_v53 = vunpack.i.l.bf16 %v5544_v50  ;;  %5580 = vrot.lane.b32.xlu1 %v7188_v28, %s6282_s9  ;;  %5575 = vrot.lane.b32.xlu0 %v7390_v17, %s6281_s30 }
 0x1af   : > { %v5541_v57 = vunpack.i.h.bf16 %v5539_v44  ;;  %v5540_v20 = vunpack.i.l.bf16 %v5539_v44 }
 0x1b0   : > { %4688 = vmatprep.subr.msk.bf16.mxu0 %vm7334_vm9, %v4687_v16  ;;  %v1753_v8 = vsel %vm1739_vm6, %v5545_v53, %v5546_v61 }
 0x1b1   : > { %v1750_v2 = vsel %vm1739_vm6, %v5541_v57, %v5535_v39  ;;  %v1748_v18 = vsel %vm1739_vm6, %v5540_v20, %v5530_v41  ;;  %v5554_v27 = vpop.permute.xlu1 %5553 }
 0x1b2   : > { %v4690_v59 = vpack.c.bf16 %v1750_v2, %v1748_v18  ;;  %v5549_v3 = vpop.permute.xlu0 %5548  ;;  %v5556_v25 = vunpack.i.h.bf16 %v5554_v27  ;;  %v5555_v7 = vunpack.i.l.bf16 %v5554_v27  ;;  %5590 = vrot.lane.b32.xlu1 %v7380_v1, %s6282_s9  ;;  %5585 = vrot.lane.b32.xlu0 %v7384_v6, %s6282_s9 }
 0x1b3   : > { %v5551_v30 = vunpack.i.h.bf16 %v5549_v3  ;;  %v5550_v9 = vunpack.i.l.bf16 %v5549_v3 }
 0x1b4   : > { %2187 = vmatmul.mubr.bf16.gmra.mrb[8].mxu0 %v6059_v0  ;;  %v1752_v12 = vsel %vm1739_vm6, %v5555_v7, %v5545_v53 }
 0x1b5   : > { %4691 = vmatpush1.bf16.msk.msra.mxu0 %vm7342_vm14, %v4690_v59  ;;  %v1755_v13 = vsel %vm1739_vm6, %v5550_v9, %v5551_v30  ;;  %v1754_v5 = vsel %vm1739_vm6, %v5556_v25, %v5550_v9  ;;  %2196 = vmatprep.mubr.bf16.mxu0 %v6060_v58 }
 0x1b6   : > { %v4696_v14 = vpack.c.bf16 %v1754_v5, %v1752_v12  ;;  %v4693_v46 = vpack.c.bf16 %v1755_v13, %v1753_v8  ;;  %5600 = vrot.lane.b32.xlu1 %v7188_v28, %s6283_s13  ;;  %5595 = vrot.lane.b32.xlu0 %v7390_v17, %s6282_s9 }
 0x1b8   : > { %4694 = vmatprep.subr.msk.bf16.mxu0 %vm7334_vm9, %v4693_v46 }
 0x1b9   : > { %4697 = vmatpush1.bf16.msk.msra.mxu0 %vm7342_vm14, %v4696_v14 }
 0x1bc   : > { %2197 = vmatmul.mubr.bf16.gmra.mrb[12].mxu0 %v6062_v19 }
 0x1bd   : > { %2239 = vmatprep.mubr.bf16.mxu0 %v6280_v11 }
 0x1c2   : > { %v1916_v32 = vpop.permute.xlu1 %1915 }
 0x1c3   : > { %v1911_v63 = vpop.permute.xlu0 %1910 }
 0x1c4   : > { %4463 = vmatmul.mubr.msk.bf16.vlgmr.msra.gmra.mrb[0].mxu0 %vm2048_vm15, %v6063_v51 }
 0x1c5   : > { %2249 = vmatprep.mubr.bf16.mxu0 %v6280_v11 }
 0x1ca   : > { %v1921_v41 = vpop.permute.xlu1 %1920 }
 0x1cc   : > { %4464 = vmatmul.mubr.msk.bf16.gmra.mrb[4].mxu0 %vm2048_vm15, %v6064_v22 }
 0x1cd   : > { %2259 = vmatprep.mubr.bf16.mxu0 %v6280_v11 }
 0x1ce   : > { %v1931_v9 = vpop.permute.xlu1 %1930 }
 0x1d1   : > { %v1926_v20 = vpop.permute.xlu0 %1925 }
 0x1d4   : > { %4465 = vmatmul.mubr.msk.bf16.gmra.mrb[8].mxu0 %vm2048_vm15, %v6065_v43 }
 0x1d5   : > { %2269 = vmatprep.mubr.bf16.mxu0 %v6280_v11  ;;  %v1936_v51 = vpop.permute.xlu0 %1935 }
 0x1dc   : > { %4466 = vmatmul.mubr.msk.bf16.gmra.mrb[12].mxu0 %vm2048_vm15, %v6066_v23 }
 0x297   : > { %v2241_v15 = vpop.f32.mrb[0].mxu0 }
 0x298   : > { %v4890_v29 = vadd.f32 %v2241_v15, %v1911_v63  ;;  %v2243_v31 = vpop.f32.mrb[1].mxu0 }
 0x299   : > { %v4891_v24 = vadd.f32 %v2243_v31, %v1911_v63  ;;  %v2245_v26 = vpop.f32.mrb[2].mxu0 }
 0x29a   : > { %vm2281_vm0 = vcmp.gt.f32.partialorder %v4890_v29, 0.0  ;;  %v2298_v52 = vmul.f32 %v4890_v29, %v7402_v33  ;;  %v4892_v54 = vadd.f32 %v2245_v26, %v1916_v32  ;;  %v2247_v34 = vpop.f32.mrb[3].mxu0 }
 0x29b   : > { %vm2282_vm2 = vcmp.gt.f32.partialorder %v4891_v24, 0.0  ;;  %v2299_v35 = vmul.f32 %v4891_v24, %v7402_v33  ;;  %v4893_v21 = vadd.f32 %v2247_v34, %v1916_v32  ;;  %v1941_v32 = vpop.permute.xlu1 %1940 }
 0x29c   : > { %v2314_v49 = vsel %vm2281_vm0, %v4890_v29, %v2298_v52  ;;  %vm2283_vm5 = vcmp.gt.f32.partialorder %v4892_v54, 0.0  ;;  %v2300_v36 = vmul.f32 %v4892_v54, %v7402_v33 }
 0x29d   : > { %2330 = vst [vmem:[#allocation2 + $0x8] sm:$0xff] %v2314_v49  ;;  %v7407_v37 = vsel %vm2282_vm2, %v4891_v24, %v2299_v35  ;;  %vm2284_vm8 = vcmp.gt.f32.partialorder %v4893_v21, 0.0  ;;  %v2301_v38 = vmul.f32 %v4893_v21, %v7402_v33 }
 0x29e   : > { %2331 = vst [vmem:[#allocation2 + $0x10] sm:$0xff] %v7407_v37  ;;  %v2316_v39 = vsel %vm2283_vm5, %v4892_v54, %v2300_v36  ;;  %v7412_v40 = vpack.i.bf16 %v7407_v37, %v2314_v49 }
 0x29f   : > { %2332 = vst [vmem:[#allocation2 + $0x28] sm:$0xff] %v2316_v39  ;;  %v7414_v56 = vsel %vm2284_vm8, %v4893_v21, %v2301_v38  ;;  %v2251_v10 = vpop.f32.mrb[4].mxu0  ;;  %v7416_v50 = vpack.i.bf16 %v2316_v39, %v2314_v49  ;;  %v1946_v21 = vpop.permute.xlu0 %1945 }
 0x2a0   : > { %2333 = vst [vmem:[#allocation2 + $0x30] sm:$0xff] %v7414_v56  ;;  %v4894_v44 = vadd.f32 %v2251_v10, %v1921_v41  ;;  %v2253_v16 = vpop.f32.mrb[5].mxu0  ;;  %5605 = vrot.lane.b32.xlu1 %v7412_v40, %s6281_s30  ;;  %v7422_v57 = vpack.i.bf16 %v7414_v56, %v2316_v39 }
 0x2a1   : > { %v4895_v61 = vadd.f32 %v2253_v16, %v1921_v41  ;;  %v2255_v53 = vpop.f32.mrb[6].mxu0 }
 0x2a2   : > { %vm2285_vm9 = vcmp.gt.f32.partialorder %v4894_v44, 0.0  ;;  %v2302_v0 = vmul.f32 %v4894_v44, %v7402_v33  ;;  %v4896_v2 = vadd.f32 %v2255_v53, %v1926_v20  ;;  %v2257_v18 = vpop.f32.mrb[7].mxu0  ;;  %5620 = vrot.lane.b32.xlu0 %v7422_v57, %s6281_s30 }
 0x2a3   : > { %vm2286_vm10 = vcmp.gt.f32.partialorder %v4895_v61, 0.0  ;;  %v2303_v27 = vmul.f32 %v4895_v61, %v7402_v33  ;;  %v4897_v58 = vadd.f32 %v2257_v18, %v1926_v20 }
 0x2a4   : > { %v2318_v59 = vsel %vm2285_vm9, %v4894_v44, %v2302_v0  ;;  %vm2287_vm14 = vcmp.gt.f32.partialorder %v4896_v2, 0.0  ;;  %v2304_v3 = vmul.f32 %v4896_v2, %v7402_v33  ;;  %5610 = vrot.lane.b32.xlu1 %v7412_v40, %s6282_s9 }
 0x2a5   : > { %2334 = vst [vmem:[#allocation2 + $0x48] sm:$0xff] %v2318_v59  ;;  %v7431_v25 = vsel %vm2286_vm10, %v4895_v61, %v2303_v27  ;;  %vm2288_vm0 = vcmp.gt.f32.partialorder %v4897_v58, 0.0  ;;  %v2305_v7 = vmul.f32 %v4897_v58, %v7402_v33 }
 0x2a6   : > { %2335 = vst [vmem:[#allocation2 + $0x50] sm:$0xff] %v7431_v25  ;;  %v2320_v8 = vsel %vm2287_vm14, %v4896_v2, %v2304_v3  ;;  %5625 = vrot.lane.b32.xlu0 %v7422_v57, %s6282_s9  ;;  %v7438_v30 = vpack.i.bf16 %v7431_v25, %v2318_v59  ;;  %v7556_v3 = vld [vmem:[#allocation2 + $0x98] sm:$0xff] }
 0x2a7   : > { %2336 = vst [vmem:[#allocation2 + $0x68] sm:$0xff] %v2320_v8  ;;  %v7440_v12 = vsel %vm2288_vm0, %v4897_v58, %v2305_v7  ;;  %v2261_v13 = vpop.f32.mrb[8].mxu0  ;;  %v7442_v5 = vpack.i.bf16 %v2320_v8, %v2318_v59 }
 0x2a8   : > { %2337 = vst [vmem:[#allocation2 + $0x70] sm:$0xff] %v7440_v12  ;;  %v4898_v14 = vadd.f32 %v2261_v13, %v1931_v9  ;;  %v2263_v46 = vpop.f32.mrb[9].mxu0  ;;  %5615 = vrot.lane.b32.xlu1 %v7412_v40, %s6283_s13  ;;  %v7448_v19 = vpack.i.bf16 %v7440_v12, %v2320_v8  ;;  %v7572_v8 = vld [vmem:[#allocation2 + $0xb8] sm:$0xff] }
 0x2a9   : > { %v4899_v22 = vadd.f32 %v2263_v46, %v1931_v9  ;;  %v2265_v43 = vpop.f32.mrb[10].mxu0  ;;  %v7584_v9 = vpop.permute.xlu0 %5565 }
 0x2aa   : > { %vm2289_vm2 = vcmp.gt.f32.partialorder %v4898_v14, 0.0  ;;  %v2306_v23 = vmul.f32 %v4898_v14, %v7402_v33  ;;  %v4900_v47 = vadd.f32 %v2265_v43, %v1936_v51  ;;  %v2267_v55 = vpop.f32.mrb[11].mxu0  ;;  %5630 = vrot.lane.b32.xlu0 %v7422_v57, %s6283_s13  ;;  %v7617_v43 = vld [vmem:[#allocation2 + $0xf8] sm:$0xff] }
 0x2ab   : > { %vm2290_vm5 = vcmp.gt.f32.partialorder %v4899_v22, 0.0  ;;  %v2307_v4 = vmul.f32 %v4899_v22, %v7402_v33  ;;  %v4901_v45 = vadd.f32 %v2267_v55, %v1936_v51  ;;  %v2370_v51 = vld [vmem:[%s8505_s5] ss:$8 sm:$0x3] }
 0x2ac   : > { %v2322_v48 = vsel %vm2289_vm2, %v4898_v14, %v2306_v23  ;;  %vm2291_vm8 = vcmp.gt.f32.partialorder %v4900_v47, 0.0  ;;  %v2308_v42 = vmul.f32 %v4900_v47, %v7402_v33  ;;  %5650 = vrot.lane.b32.xlu1 %v7448_v19, %s6281_s30 }
 0x2ad   : > { %2338 = vst [vmem:[#allocation2 + $0x88] sm:$0xff] %v2322_v48  ;;  %v7457_v63 = vsel %vm2290_vm5, %v4899_v22, %v2307_v4  ;;  %vm2292_vm9 = vcmp.gt.f32.partialorder %v4901_v45, 0.0  ;;  %v2309_v15 = vmul.f32 %v4901_v45, %v7402_v33  ;;  %v7600_v46 = vpop.permute.xlu0 %5575  ;;  %vm2371_vm5 = vcmp.gt.f32.partialorder %v2370_v51, 0.5 }
 0x2ae   : > { %2339 = vst [vmem:[#allocation2 + $0x90] sm:$0xff] %v7457_v63  ;;  %v2324_v29 = vsel %vm2291_vm8, %v4900_v47, %v2308_v42  ;;  %5635 = vrot.lane.b32.xlu0 %v7438_v30, %s6281_s30  ;;  %v5664_v31 = vpack.i.bf16 %v7457_v63, %v2322_v48  ;;  %v7568_v7 = vpack.i.bf16 %v7556_v3, %v7457_v63  ;;  %v2372_v47 = vsel %vm2371_vm5, 1, %v6280_v11 }
 0x2af   : > { %2340 = vst [vmem:[#allocation2 + $0xa8] sm:$0xff] %v2324_v29  ;;  %v7464_v24 = vsel %vm2292_vm9, %v4901_v45, %v2309_v15  ;;  %v2271_v26 = vpop.f32.mrb[12].mxu0  ;;  %v7466_v52 = vpack.i.bf16 %v2324_v29, %v2322_v48  ;;  %v2380_v45 = vrot.slane %v2372_v47, %v6730_v60  ;;  %v2376_v48 = vrot.slane %v2372_v47, %v6735_v62 }
 0x2b0   : > { %2341 = vst [vmem:[#allocation2 + $0xb0] sm:$0xff] %v7464_v24  ;;  %v4902_v54 = vadd.f32 %v2271_v26, %v1941_v32  ;;  %v2273_v34 = vpop.f32.mrb[13].mxu0  ;;  %5655 = vrot.lane.b32.xlu1 %v7448_v19, %s6282_s9  ;;  %v5674_v35 = vpack.i.bf16 %v7464_v24, %v2324_v29 }
 0x2b1   : > { %v4903_v49 = vadd.f32 %v2273_v34, %v1941_v32  ;;  %v2275_v36 = vpop.f32.mrb[14].mxu0  ;;  %v7613_v22 = vpop.permute.xlu0 %5585  ;;  %vm2382_vm8 = vcmp.eq.s32.totalorder %v2380_v45, 1  ;;  %vm2381_vm9 = vcmp.eq.s32.totalorder %v2376_v48, 1 }
 0x2b2   : > { %vm2293_vm10 = vcmp.gt.f32.partialorder %v4902_v54, 0.0  ;;  %v2310_v38 = vmul.f32 %v4902_v54, %v7402_v33  ;;  %v4904_v39 = vadd.f32 %v2275_v36, %v1946_v21  ;;  %v2277_v41 = vpop.f32.mrb[15].mxu0  ;;  %5640 = vrot.lane.b32.xlu0 %v7438_v30, %s6282_s9 }
 0x2b3   : > { %vm2294_vm14 = vcmp.gt.f32.partialorder %v4903_v49, 0.0  ;;  %v2311_v10 = vmul.f32 %v4903_v49, %v7402_v33  ;;  %v4905_v44 = vadd.f32 %v2277_v41, %v1946_v21 }
 0x2b4   : > { %v2326_v16 = vsel %vm2293_vm10, %v4902_v54, %v2310_v38  ;;  %vm2295_vm0 = vcmp.gt.f32.partialorder %v4904_v39, 0.0  ;;  %v2312_v20 = vmul.f32 %v4904_v39, %v7402_v33  ;;  %5660 = vrot.lane.b32.xlu1 %v7448_v19, %s6283_s13  ;;  %vm7646_vm10 = vmpackc.low %vm2382_vm8, %vm2382_vm8 }
 0x2b5   : > { %2342 = vst [vmem:[#allocation2 + $0xc8] sm:$0xff] %v2326_v16  ;;  %v7479_v61 = vsel %vm2294_vm14, %v4903_v49, %v2311_v10  ;;  %vm2296_vm2 = vcmp.gt.f32.partialorder %v4905_v44, 0.0  ;;  %v2313_v53 = vmul.f32 %v4905_v44, %v7402_v33  ;;  %v7626_v55 = vpop.permute.xlu0 %5595  ;;  %vm7656_vm14 = vmpackc.low %vm2381_vm9, %vm2381_vm9 }
 0x2b6   : > { %2343 = vst [vmem:[#allocation2 + $0xd0] sm:$0xff] %v7479_v61  ;;  %v2328_v0 = vsel %vm2295_vm0, %v4904_v39, %v2312_v20  ;;  %5645 = vrot.lane.b32.xlu0 %v7438_v30, %s6283_s13  ;;  %v5684_v2 = vpack.i.bf16 %v7479_v61, %v2326_v16 }
 0x2b7   : > { %2344 = vst [vmem:[#allocation2 + $0xe8] sm:$0xff] %v2328_v0  ;;  %v7486_v18 = vsel %vm2296_vm2, %v4905_v44, %v2313_v53  ;;  %v7488_v27 = vpack.i.bf16 %v2328_v0, %v2326_v16 }
 0x2b8   : > { %2345 = vst [vmem:[#allocation2 + $0xf0] sm:$0xff] %v7486_v18  ;;  %5665 = vrot.lane.b32.xlu1 %v5664_v31, %s6281_s30  ;;  %v5699_v58 = vpack.i.bf16 %v7486_v18, %v2328_v0  ;;  %v7630_v4 = vpack.i.bf16 %v7617_v43, %v7486_v18  ;;  %v5567_v18 = vunpack.i.l.bf16 %v7584_v9 }
 0x2ba   : > { %5675 = vrot.lane.b32.xlu0 %v5674_v35, %s6281_s30 }
 0x2bc   : > { %5670 = vrot.lane.b32.xlu1 %v5664_v31, %s6282_s9 }
 0x2be   : > { %5680 = vrot.lane.b32.xlu0 %v5674_v35, %s6282_s9 }
 0x2c0   : > { %5700 = vrot.lane.b32.xlu1 %v5699_v58, %s6281_s30 }
 0x2c2   : > { %5685 = vrot.lane.b32.xlu0 %v5684_v2, %s6281_s30  ;;  %s4505_s30 = sshll.u32 %s6352_s28, 11  ;;  %s4304_s28 = scalar_lea.sflag [#allocation6], %s6517_s22 }
 0x2c4   : > { %5705 = vrot.lane.b32.xlu1 %v5664_v31, %s6283_s13 }
 0x2c6   : > { %5690 = vrot.lane.b32.xlu0 %v7384_v6, %s6283_s13 }
 0x2c8   : > { %5715 = vrot.lane.b32.xlu1 %v7380_v1, %s6283_s13 }
 0x2ca   : > { %5695 = vrot.lane.b32.xlu0 %v5684_v2, %s6282_s9 }
 0x2cc   : > { %5730 = vrot.lane.b32.xlu1 %v7412_v40, %s6284_s6  ;;  %v6069_v40 = vld [vmem:[#allocation10 + $0x4] ss:$20 sps:$4 sm:$0xff]  }
 0x2cd   : > { %4050 = vmatprep.mubr.bf16.mxu1 %v6069_v40 }
 0x2ce   : > { %5710 = vrot.lane.b32.xlu0 %v5674_v35, %s6283_s13 }
 0x2d0   : > { %5740 = vrot.lane.b32.xlu1 %v5699_v58, %s6282_s9 }
 0x2d2   : > { %5720 = vrot.lane.b32.xlu0 %v5684_v2, %s6283_s13 }
 0x2d4   : > { %5745 = vrot.lane.b32.xlu1 %v7188_v28, %s6284_s6  ;;  %v7523_v28 = vld [vmem:[#allocation2 + $0x18] sm:$0xff] }
 0x2d5   : > { %v7530_v33 = vpack.i.bf16 %v7523_v28, %v7407_v37 }
 0x2d6   : > { %5725 = vrot.lane.b32.xlu0 %v7390_v17, %s6283_s13 }
 0x2d8   : > { %5755 = vrot.lane.b32.xlu1 %v7448_v19, %s6284_s6 }
 0x2da   : > { %5735 = vrot.lane.b32.xlu0 %v7422_v57, %s6284_s6  ;;  %v7548_v57 = vld [vmem:[#allocation2 + $0x58] sm:$0xff] }
 0x2dc   : > { %5765 = vrot.lane.b32.xlu1 %v5664_v31, %s6284_s6 }
 0x2de   : > { %5750 = vrot.lane.b32.xlu0 %v7438_v30, %s6284_s6 }
 0x2e0   : > { %5775 = vrot.lane.b32.xlu1 %v5699_v58, %s6283_s13  ;;  %s4317_s13 = sshll.u32 %s8406_s17, 4  ;;  %s8453_s13 = int_to_ptr.vmem [resolvable:$true] %s4317_s13 }
 0x2e2   : > { %5760 = vrot.lane.b32.xlu0 %v7384_v6, %s6284_s6  ;;  %v7537_v6 = vld [vmem:[#allocation2 + $0x38] sm:$0xff] }
 0x2e3   : > { %v7546_v37 = vpack.i.bf16 %v7537_v6, %v7414_v56  ;;  %v5561_v56 = vpop.permute.xlu1 %5560 }
 0x2e4   : > { %5780 = vrot.lane.b32.xlu1 %v7380_v1, %s6284_s6  ;;  %v7541_v1 = vld [vmem:[#allocation2 + $0x78] sm:$0xff]  ;;  %v5563_v29 = vunpack.i.h.bf16 %v5561_v56  ;;  %v5562_v32 = vunpack.i.l.bf16 %v5561_v56 }
 0x2e5   : > { %v7554_v59 = vpack.i.bf16 %v7541_v1, %v7440_v12  ;;  %v7586_v12 = vld [vmem:[#allocation2 + $0xd8] sm:$0xff] }
 0x2e6   : > { %5770 = vrot.lane.b32.xlu0 %v5674_v35, %s6284_s6  ;;  %v7594_v13 = vpack.i.bf16 %v7586_v12, %v7479_v61 }
 0x2e7   : > { %v7576_v30 = vpop.permute.xlu1 %5570 }
 0x2e8   : > { %5795 = vrot.lane.b32.xlu1 %v7530_v33, %s6285_s18 }
 0x2ea   : > { %5785 = vrot.lane.b32.xlu0 %v5684_v2, %s6284_s6  ;;  %v5568_v2 = vunpack.i.h.bf16 %v7584_v9 }
 0x2eb   : > { %v7596_v14 = vpop.permute.xlu1 %5580 }
 0x2ec   : > { %5805 = vrot.lane.b32.xlu1 %v7416_v50, %s6285_s18 }
 0x2ee   : > { %5790 = vrot.lane.b32.xlu0 %v7390_v17, %s6284_s6  ;;  %v7562_v17 = vpack.i.bf16 %v7548_v57, %v7431_v25  ;;  %v7582_v25 = vpack.i.bf16 %v7572_v8, %v7464_v24 }
 0x2ef   : > { %v7606_v19 = vpop.permute.xlu1 %5590 }
 0x2f0   : > { %5815 = vrot.lane.b32.xlu1 %v5699_v58, %s6284_s6 }
 0x2f2   : > { %5800 = vrot.lane.b32.xlu0 %v7546_v37, %s6285_s18 }
 0x2f3   : > { %v7621_v23 = vpop.permute.xlu1 %5600 }
 0x2f4   : > { %5820 = vrot.lane.b32.xlu1 %v7554_v59, %s6285_s18 }
 0x2f6   : > { %5810 = vrot.lane.b32.xlu0 %v7562_v17, %s6285_s18 }
 0x2f8   : > { %5830 = vrot.lane.b32.xlu1 %v7568_v7, %s6285_s18 }
 0x2fa   : > { %5825 = vrot.lane.b32.xlu0 %v7442_v5, %s6285_s18 }
 0x2fc   : > { %5840 = vrot.lane.b32.xlu1 %v7466_v52, %s6285_s18 }
 0x2fe   : > { %5835 = vrot.lane.b32.xlu0 %v7582_v25, %s6285_s18 }
 0x300   : > { %5855 = vrot.lane.b32.xlu1 %v7530_v33, %s6286_s11 }
 0x302   : > { %5845 = vrot.lane.b32.xlu0 %v7594_v13, %s6285_s18 }
 0x304   : > { %5865 = vrot.lane.b32.xlu1 %v7416_v50, %s6286_s11 }
 0x306   : > { %5850 = vrot.lane.b32.xlu0 %v7488_v27, %s6285_s18 }
 0x308   : > { %5875 = vrot.lane.b32.xlu1 %v7554_v59, %s6286_s11 }
 0x30a   : > { %5860 = vrot.lane.b32.xlu0 %v7546_v37, %s6286_s11 }
 0x30c   : > { %5885 = vrot.lane.b32.xlu1 %v7568_v7, %s6286_s11 }
 0x30e   : > { %5870 = vrot.lane.b32.xlu0 %v7562_v17, %s6286_s11 }
 0x310   : > { %5895 = vrot.lane.b32.xlu1 %v7630_v4, %s6285_s18 }
 0x312   : > { %5880 = vrot.lane.b32.xlu0 %v7442_v5, %s6286_s11  ;;  %v5606_v42 = vpop.permute.xlu1 %5605 }
 0x313   : > { %v5608_v63 = vunpack.i.h.bf16 %v5606_v42  ;;  %v5607_v15 = vunpack.i.l.bf16 %v5606_v42 }
 0x314   : > { %v5621_v31 = vpop.permute.xlu0 %5620  ;;  %5900 = vrot.lane.b32.xlu1 %v7466_v52, %s6286_s11 }
 0x315   : > { %v5623_v24 = vunpack.i.h.bf16 %v5621_v31  ;;  %v5622_v26 = vunpack.i.l.bf16 %v5621_v31  ;;  %v2456_v34 = vsel %vm482_vm1, %v5607_v15, %v5608_v63  ;;  %v2455_v49 = vsel %vm482_vm1, %v5562_v32, %v5607_v15 }
 0x316   : > { %5890 = vrot.lane.b32.xlu0 %v7582_v25, %s6286_s11  ;;  %v7642_v54 = vpop.permute.xlu1 %5610  ;;  %v5573_v31 = vunpack.i.h.bf16 %v7576_v30  ;;  %v5572_v32 = vunpack.i.l.bf16 %v7576_v30 }
 0x317   : > { %v2458_v35 = vsel %vm482_vm1, %v5622_v26, %v5623_v24  ;;  %v2457_v36 = vsel %vm482_vm1, %v5563_v29, %v5622_v26 }
 0x318   : > { %v7652_v38 = vpop.permute.xlu0 %5625  ;;  %5915 = vrot.lane.b32.xlu1 %v7530_v33, %s6287_s15  ;;  %v4699_v39 = vpack.c.bf16 %v2458_v35, %v2456_v34  ;;  %v4702_v10 = vpack.c.bf16 %v2457_v36, %v2455_v49  ;;  %v7720_v36 = vld [vmem:[#allocation2 + $0x10] sm:$0xff] }
 0x31a   : > { %5905 = vrot.lane.b32.xlu0 %v7594_v13, %s6286_s11  ;;  %v7662_v44 = vpop.permute.xlu1 %5615  ;;  %4700 = vmatprep.subr.msk.bf16.mxu1 %vm7646_vm10, %v4699_v39 }
 0x31b   : > { %4703 = vmatpush1.bf16.msk.msra.mxu1 %vm7656_vm14, %v4702_v10 }
 0x31c   : > { %v7668_v16 = vpop.permute.xlu0 %5630  ;;  %5925 = vrot.lane.b32.xlu1 %v7416_v50, %s6287_s15 }
 0x31e   : > { %5910 = vrot.lane.b32.xlu0 %v7488_v27, %s6286_s11  ;;  %v5651_v20 = vpop.permute.xlu1 %5650 }
 0x31f   : > { %v5653_v61 = vunpack.i.h.bf16 %v5651_v20  ;;  %v5652_v53 = vunpack.i.l.bf16 %v5651_v20  ;;  %v5628_v20 = vunpack.i.h.bf16 %v7652_v38 }
 0x320   : > { %v5636_v0 = vpop.permute.xlu0 %5635  ;;  %5935 = vrot.lane.b32.xlu1 %v7630_v4, %s6286_s11  ;;  %s8583_s11 = smov 111  }
 0x321   : > { %v5638_v58 = vunpack.i.h.bf16 %v5636_v0  ;;  %v5637_v33 = vunpack.i.l.bf16 %v5636_v0  ;;  %v2461_v40 = vsel %vm482_vm1, %v5568_v2, %v5652_v53  ;;  %v2462_v56 = vsel %vm482_vm1, %v5652_v53, %v5653_v61 }
 0x322   : > { %5920 = vrot.lane.b32.xlu0 %v7546_v37, %s6287_s15  ;;  %v7680_v50 = vpop.permute.xlu1 %5655  ;;  %v5627_v61 = vunpack.i.l.bf16 %v7652_v38  ;;  %v5979_v0 = vpack.i.bf16 %v7523_v28, %v7720_v36  ;;  %v5578_v38 = vunpack.i.h.bf16 %v7600_v46 }
 0x323   : > { %v2459_v51 = vsel %vm482_vm1, %v5567_v18, %v5637_v33  ;;  %v2460_v47 = vsel %vm482_vm1, %v5637_v33, %v5638_v58  ;;  %v7739_v58 = vld [vmem:[#allocation2 + $0x8] sm:$0xff] }
 0x324   : > { %v4705_v45 = vpack.c.bf16 %v2462_v56, %v2460_v47  ;;  %v4708_v48 = vpack.c.bf16 %v2461_v40, %v2459_v51  ;;  %v7686_v42 = vpop.permute.xlu0 %5640  ;;  %5940 = vrot.lane.b32.xlu1 %v7554_v59, %s6287_s15  ;;  %v4467_v59 = vld [vmem:[%s8505_s5 + $0x1] ss:$8 sm:$0x3]  ;;  %v5613_v56 = vunpack.i.h.bf16 %v7642_v54  ;;  %v5612_v51 = vunpack.i.l.bf16 %v7642_v54 }
 0x325   : > { %vm2544_vm0 = vcmp.gt.f32.partialorder %v4467_v59, 0.5  ;;  %v2631_v59 = vsel %vm657_vm7, %v5627_v61, %v5628_v20  ;;  %v5582_v20 = vunpack.i.l.bf16 %v7596_v14 }
 0x326   : > { %5930 = vrot.lane.b32.xlu0 %v7562_v17, %s6287_s15  ;;  %v7692_v37 = vpop.permute.xlu1 %5660  ;;  %4706 = vmatprep.subr.msk.bf16.mxu1 %vm7646_vm10, %v4705_v45 }
 0x327   : > { %4709 = vmatpush1.bf16.msk.msra.mxu1 %vm7656_vm14, %v4708_v48  ;;  %v7749_v48 = vld [vmem:[#allocation2 + $0x30] sm:$0xff] }
 0x328   : > { %v7698_v9 = vpop.permute.xlu0 %5645  ;;  %5950 = vrot.lane.b32.xlu1 %v7568_v7, %s6287_s15 }
 0x32a   : > { %5945 = vrot.lane.b32.xlu0 %v7442_v5, %s6287_s15  ;;  %v5666_v17 = vpop.permute.xlu1 %5665  ;;  %v2545_v5 = vsel %vm2544_vm0, 1, %v6280_v11 }
 0x32b   : > { %v5668_v63 = vunpack.i.h.bf16 %v5666_v17  ;;  %v5667_v15 = vunpack.i.l.bf16 %v5666_v17  ;;  %v2553_v2 = vrot.slane %v2545_v5, %v6730_v60  ;;  %v2549_v28 = vrot.slane %v2545_v5, %v6735_v62 }
 0x32c   : > { %v5676_v29 = vpop.permute.xlu0 %5675  ;;  %5960 = vrot.lane.b32.xlu1 %v7466_v52, %s6287_s15  ;;  %v5642_v17 = vunpack.i.l.bf16 %v7686_v42 }
 0x32d   : > { %v5678_v7 = vunpack.i.h.bf16 %v5676_v29  ;;  %v5677_v24 = vunpack.i.l.bf16 %v5676_v29  ;;  %v2463_v34 = vsel %vm482_vm1, %v5572_v32, %v5667_v15  ;;  %v2464_v35 = vsel %vm482_vm1, %v5667_v15, %v5668_v63  ;;  %v7762_v32 = vld [vmem:[#allocation2 + $0x70] sm:$0xff] }
 0x32e   : > { %5955 = vrot.lane.b32.xlu0 %v7582_v25, %s6287_s15  ;;  %v7713_v26 = vpop.permute.xlu1 %5670  ;;  %v7726_v25 = vld [vmem:[#allocation2 + $0x28] sm:$0xff]  ;;  %vm2555_vm2 = vcmp.eq.s32.totalorder %v2553_v2, 1  ;;  %vm7779_vm5 = vcmp.eq.s32.totalorder %v2549_v28, 1  ;;  %v5999_v2 = vpack.i.bf16 %v7541_v1, %v7762_v32 }
 0x32f   : > { %v2465_v49 = vsel %vm482_vm1, %v5573_v31, %v5677_v24  ;;  %v2466_v52 = vsel %vm482_vm1, %v5677_v24, %v5678_v7  ;;  %v5989_v40 = vpack.i.bf16 %v7726_v25, %v7739_v58  ;;  %v5583_v7 = vunpack.i.h.bf16 %v7596_v14  ;;  %v7800_v14 = vld [vmem:[#allocation2 + $0x90] sm:$0xff]  ;;  %vm7814_vm8 = vmpackc.low %vm7779_vm5, %vm7779_vm5 }
 0x330   : > { %v4711_v30 = vpack.c.bf16 %v2466_v52, %v2464_v35  ;;  %v4714_v39 = vpack.c.bf16 %v2465_v49, %v2463_v34  ;;  %v7722_v10 = vpop.permute.xlu0 %5680  ;;  %5970 = vrot.lane.b32.xlu1 %v7630_v4, %s6287_s15  ;;  %v2629_v34 = vsel %vm657_vm7, %v5612_v51, %v5613_v56  ;;  %v5658_v35 = vunpack.i.h.bf16 %v7680_v50  ;;  %v7821_v56 = vld [vmem:[#allocation2 + $0x68] sm:$0xff]  ;;  %v3858_v52 = vld [vmem:[%s8504_s4] sm:$0xff] }
 0x331   : > { %v5657_v49 = vunpack.i.l.bf16 %v7680_v50  ;;  %v5672_v28 = vunpack.i.l.bf16 %v7713_v26 }
 0x332   : > { %5965 = vrot.lane.b32.xlu0 %v7594_v13, %s6287_s15  ;;  %v5701_v53 = vpop.permute.xlu1 %5700  ;;  %4712 = vmatprep.subr.msk.bf16.mxu1 %vm7646_vm10, %v4711_v30  ;;  %v5577_v13 = vunpack.i.l.bf16 %v7600_v46  ;;  %v5643_v46 = vunpack.i.h.bf16 %v7686_v42  ;;  %v7777_v30 = vld [vmem:[#allocation2 + $0x50] sm:$0xff] }
 0x333   : > { %v5703_v18 = vunpack.i.h.bf16 %v5701_v53  ;;  %v5702_v4 = vunpack.i.l.bf16 %v5701_v53  ;;  %4715 = vmatpush1.bf16.msk.msra.mxu1 %vm7656_vm14, %v4714_v39  ;;  %v2630_v53 = vsel %vm657_vm7, %v5583_v7, %v5627_v61  ;;  %v5587_v61 = vunpack.i.l.bf16 %v7613_v22 }
 0x334   : > { %v5686_v33 = vpop.permute.xlu0 %5685  ;;  %5980 = vrot.lane.b32.xlu1 %v5979_v0, %s8583_s11  ;;  %v4723_v0 = vpack.c.bf16 %v2631_v59, %v2629_v34  ;;  %v5994_v1 = vpack.i.bf16 %v7548_v57, %v7777_v30  ;;  %v6009_v59 = vpack.i.bf16 %v7556_v3, %v7800_v14  ;;  %v5597_v3 = vunpack.i.l.bf16 %v7626_v55 }
 0x335   : > { %v5688_v47 = vunpack.i.h.bf16 %v5686_v33  ;;  %v5687_v45 = vunpack.i.l.bf16 %v5686_v33  ;;  %v2469_v15 = vsel %vm482_vm1, %v5578_v38, %v5702_v4  ;;  %v2470_v54 = vsel %vm482_vm1, %v5702_v4, %v5703_v18 }
 0x336   : > { %5975 = vrot.lane.b32.xlu0 %v7488_v27, %s6287_s15  ;;  %v7756_v63 = vpop.permute.xlu1 %5705  ;;  %v5984_v27 = vpack.i.bf16 %v7537_v6, %v7749_v48  ;;  %v4468_v6 = vld [vmem:[%s8505_s5 + $0x2] ss:$8 sm:$0x3]  ;;  %v2633_v18 = vsel %vm657_vm7, %v5642_v17, %v5643_v46  ;;  %v5683_v4 = vunpack.i.h.bf16 %v7722_v10  ;;  %v5682_v38 = vunpack.i.l.bf16 %v7722_v10  ;;  %s6289_s15 = smov [#allocation12]  }
 0x337   : > { %v2467_v29 = vsel %vm482_vm1, %v5577_v13, %v5687_v45  ;;  %v2468_v31 = vsel %vm482_vm1, %v5687_v45, %v5688_v47  ;;  %vm7773_vm1 = vmpackc.low %vm2555_vm2, %vm2555_vm2  ;;  %v2628_v13 = vsel %vm657_vm7, %v5582_v20, %v5612_v51  ;;  %vm2717_vm9 = vcmp.gt.f32.partialorder %v4468_v6, 0.5  ;;  %s6200_s10 = sshll.u32 %s6289_s15, 4  ;;  %s6201_s10 = int_to_ptr.vmem [resolvable:$false] %s6200_s10 }
 0x338   : > { %v4717_v24 = vpack.c.bf16 %v2470_v54, %v2468_v31  ;;  %v4720_v42 = vpack.c.bf16 %v2469_v15, %v2467_v29  ;;  %v7765_v5 = vpop.permute.xlu0 %5690  ;;  %5990 = vrot.lane.b32.xlu1 %v5989_v40, %s8583_s11  ;;  %v4726_v10 = vpack.c.bf16 %v2630_v53, %v2628_v13  ;;  %v2635_v33 = vsel %vm657_vm7, %v5657_v49, %v5658_v35  ;;  %v7856_v35 = vld [vmem:[#allocation2 + $0xb0] sm:$0xff]  ;;  %s6202_s23 = scalar_lea.vmem %s6201_s10, 4096  ;;  %p6203_p5 = scmp.lt.s32.totalorder %s8453_s13, %s6201_s10 }
 0x339   : > { %v5673_v40 = vunpack.i.h.bf16 %v7713_v26  ;;  %v5588_v51 = vunpack.i.h.bf16 %v7613_v22  ;;  %v2632_v57 = vsel %vm657_vm7, %v5587_v61, %v5642_v17  ;;  %v4729_v47 = vpack.c.bf16 %v2635_v33, %v2633_v18  ;;  %v7835_v22 = vld [vmem:[#allocation2 + $0x48] sm:$0xff]  ;;  %v7867_v61 = vld [vmem:[#allocation2 + $0xf0] sm:$0xff] }
 0x33a   : > { %5985 = vrot.lane.b32.xlu0 %v5984_v27, %s8583_s11  ;;  %v7789_v50 = vpop.permute.xlu1 %5715  ;;  %4718 = vmatprep.subr.msk.bf16.mxu1 %vm7646_vm10, %v4717_v24  ;;  %v5593_v46 = vunpack.i.h.bf16 %v7606_v19  ;;  %v5592_v15 = vunpack.i.l.bf16 %v7606_v19  ;;  %v2639_v26 = vsel %vm657_vm7, %v5682_v38, %v5683_v4  ;;  %v7837_v17 = vld [vmem:[#allocation2 + $0xa8] sm:$0xff]  ;;  %v2718_v54 = vsel %vm2717_vm9, 1, %v6280_v11 }
 0x33b   : > { %4721 = vmatpush1.bf16.msk.msra.mxu1 %vm7656_vm14, %v4720_v42  ;;  %v5598_v29 = vunpack.i.h.bf16 %v7626_v55  ;;  %v2634_v31 = vsel %vm657_vm7, %v5588_v51, %v5657_v49  ;;  %v6004_v19 = vpack.i.bf16 %v7821_v56, %v7835_v22  ;;  %v2637_v42 = vsel %vm657_vm7, %v5672_v28, %v5673_v40  ;;  %v7854_v55 = vld [vmem:[#allocation2 + $0x88] sm:$0xff] }
 0x33c   : > { %v7804_v21 = vpop.permute.xlu0 %5695  ;;  %6000 = vrot.lane.b32.xlu1 %v5999_v2, %s8583_s11  ;;  %4724 = vmatprep.subr.msk.bf16.mxu1 %vm7773_vm1, %v4723_v0  ;;  %v4732_v24 = vpack.c.bf16 %v2634_v31, %v2632_v57  ;;  %v2638_v49 = vsel %vm657_vm7, %v5593_v46, %v5682_v38  ;;  %v4735_v39 = vpack.c.bf16 %v2639_v26, %v2637_v42  ;;  %v5633_v0 = vunpack.i.h.bf16 %v7668_v16 }
 0x33d   : > { %v5698_v27 = vunpack.i.h.bf16 %v7804_v21  ;;  %v5697_v34 = vunpack.i.l.bf16 %v7804_v21  ;;  %v6019_v20 = vpack.i.bf16 %v7837_v17, %v7854_v55  ;;  %v2726_v53 = vrot.slane %v2718_v54, %v6730_v60 }
 0x33e   : > { %5995 = vrot.lane.b32.xlu0 %v5994_v1, %s8583_s11  ;;  %v7826_v45 = vpop.permute.xlu1 %5730  ;;  %v5632_v2 = vunpack.i.l.bf16 %v7668_v16  ;;  %v5618_v38 = vunpack.i.h.bf16 %v7662_v44  ;;  %v2636_v13 = vsel %vm657_vm7, %v5592_v15, %v5672_v28  ;;  %v6014_v16 = vpack.i.bf16 %v7572_v8, %v7856_v35  ;;  %v7882_v28 = vld [vmem:[#allocation2 + $0xd0] sm:$0xff] }
 0x33f   : > { %4727 = vmatpush1.bf16.msk.msra.mxu1 %vm7814_vm8, %v4726_v10  ;;  %v2722_v1 = vrot.slane %v2718_v54, %v6735_v62  ;;  %v5617_v10 = vunpack.i.l.bf16 %v7662_v44  ;;  %v4738_v33 = vpack.c.bf16 %v2638_v49, %v2636_v13  ;;  %v2641_v40 = vsel %vm657_vm7, %v5697_v34, %v5698_v27 }
 0x340   : > { %v7844_v7 = vpop.permute.xlu0 %5710  ;;  %6010 = vrot.lane.b32.xlu1 %v6009_v59, %s8583_s11  ;;  %4730 = vmatprep.subr.msk.bf16.mxu1 %vm7773_vm1, %v4729_v47  ;;  %v6029_v8 = vpack.i.bf16 %v7617_v43, %v7867_v61  ;;  %vm7890_vm10 = vcmp.eq.s32.totalorder %v2726_v53, 1  ;;  %v5603_v44 = vunpack.i.h.bf16 %v7621_v23  ;;  %v2804_v15 = vsel %vm832_vm13, %v5632_v2, %v5633_v0 }
 0x341   : > { %v5648_v26 = vunpack.i.h.bf16 %v7698_v9  ;;  %v5647_v54 = vunpack.i.l.bf16 %v7698_v9  ;;  %v2640_v31 = vsel %vm657_vm7, %v5597_v3, %v5697_v34  ;;  %vm7911_vm14 = vcmp.eq.s32.totalorder %v2722_v1, 1  ;;  %v4469_v34 = vld [vmem:[%s8505_s5 + $0x3] ss:$8 sm:$0x3] }
 0x342   : > { %6005 = vrot.lane.b32.xlu0 %v6004_v19, %s8583_s11  ;;  %v5741_v6 = vpop.permute.xlu1 %5740  ;;  %v6024_v19 = vpack.i.bf16 %v7586_v12, %v7882_v28  ;;  %v5663_v3 = vunpack.i.h.bf16 %v7692_v37  ;;  %v5662_v42 = vunpack.i.l.bf16 %v7692_v37  ;;  %v2803_v49 = vsel %vm832_vm13, %v5603_v44, %v5632_v2  ;;  %vm7954_vm0 = vmpackc.low %vm7911_vm14, %vm7911_vm14 }
 0x343   : > { %v5743_v18 = vunpack.i.h.bf16 %v5741_v6  ;;  %v5742_v4 = vunpack.i.l.bf16 %v5741_v6  ;;  %4733 = vmatpush1.bf16.msk.msra.mxu1 %vm7814_vm8, %v4732_v24  ;;  %v7909_v24 = vld [vmem:[#allocation2 + $0xe8] sm:$0xff]  ;;  %v5693_v37 = vunpack.i.h.bf16 %v7765_v5  ;;  %v5692_v6 = vunpack.i.l.bf16 %v7765_v5 }
 0x344   : > { %v7871_v21 = vpop.permute.xlu0 %5720  ;;  %6020 = vrot.lane.b32.xlu1 %v6019_v20, %s8583_s11  ;;  %4736 = vmatprep.subr.msk.bf16.mxu1 %vm7773_vm1, %v4735_v39  ;;  %v2806_v53 = vsel %vm832_vm13, %v5647_v54, %v5648_v26  ;;  %v5713_v0 = vunpack.i.h.bf16 %v7844_v7  ;;  %vm2890_vm2 = vcmp.gt.f32.partialorder %v4469_v34, 0.5  ;;  %v2808_v13 = vsel %vm832_vm13, %v5662_v42, %v5663_v3 }
 0x345   : > { %v2643_v51 = vsel %vm657_vm7, %v5742_v4, %v5743_v18  ;;  %v2642_v57 = vsel %vm657_vm7, %v5598_v29, %v5742_v4  ;;  %v5602_v29 = vunpack.i.l.bf16 %v7621_v23  ;;  %v2802_v23 = vsel %vm832_vm13, %v5617_v10, %v5618_v38  ;;  %vm7924_vm7 = vmpackc.low %vm7890_vm10, %vm7890_vm10  ;;  %v7942_v4 = vld [vmem:[#allocation2 + $0xc8] sm:$0xff] }
 0x346   : > { %v4741_v47 = vpack.c.bf16 %v2643_v51, %v2641_v40  ;;  %6015 = vrot.lane.b32.xlu0 %v6014_v16, %s8583_s11  ;;  %v7886_v59 = vpop.permute.xlu1 %5745  ;;  %v4744_v27 = vpack.c.bf16 %v2642_v57, %v2640_v31  ;;  %v4747_v39 = vpack.c.bf16 %v2804_v15, %v2802_v23  ;;  %v5712_v18 = vunpack.i.l.bf16 %v7844_v7 }
 0x347   : > { %4739 = vmatpush1.bf16.msk.msra.mxu1 %vm7814_vm8, %v4738_v33  ;;  %v2801_v2 = vsel %vm832_vm13, %v5602_v29, %v5617_v10  ;;  %v6034_v5 = vpack.i.bf16 %v7909_v24, %v7942_v4  ;;  %v5708_v16 = vunpack.i.h.bf16 %v7756_v63  ;;  %v5707_v1 = vunpack.i.l.bf16 %v7756_v63  ;;  %v3860_v10 = vld [vmem:[%s8504_s4 + $0x10] sm:$0xff]  ;;  %v3859_v63 = vld [vmem:[%s8504_s4 + $0x8] sm:$0xff] }
 0x348   : > { %v7902_v43 = vpop.permute.xlu0 %5725  ;;  %6030 = vrot.lane.b32.xlu1 %v6029_v8, %s8583_s11  ;;  %4742 = vmatprep.subr.msk.bf16.mxu1 %vm7773_vm1, %v4741_v47  ;;  %v4750_v41 = vpack.c.bf16 %v2803_v49, %v2801_v2  ;;  %v4753_v33 = vpack.c.bf16 %v2808_v13, %v2806_v53  ;;  %v2805_v40 = vsel %vm832_vm13, %v5692_v6, %v5647_v54  ;;  %v5718_v57 = vunpack.i.h.bf16 %v7789_v50 }
 0x349   : > { %v2807_v51 = vsel %vm832_vm13, %v5693_v37, %v5662_v42  ;;  %v2812_v8 = vsel %vm832_vm13, %v5712_v18, %v5713_v0  ;;  %v2891_v46 = vsel %vm2890_vm2, 1, %v6280_v11  ;;  %v5717_v44 = vunpack.i.l.bf16 %v7789_v50 }
 0x34a   : > { %6025 = vrot.lane.b32.xlu0 %v6024_v19, %s8583_s11  ;;  %v7935_v20 = vpop.permute.xlu1 %5755  ;;  %v2810_v26 = vsel %vm832_vm13, %v5707_v1, %v5708_v16  ;;  %v4756_v54 = vpack.c.bf16 %v2807_v51, %v2805_v40  ;;  %v5723_v29 = vunpack.i.h.bf16 %v7871_v21  ;;  %v5722_v31 = vunpack.i.l.bf16 %v7871_v21  ;;  %v3862_v19 = vld [vmem:[%s8504_s4 + $0x20] sm:$0xff]  ;;  %v3861_v21 = vld [vmem:[%s8504_s4 + $0x18] sm:$0xff]  ;;  %v3863_v51 = vld [vmem:[%s8504_s4 + $0x28] sm:$0xff] }
 0x34b   : > { %4745 = vmatpush1.bf16.msk.msra.mxu1 %vm7814_vm8, %v4744_v27  ;;  %v2811_v9 = vsel %vm832_vm13, %v5718_v57, %v5712_v18  ;;  %v4759_v50 = vpack.c.bf16 %v2812_v8, %v2810_v26  ;;  %v2899_v3 = vrot.slane %v2891_v46, %v6730_v60  ;;  %v2895_v42 = vrot.slane %v2891_v46, %v6735_v62 }
 0x34c   : > { %v7945_v38 = vpop.permute.xlu0 %5735  ;;  %3868 = vperm.xlu1 %5558, %v3858_v52   ;;  %4748 = vmatprep.subr.msk.bf16.mxu1 %vm7924_vm7, %v4747_v39  ;;  %v2809_v39 = vsel %vm832_vm13, %v5717_v44, %v5707_v1  ;;  %v5733_v37 = vunpack.i.h.bf16 %v7826_v45  ;;  %v5728_v6 = vunpack.i.h.bf16 %v7902_v43  ;;  %v5727_v53 = vunpack.i.l.bf16 %v7902_v43 }
 0x34d   : > { %v5738_v27 = vunpack.i.h.bf16 %v7945_v38  ;;  %v5737_v52 = vunpack.i.l.bf16 %v7945_v38  ;;  %v5732_v18 = vunpack.i.l.bf16 %v7826_v45  ;;  %v4762_v2 = vpack.c.bf16 %v2811_v9, %v2809_v39 }
 0x34e   : > { %6035 = vrot.lane.b32.xlu0 %v6034_v5, %s8583_s11  ;;  %v7968_v47 = vpop.permute.xlu1 %5765  ;;  %v2814_v38 = vsel %vm832_vm13, %v5722_v31, %v5723_v29  ;;  %v5748_v13 = vunpack.i.h.bf16 %v7886_v59  ;;  %vm8012_vm1 = vcmp.eq.s32.totalorder %v2899_v3, 1  ;;  %v5747_v57 = vunpack.i.l.bf16 %v7886_v59  ;;  %v3865_v3 = vld [vmem:[%s8504_s4 + $0x38] sm:$0xff]  ;;  %s8450_s11 = scalar_lea.hbm %s8507_s7, %s4505_s30 }
 0x34f   : > { %4751 = vmatpush1.bf16.msk.msra.mxu1 %vm7954_vm0, %v4750_v41  ;;  %v3864_v41 = vld [vmem:[%s8504_s4 + $0x30] sm:$0xff]  ;;  %v2977_v45 = vsel %vm1007_vm4, %v5737_v52, %v5738_v27  ;;  %v2813_v8 = vsel %vm832_vm13, %v5727_v53, %v5722_v31  ;;  %vm8028_vm5 = vcmp.eq.s32.totalorder %v2895_v42, 1  ;;  %v2975_v44 = vsel %vm1007_vm4, %v5732_v18, %v5733_v37 }
 0x350   : > { %v7978_v15 = vpop.permute.xlu0 %5750  ;;  %3878 = vperm.xlu1 %5558, %v3860_v10   ;;  %4754 = vmatprep.subr.msk.bf16.mxu1 %vm7924_vm7, %v4753_v33  ;;  %v5757_v26 = vunpack.i.l.bf16 %v7935_v20  ;;  %v2976_v12 = vsel %vm1007_vm4, %v5748_v13, %v5737_v52  ;;  %v4771_v29 = vpack.c.bf16 %v2977_v45, %v2975_v44  ;;  %v2974_v42 = vsel %vm1007_vm4, %v5747_v57, %v5732_v18  ;;  %vm8057_vm8 = vmpackc.low %vm8028_vm5, %vm8028_vm5 }
 0x351   : > { %v5753_v33 = vunpack.i.h.bf16 %v7978_v15  ;;  %v5752_v40 = vunpack.i.l.bf16 %v7978_v15  ;;  %v5758_v15 = vunpack.i.h.bf16 %v7935_v20  ;;  %v3054_v59 = vpack.c.bf16 %v7726_v25, %v7739_v58 }
 0x352   : > { %3873 = vperm.xlu0 %5557, %v3859_v63   ;;  %v5776_v23 = vpop.permute.xlu1 %5775  ;;  %v3056_v52 = vpack.c.bf16 %v7821_v56, %v7835_v22  ;;  %v3059_v25 = vpack.c.bf16 %v7856_v35, %v7800_v14  ;;  %v3058_v22 = vpack.c.bf16 %v7837_v17, %v7854_v55 }
 0x353   : > { %v5778_v34 = vunpack.i.h.bf16 %v5776_v23  ;;  %v5777_v49 = vunpack.i.l.bf16 %v5776_v23  ;;  %4757 = vmatpush1.bf16.msk.msra.mxu1 %vm7954_vm0, %v4756_v54  ;;  %v2981_v7 = vsel %vm1007_vm4, %v5757_v26, %v5758_v15 }
 0x354   : > { %v5761_v0 = vpop.permute.xlu0 %5760  ;;  %3888 = vperm.xlu1 %5558, %v3862_v19   ;;  %4760 = vmatprep.subr.msk.bf16.mxu1 %vm7924_vm7, %v4759_v50  ;;  %v2979_v50 = vsel %vm1007_vm4, %v5752_v40, %v5753_v33 }
 0x355   : > { %v2816_v5 = vsel %vm832_vm13, %v5777_v49, %v5778_v34  ;;  %v2815_v43 = vsel %vm832_vm13, %v5728_v6, %v5777_v49  ;;  %vm8038_vm13 = vmpackc.low %vm8012_vm1, %vm8012_vm1  ;;  %v5763_v31 = vunpack.i.h.bf16 %v5761_v0  ;;  %v5762_v19 = vunpack.i.l.bf16 %v5761_v0 }
 0x356   : > { %v4765_v16 = vpack.c.bf16 %v2816_v5, %v2814_v38  ;;  %3883 = vperm.xlu0 %5557, %v3861_v21   ;;  %v5781_v1 = vpop.permute.xlu1 %5780  ;;  %v4768_v54 = vpack.c.bf16 %v2815_v43, %v2813_v8  ;;  %v4774_v34 = vpack.c.bf16 %v2976_v12, %v2974_v42  ;;  %v5768_v49 = vunpack.i.h.bf16 %v7968_v47 }
 0x357   : > { %4763 = vmatpush1.bf16.msk.msra.mxu1 %vm7954_vm0, %v4762_v2  ;;  %v5767_v21 = vunpack.i.l.bf16 %v7968_v47  ;;  %v4777_v39 = vpack.c.bf16 %v2981_v7, %v2979_v50  ;;  %v2978_v37 = vsel %vm1007_vm4, %v5762_v19, %v5752_v40  ;;  %v2980_v6 = vsel %vm1007_vm4, %v5763_v31, %v5757_v26  ;;  %v4470_v31 = vld [vmem:[%s8505_s5 + $0x5] ss:$8 sm:$0x3] }
 0x358   : > { %v5771_v63 = vpop.permute.xlu0 %5770  ;;  %3898 = vperm.xlu1 %5558, %v3864_v41   ;;  %4766 = vmatprep.subr.msk.bf16.mxu1 %vm7924_vm7, %v4765_v16  ;;  %v5783_v53 = vunpack.i.h.bf16 %v5781_v1  ;;  %v5782_v2 = vunpack.i.l.bf16 %v5781_v1  ;;  %v4780_v5 = vpack.c.bf16 %v2980_v6, %v2978_v37  ;;  %v3055_v50 = vpack.c.bf16 %v7749_v48, %v7720_v36 }
 0x359   : > { %v5773_v23 = vunpack.i.h.bf16 %v5771_v63  ;;  %v5772_v20 = vunpack.i.l.bf16 %v5771_v63  ;;  %v2983_v47 = vsel %vm1007_vm4, %v5767_v21, %v5768_v49  ;;  %v6073_v49 = vld [vmem:[#allocation10 + $0x54] ss:$20 sps:$4 sm:$0xff]   ;;  %v3061_v37 = vpack.c.bf16 %v7867_v61, %v7882_v28 }
 0x35a   : > { %3893 = vperm.xlu0 %5557, %v3863_v51   ;;  %v8043_v9 = vpop.permute.xlu1 %5795  ;;  %v2982_v1 = vsel %vm1007_vm4, %v5782_v2, %v5767_v21  ;;  %v3060_v61 = vpack.c.bf16 %v7909_v24, %v7942_v4 }
 0x35b   : > { %4769 = vmatpush1.bf16.msk.msra.mxu1 %vm7954_vm0, %v4768_v54  ;;  %v2985_v18 = vsel %vm1007_vm4, %v5772_v20, %v5773_v23  ;;  %v2984_v43 = vsel %vm1007_vm4, %v5783_v53, %v5772_v20  ;;  %v6067_v23 = vld [vmem:[#allocation10] ss:$20 sps:$4 sm:$0xff]   ;;  %v5797_v56 = vunpack.i.l.bf16 %v8043_v9 }
 0x35c   : > { %v5786_v27 = vpop.permute.xlu0 %5785  ;;  %4772 = vmatprep.subr.msk.bf16.mxu1 %vm8038_vm13, %v4771_v29  ;;  %v4783_v16 = vpack.c.bf16 %v2985_v18, %v2983_v47  ;;  %v4786_v8 = vpack.c.bf16 %v2984_v43, %v2982_v1  ;;  %v6070_v20 = vld [vmem:[#allocation10 + $0x2c] ss:$20 sps:$4 sm:$0xff]   ;;  %v6076_v1 = vld [vmem:[#allocation10 + $0x7c] ss:$20 sps:$4 sm:$0xff]  }
 0x35d   : > { %v5788_v41 = vunpack.i.h.bf16 %v5786_v27  ;;  %v5787_v13 = vunpack.i.l.bf16 %v5786_v27  ;;  %v3057_v27 = vpack.c.bf16 %v7762_v32, %v7777_v30  ;;  %v4472_v47 = vld [vmem:[%s8505_s5 + $0x7] ss:$8 sm:$0x3] }
 0x35e   : > { %3903 = vperm.xlu0 %5557, %v3865_v3   ;;  %v8066_v0 = vpop.permute.xlu1 %5805 }
 0x35f   : > { %4775 = vmatpush1.bf16.msk.msra.mxu1 %vm8057_vm8, %v4774_v34  ;;  %v2987_v63 = vsel %vm1007_vm4, %v5787_v13, %v5788_v41  ;;  %v6072_v34 = vld [vmem:[#allocation10 + $0x28] ss:$20 sps:$4 sm:$0xff]   ;;  %v5807_v17 = vunpack.i.l.bf16 %v8066_v0 }
 0x360   : > { %v5791_v38 = vpop.permute.xlu0 %5790  ;;  %4778 = vmatprep.subr.msk.bf16.mxu1 %vm8038_vm13, %v4777_v39  ;;  %v5798_v39 = vunpack.i.h.bf16 %v8043_v9  ;;  %v5808_v9 = vunpack.i.h.bf16 %v8066_v0  ;;  %v4471_v0 = vld [vmem:[%s8505_s5 + $0x6] ss:$8 sm:$0x3] }
 0x361   : > { %v5793_v40 = vunpack.i.h.bf16 %v5791_v38  ;;  %v5792_v51 = vunpack.i.l.bf16 %v5791_v38  ;;  %vm3268_vm0 = vcmp.gt.f32.partialorder %v4471_v0, 0.5 }
 0x362   : > { %v5816_v10 = vpop.permute.xlu1 %5815  ;;  %v3180_v28 = vsel %vm1214_vm11, %v5797_v56, %v5798_v39  ;;  %v6081_v39 = vld [vmem:[#allocation10 + $0xc] ss:$20 sps:$4 sm:$0xff]  }
 0x363   : > { %v5818_v45 = vunpack.i.h.bf16 %v5816_v10  ;;  %v5817_v33 = vunpack.i.l.bf16 %v5816_v10  ;;  %4781 = vmatpush1.bf16.msk.msra.mxu1 %vm8057_vm8, %v4780_v5  ;;  %v2986_v54 = vsel %vm1007_vm4, %v5792_v51, %v5787_v13 }
 0x364   : > { %v8078_v57 = vpop.permute.xlu0 %5800  ;;  %4784 = vmatprep.subr.msk.bf16.mxu1 %vm8038_vm13, %v4783_v16  ;;  %v6075_v16 = vld [vmem:[#allocation10 + $0x50] ss:$20 sps:$4 sm:$0xff]  }
 0x365   : > { %v2989_v46 = vsel %vm1007_vm4, %v5817_v33, %v5818_v45  ;;  %v2988_v44 = vsel %vm1007_vm4, %v5793_v40, %v5817_v33  ;;  %vm3095_vm4 = vcmp.gt.f32.partialorder %v4470_v31, 0.5  ;;  %v5803_v32 = vunpack.i.h.bf16 %v8078_v57 }
 0x366   : > { %v4789_v15 = vpack.c.bf16 %v2989_v46, %v2987_v63  ;;  %v8085_v26 = vpop.permute.xlu1 %5820  ;;  %v4792_v29 = vpack.c.bf16 %v2988_v44, %v2986_v54  ;;  %v3096_v36 = vsel %vm3095_vm4, 1, %v6280_v11  ;;  %v5802_v30 = vunpack.i.l.bf16 %v8078_v57 }
 0x367   : > { %4787 = vmatpush1.bf16.msk.msra.mxu1 %vm8057_vm8, %v4786_v8  ;;  %v3104_v58 = vrot.slane %v3096_v36, %v6730_v60  ;;  %v3100_v14 = vrot.slane %v3096_v36, %v6735_v62  ;;  %v5823_v2 = vunpack.i.h.bf16 %v8085_v26  ;;  %v5822_v38 = vunpack.i.l.bf16 %v8085_v26 }
 0x368   : > { %v8090_v12 = vpop.permute.xlu0 %5810  ;;  %4790 = vmatprep.subr.msk.bf16.mxu1 %vm8038_vm13, %v4789_v15  ;;  %v3182_v6 = vsel %vm1214_vm11, %v5802_v30, %v5803_v32  ;;  %v3181_v24 = vsel %vm1214_vm11, %v5808_v9, %v5802_v30  ;;  %v3179_v40 = vsel %vm1214_vm11, %v5807_v17, %v5797_v56  ;;  %v3269_v31 = vsel %vm3268_vm0, 1, %v6280_v11 }
 0x369   : > { %vm3106_vm9 = vcmp.eq.s32.totalorder %v3104_v58, 1  ;;  %v5813_v53 = vunpack.i.h.bf16 %v8090_v12  ;;  %v5812_v18 = vunpack.i.l.bf16 %v8090_v12  ;;  %vm8150_vm14 = vcmp.eq.s32.totalorder %v3100_v14, 1  ;;  %v6078_v58 = vld [vmem:[#allocation10 + $0x78] ss:$20 sps:$4 sm:$0xff]  }
 0x36a   : > { %v8097_v19 = vpop.permute.xlu1 %5830  ;;  %vm8146_vm10 = vmpackc.low %vm3106_vm9, %vm3106_vm9  ;;  %v4795_v4 = vpack.c.bf16 %v3182_v6, %v3180_v28  ;;  %v4798_v8 = vpack.c.bf16 %v3181_v24, %v3179_v40  ;;  %v3186_v63 = vsel %vm1214_vm11, %v5822_v38, %v5823_v2  ;;  %vm3441_vm13 = vcmp.gt.f32.partialorder %v4472_v47, 0.5 }
 0x36b   : > { %4793 = vmatpush1.bf16.msk.msra.mxu1 %vm8057_vm8, %v4792_v29  ;;  %v3184_v10 = vsel %vm1214_vm11, %v5812_v18, %v5813_v53  ;;  %vm8173_vm7 = vmpackc.low %vm8150_vm14, %vm8150_vm14  ;;  %v5833_v46 = vunpack.i.h.bf16 %v8097_v19  ;;  %v5832_v44 = vunpack.i.l.bf16 %v8097_v19 }
 0x36c   : > { %v8103_v3 = vpop.permute.xlu0 %5825  ;;  %4091 = vmatprep.subr.bf16.mxu1 %v3055_v50  ;;  %v4801_v15 = vpack.c.bf16 %v3186_v63, %v3184_v10 }
 0x36d   : > { %v5828_v41 = vunpack.i.h.bf16 %v8103_v3  ;;  %v5827_v13 = vunpack.i.l.bf16 %v8103_v3 }
 0x36e   : > { %v8107_v42 = vpop.permute.xlu1 %5840  ;;  %4051 = vmatmul.mubr.bf16.vlgmr.msra.gmra.mrb[0].mxu1 %v6067_v23 }
 0x36f   : > { %4092 = vmatpush1.bf16.msra.mxu1 %v3054_v59  ;;  %4060 = vmatprep.mubr.bf16.mxu1 %v6070_v20  ;;  %v3183_v26 = vsel %vm1214_vm11, %v5827_v13, %v5812_v18  ;;  %v3185_v54 = vsel %vm1214_vm11, %v5828_v41, %v5822_v38  ;;  %v5843_v50 = vunpack.i.h.bf16 %v8107_v42  ;;  %v5842_v19 = vunpack.i.l.bf16 %v8107_v42 }
 0x370   : > { %v8112_v48 = vpop.permute.xlu0 %5835  ;;  %4093 = vmatprep.subr.bf16.mxu1 %v3057_v27  ;;  %v3188_v20 = vsel %vm1214_vm11, %v5832_v44, %v5833_v46  ;;  %v4804_v3 = vpack.c.bf16 %v3185_v54, %v3183_v26  ;;  %v3277_v42 = vrot.slane %v3269_v31, %v6730_v60 }
 0x371   : > { %v5838_v45 = vunpack.i.h.bf16 %v8112_v48  ;;  %v5837_v33 = vunpack.i.l.bf16 %v8112_v48 }
 0x372   : > { %v8116_v7 = vpop.permute.xlu1 %5855  ;;  %vm8214_vm2 = vcmp.eq.s32.totalorder %v3277_v42, 1 }
 0x373   : > { %4094 = vmatpush1.bf16.msra.mxu1 %v3056_v52  ;;  %v3190_v29 = vsel %vm1214_vm11, %v5837_v33, %v5838_v45  ;;  %v3189_v36 = vsel %vm1214_vm11, %v5843_v50, %v5837_v33  ;;  %v5858_v56 = vunpack.i.h.bf16 %v8116_v7  ;;  %v5857_v53 = vunpack.i.l.bf16 %v8116_v7  ;;  %vm8238_vm5 = vmpackc.low %vm8214_vm2, %vm8214_vm2 }
 0x374   : > { %v8123_v21 = vpop.permute.xlu0 %5845  ;;  %4095 = vmatprep.subr.bf16.mxu1 %v3059_v25  ;;  %v4807_v48 = vpack.c.bf16 %v3190_v29, %v3188_v20  ;;  %v3273_v25 = vrot.slane %v3269_v31, %v6735_v62 }
 0x375   : > { %v5848_v59 = vunpack.i.h.bf16 %v8123_v21  ;;  %v5847_v27 = vunpack.i.l.bf16 %v8123_v21  ;;  %v3187_v21 = vsel %vm1214_vm11, %v5842_v19, %v5832_v44  ;;  %v3353_v13 = vsel %vm1389_vm3, %v5857_v53, %v5858_v56 }
 0x376   : > { %v8130_v35 = vpop.permute.xlu1 %5865  ;;  %4061 = vmatmul.mubr.bf16.gmra.mrb[4].mxu1 %v6072_v34  ;;  %v4810_v6 = vpack.c.bf16 %v3189_v36, %v3187_v21  ;;  %vm8228_vm1 = vcmp.eq.s32.totalorder %v3273_v25, 1  ;;  %v3442_v36 = vsel %vm3441_vm13, 1, %v6280_v11 }
 0x377   : > { %4096 = vmatpush1.bf16.msra.mxu1 %v3058_v22  ;;  %4070 = vmatprep.mubr.bf16.mxu1 %v6073_v49  ;;  %v3192_v18 = vsel %vm1214_vm11, %v5847_v27, %v5848_v59  ;;  %v5868_v7 = vunpack.i.h.bf16 %v8130_v35  ;;  %v5867_v0 = vunpack.i.l.bf16 %v8130_v35 }
 0x378   : > { %v8139_v55 = vpop.permute.xlu0 %5850  ;;  %4097 = vmatprep.subr.bf16.mxu1 %v3061_v37 }
 0x379   : > { %v5853_v22 = vunpack.i.h.bf16 %v8139_v55  ;;  %v5852_v14 = vunpack.i.l.bf16 %v8139_v55  ;;  %v3352_v44 = vsel %vm1389_vm3, %v5867_v0, %v5857_v53 }
 0x37a   : > { %v8160_v43 = vpop.permute.xlu1 %5875 }
 0x37b   : > { %4098 = vmatpush1.bf16.msra.mxu1 %v3060_v61  ;;  %v3191_v24 = vsel %vm1214_vm11, %v5852_v14, %v5847_v27  ;;  %v5877_v10 = vunpack.i.l.bf16 %v8160_v43 }
 0x37c   : > { %v8166_v51 = vpop.permute.xlu0 %5860  ;;  %4796 = vmatprep.subr.msk.bf16.mxu1 %vm8146_vm10, %v4795_v4 }
 0x37d   : > { %v5863_v34 = vunpack.i.h.bf16 %v8166_v51  ;;  %v5862_v32 = vunpack.i.l.bf16 %v8166_v51 }
 0x37e   : > { %v8182_v12 = vpop.permute.xlu1 %5885  ;;  %4071 = vmatmul.mubr.bf16.gmra.mrb[8].mxu1 %v6075_v16  ;;  %v5878_v16 = vunpack.i.h.bf16 %v8160_v43 }
 0x37f   : > { %4799 = vmatpush1.bf16.msk.msra.mxu1 %vm8173_vm7, %v4798_v8  ;;  %4080 = vmatprep.mubr.bf16.mxu1 %v6076_v1  ;;  %v3355_v55 = vsel %vm1389_vm3, %v5862_v32, %v5863_v34  ;;  %v3354_v33 = vsel %vm1389_vm3, %v5868_v7, %v5862_v32  ;;  %v5888_v57 = vunpack.i.h.bf16 %v8182_v12  ;;  %v5887_v31 = vunpack.i.l.bf16 %v8182_v12 }
 0x380   : > { %v8190_v23 = vpop.permute.xlu0 %5870  ;;  %4802 = vmatprep.subr.msk.bf16.mxu1 %vm8146_vm10, %v4801_v15  ;;  %v4819_v1 = vpack.c.bf16 %v3355_v55, %v3353_v13  ;;  %v3359_v54 = vsel %vm1389_vm3, %v5877_v10, %v5878_v16  ;;  %v4822_v29 = vpack.c.bf16 %v3354_v33, %v3352_v44 }
 0x381   : > { %v5873_v38 = vunpack.i.h.bf16 %v8190_v23  ;;  %v5872_v5 = vunpack.i.l.bf16 %v8190_v23  ;;  %v3361_v12 = vsel %vm1389_vm3, %v5887_v31, %v5888_v57 }
 0x382   : > { %v5896_v52 = vpop.permute.xlu1 %5895 }
 0x383   : > { %v5898_v30 = vunpack.i.h.bf16 %v5896_v52  ;;  %v5897_v49 = vunpack.i.l.bf16 %v5896_v52  ;;  %4805 = vmatpush1.bf16.msk.msra.mxu1 %vm8173_vm7, %v4804_v3  ;;  %v3357_v43 = vsel %vm1389_vm3, %v5872_v5, %v5873_v38 }
 0x384   : > { %v5881_v37 = vpop.permute.xlu0 %5880  ;;  %4808 = vmatprep.subr.msk.bf16.mxu1 %vm8146_vm10, %v4807_v48  ;;  %v4825_v50 = vpack.c.bf16 %v3359_v54, %v3357_v43 }
 0x385   : > { %v3194_v9 = vsel %vm1214_vm11, %v5897_v49, %v5898_v30  ;;  %v3193_v17 = vsel %vm1214_vm11, %v5853_v22, %v5897_v49  ;;  %v5883_v40 = vunpack.i.h.bf16 %v5881_v37  ;;  %v5882_v51 = vunpack.i.l.bf16 %v5881_v37  ;;  %vm8257_vm11 = vmpackc.low %vm8228_vm1, %vm8228_vm1 }
 0x386   : > { %v4813_v61 = vpack.c.bf16 %v3194_v9, %v3192_v18  ;;  %v5901_v28 = vpop.permute.xlu1 %5900  ;;  %4081 = vmatmul.mubr.bf16.gmra.mrb[12].mxu1 %v6078_v58  ;;  %v4816_v45 = vpack.c.bf16 %v3193_v17, %v3191_v24  ;;  %v3446_v49 = vrot.slane %v3442_v36, %v6735_v62 }
 0x387   : > { %4811 = vmatpush1.bf16.msk.msra.mxu1 %vm8173_vm7, %v4810_v6  ;;  %4123 = vmatprep.mubr.bf16.mxu1 %v6081_v39  ;;  %v3356_v19 = vsel %vm1389_vm3, %v5882_v51, %v5872_v5  ;;  %v3358_v23 = vsel %vm1389_vm3, %v5883_v40, %v5877_v10  ;;  %v5902_v20 = vunpack.i.l.bf16 %v5901_v28  ;;  %v5903_v59 = vunpack.i.h.bf16 %v5901_v28 }
 0x388   : > { %v5891_v4 = vpop.permute.xlu0 %5890  ;;  %4814 = vmatprep.subr.msk.bf16.mxu1 %vm8146_vm10, %v4813_v61  ;;  %v4828_v42 = vpack.c.bf16 %v3358_v23, %v3356_v19  ;;  %v3450_v39 = vrot.slane %v3442_v36, %v6730_v60  ;;  %vm8290_vm4 = vcmp.eq.s32.totalorder %v3446_v49, 1 }
 0x389   : > { %v5893_v63 = vunpack.i.h.bf16 %v5891_v4  ;;  %v5892_v46 = vunpack.i.l.bf16 %v5891_v4  ;;  %v3360_v34 = vsel %vm1389_vm3, %v5902_v20, %v5887_v31  ;;  %vm8311_vm9 = vmpackc.low %vm8290_vm4, %vm8290_vm4 }
 0x38a   : > { %v8246_v8 = vpop.permute.xlu1 %5915  ;;  %vm3452_vm8 = vcmp.eq.s32.totalorder %v3450_v39, 1 }
 0x38b   : > { %4817 = vmatpush1.bf16.msk.msra.mxu1 %vm8173_vm7, %v4816_v45  ;;  %v3363_v27 = vsel %vm1389_vm3, %v5892_v46, %v5893_v63  ;;  %v3362_v58 = vsel %vm1389_vm3, %v5903_v59, %v5892_v46  ;;  %v5918_v6 = vunpack.i.h.bf16 %v8246_v8  ;;  %v5917_v53 = vunpack.i.l.bf16 %v8246_v8 }
 0x38c   : > { %v5906_v15 = vpop.permute.xlu0 %5905  ;;  %4820 = vmatprep.subr.msk.bf16.mxu1 %vm8238_vm5, %v4819_v1  ;;  %v4831_v32 = vpack.c.bf16 %v3363_v27, %v3361_v12  ;;  %v4834_v37 = vpack.c.bf16 %v3362_v58, %v3360_v34 }
 0x38d   : > { %v5908_v48 = vunpack.i.h.bf16 %v5906_v15  ;;  %v5907_v52 = vunpack.i.l.bf16 %v5906_v15  ;;  %v3526_v24 = vsel %vm1564_vm12, %v5917_v53, %v5918_v6 }
 0x38e   : > { %v5926_v3 = vpop.permute.xlu1 %5925 }
 0x38f   : > { %4823 = vmatpush1.bf16.msk.msra.mxu1 %vm8257_vm11, %v4822_v29  ;;  %v3365_v18 = vsel %vm1389_vm3, %v5907_v52, %v5908_v48  ;;  %v5928_v4 = vunpack.i.h.bf16 %v5926_v3  ;;  %v5927_v41 = vunpack.i.l.bf16 %v5926_v3  ;;  %v4473_v3 = vld [vmem:[%s8505_s5 + $0x10] ss:$8 sm:$0x3] }
 0x390   : > { %v5911_v25 = vpop.permute.xlu0 %5910  ;;  %4826 = vmatprep.subr.msk.bf16.mxu1 %vm8238_vm5, %v4825_v50  ;;  %vm3614_vm10 = vcmp.gt.f32.partialorder %v4473_v3, 0.5 }
 0x391   : > { %v5913_v21 = vunpack.i.h.bf16 %v5911_v25  ;;  %v5912_v56 = vunpack.i.l.bf16 %v5911_v25  ;;  %v3525_v35 = vsel %vm1564_vm12, %v5927_v41, %v5917_v53 }
 0x392   : > { %v5936_v30 = vpop.permute.xlu1 %5935 }
 0x393   : > { %v5938_v22 = vunpack.i.h.bf16 %v5936_v30  ;;  %v5937_v14 = vunpack.i.l.bf16 %v5936_v30  ;;  %4829 = vmatpush1.bf16.msk.msra.mxu1 %vm8257_vm11, %v4828_v42  ;;  %v3364_v5 = vsel %vm1389_vm3, %v5912_v56, %v5907_v52 }
 0x394   : > { %v5921_v9 = vpop.permute.xlu0 %5920  ;;  %4832 = vmatprep.subr.msk.bf16.mxu1 %vm8238_vm5, %v4831_v32 }
 0x395   : > { %v3366_v17 = vsel %vm1389_vm3, %v5913_v21, %v5937_v14  ;;  %v3367_v61 = vsel %vm1389_vm3, %v5937_v14, %v5938_v22  ;;  %v5923_v28 = vunpack.i.h.bf16 %v5921_v9  ;;  %v5922_v2 = vunpack.i.l.bf16 %v5921_v9  ;;  %vm8297_vm3 = vmpackc.low %vm3452_vm8, %vm3452_vm8 }
 0x396   : > { %v4837_v55 = vpack.c.bf16 %v3367_v61, %v3365_v18  ;;  %v5941_v38 = vpop.permute.xlu1 %5940  ;;  %v4840_v13 = vpack.c.bf16 %v3366_v17, %v3364_v5  ;;  %v3615_v14 = vsel %vm3614_vm10, 1, %v6280_v11 }
 0x397   : > { %v3528_v7 = vsel %vm1564_vm12, %v5922_v2, %v5923_v28  ;;  %4835 = vmatpush1.bf16.msk.msra.mxu1 %vm8257_vm11, %v4834_v37  ;;  %v5943_v10 = vunpack.i.h.bf16 %v5941_v38  ;;  %v5942_v45 = vunpack.i.l.bf16 %v5941_v38  ;;  %v3527_v40 = vsel %vm1564_vm12, %v5928_v4, %v5922_v2 }
 0x398   : > { %v5931_v16 = vpop.permute.xlu0 %5930  ;;  %4838 = vmatprep.subr.msk.bf16.mxu1 %vm8238_vm5, %v4837_v55  ;;  %v4843_v51 = vpack.c.bf16 %v3528_v7, %v3526_v24  ;;  %v4846_v44 = vpack.c.bf16 %v3527_v40, %v3525_v35  ;;  %v3623_v17 = vrot.slane %v3615_v14, %v6730_v60  ;;  %v3619_v2 = vrot.slane %v3615_v14, %v6735_v62 }
 0x399   : > { %v5933_v47 = vunpack.i.h.bf16 %v5931_v16  ;;  %v5932_v33 = vunpack.i.l.bf16 %v5931_v16  ;;  %v3532_v15 = vsel %vm1564_vm12, %v5942_v45, %v5943_v10  ;;  %v6079_v10 = vld [vmem:[#allocation10 + $0x8] ss:$20 sps:$4 sm:$0xff]  }
 0x39a   : > { %v5951_v8 = vpop.permute.xlu1 %5950  ;;  %vm3625_vm14 = vcmp.eq.s32.totalorder %v3623_v17, 1  ;;  %vm3624_vm7 = vcmp.eq.s32.totalorder %v3619_v2, 1  ;;  %v6087_v17 = vld [vmem:[#allocation10 + $0x58] ss:$20 sps:$4 sm:$0xff]  }
 0x39b   : > { %v3530_v43 = vsel %vm1564_vm12, %v5932_v33, %v5933_v47  ;;  %4841 = vmatpush1.bf16.msk.msra.mxu1 %vm8257_vm11, %v4840_v13  ;;  %v5953_v57 = vunpack.i.h.bf16 %v5951_v8  ;;  %v5952_v31 = vunpack.i.l.bf16 %v5951_v8  ;;  %vm8354_vm0 = vmpackc.low %vm3624_vm7, %vm3624_vm7 }
 0x39c   : > { %v5946_v63 = vpop.permute.xlu0 %5945  ;;  %4844 = vmatprep.subr.msk.bf16.mxu1 %vm8297_vm3, %v4843_v51  ;;  %v4849_v26 = vpack.c.bf16 %v3532_v15, %v3530_v43 }
 0x39d   : > { %v5948_v54 = vunpack.i.h.bf16 %v5946_v63  ;;  %v5947_v29 = vunpack.i.l.bf16 %v5946_v63  ;;  %v3534_v25 = vsel %vm1564_vm12, %v5952_v31, %v5953_v57 }
 0x39e   : > { %v5961_v50 = vpop.permute.xlu1 %5960 }
 0x39f   : > { %v3529_v19 = vsel %vm1564_vm12, %v5947_v29, %v5932_v33  ;;  %v3531_v23 = vsel %vm1564_vm12, %v5948_v54, %v5942_v45  ;;  %v5962_v20 = vunpack.i.l.bf16 %v5961_v50  ;;  %4847 = vmatpush1.bf16.msk.msra.mxu1 %vm8311_vm9, %v4846_v44  ;;  %v5963_v36 = vunpack.i.h.bf16 %v5961_v50  ;;  %v6082_v33 = vld [vmem:[#allocation10 + $0x34] ss:$20 sps:$4 sm:$0xff]  }
 0x3a0   : > { %v4852_v59 = vpack.c.bf16 %v3531_v23, %v3529_v19  ;;  %v5956_v27 = vpop.permute.xlu0 %5955  ;;  %4850 = vmatprep.subr.msk.bf16.mxu1 %vm8297_vm3, %v4849_v26 }
 0x3a1   : > { %v5958_v48 = vunpack.i.h.bf16 %v5956_v27  ;;  %v5957_v52 = vunpack.i.l.bf16 %v5956_v27  ;;  %v3533_v12 = vsel %vm1564_vm12, %v5962_v20, %v5952_v31  ;;  %v6084_v20 = vld [vmem:[#allocation10 + $0x30] ss:$20 sps:$4 sm:$0xff]  }
 0x3a2   : > { %v5971_v42 = vpop.permute.xlu1 %5970 }
 0x3a3   : > { %v3535_v58 = vsel %vm1564_vm12, %v5963_v36, %v5957_v52  ;;  %v3536_v34 = vsel %vm1564_vm12, %v5957_v52, %v5958_v48  ;;  %v5973_v32 = vunpack.i.h.bf16 %v5971_v42  ;;  %v5972_v30 = vunpack.i.l.bf16 %v5971_v42  ;;  %4853 = vmatpush1.bf16.msk.msra.mxu1 %vm8311_vm9, %v4852_v59  ;;  %v6085_v36 = vld [vmem:[#allocation10 + $0x5c] ss:$20 sps:$4 sm:$0xff]  }
 0x3a4   : > { %v4855_v49 = vpack.c.bf16 %v3536_v34, %v3534_v25  ;;  %v4858_v39 = vpack.c.bf16 %v3535_v58, %v3533_v12  ;;  %v5966_v21 = vpop.permute.xlu0 %5965 }
 0x3a5   : > { %v5968_v56 = vunpack.i.h.bf16 %v5966_v21  ;;  %v5967_v22 = vunpack.i.l.bf16 %v5966_v21  ;;  %v3540_v6 = vsel %vm1564_vm12, %v5972_v30, %v5973_v32 }
 0x3a6   : > { %v5981_v37 = vpop.permute.xlu1 %5980  ;;  %4856 = vmatprep.subr.msk.bf16.mxu1 %vm8297_vm3, %v4855_v49 }
 0x3a7   : > { %v3538_v53 = vsel %vm1564_vm12, %v5967_v22, %v5968_v56  ;;  %4859 = vmatpush1.bf16.msk.msra.mxu1 %vm8311_vm9, %v4858_v39  ;;  %v5983_v55 = vunpack.i.h.bf16 %v5981_v37  ;;  %v5982_v38 = vunpack.i.l.bf16 %v5981_v37 }
 0x3a8   : > { %v4861_v18 = vpack.c.bf16 %v3540_v6, %v3538_v53  ;;  %v5976_v9 = vpop.permute.xlu0 %5975 }
 0x3a9   : > { %v5978_v61 = vunpack.i.h.bf16 %v5976_v9  ;;  %v5977_v28 = vunpack.i.l.bf16 %v5976_v9  ;;  %v3699_v62 = vsel %vm1739_vm6, %v5982_v38, %v5983_v55 }
 0x3aa   : > { %v5991_v5 = vpop.permute.xlu1 %5990  ;;  %4862 = vmatprep.subr.msk.bf16.mxu1 %vm8297_vm3, %v4861_v18 }
 0x3ab   : > { %v3537_v7 = vsel %vm1564_vm12, %v5977_v28, %v5967_v22  ;;  %v3539_v0 = vsel %vm1564_vm12, %v5978_v61, %v5972_v30  ;;  %v5992_v24 = vunpack.i.l.bf16 %v5991_v5  ;;  %v5993_v13 = vunpack.i.h.bf16 %v5991_v5  ;;  %vm8350_vm12 = vmpackc.low %vm3625_vm14, %vm3625_vm14  ;;  %v6088_v61 = vld [vmem:[#allocation10 + $0x84] ss:$20 sps:$4 sm:$0xff]  }
 0x3ac   : > { %v4864_v4 = vpack.c.bf16 %v3539_v0, %v3537_v7  ;;  %v5986_v41 = vpop.permute.xlu0 %5985 }
 0x3ad   : > { %v5988_v60 = vunpack.i.h.bf16 %v5986_v41  ;;  %v5987_v16 = vunpack.i.l.bf16 %v5986_v41  ;;  %v3698_v45 = vsel %vm1739_vm6, %v5992_v24, %v5982_v38  ;;  %v6090_v41 = vld [vmem:[#allocation10 + $0x80] ss:$20 sps:$4 sm:$0xff]  }
 0x3ae   : > { %v6001_v47 = vpop.permute.xlu1 %6000  ;;  %4865 = vmatpush1.bf16.msk.msra.mxu1 %vm8311_vm9, %v4864_v4 }
 0x3af   : > { %v3700_v1 = vsel %vm1739_vm6, %v5993_v13, %v5987_v16  ;;  %v3701_v40 = vsel %vm1739_vm6, %v5987_v16, %v5988_v60  ;;  %v6003_v51 = vunpack.i.h.bf16 %v6001_v47  ;;  %v6002_v8 = vunpack.i.l.bf16 %v6001_v47  ;;  %v6091_v13 = vld [vmem:[#allocation10 + $0x10] ss:$20 sps:$4 sm:$0xff]   ;;  %v6092_v60 = vld [vmem:[#allocation10 + $0x38] ss:$20 sps:$4 sm:$0xff]   ;;  %v6093_v16 = vld [vmem:[#allocation10 + $0x60] ss:$20 sps:$4 sm:$0xff]  }
 0x3b0   : > { %v4867_v35 = vpack.c.bf16 %v3701_v40, %v3699_v62  ;;  %v4870_v63 = vpack.c.bf16 %v3700_v1, %v3698_v45  ;;  %v5996_v44 = vpop.permute.xlu0 %5995  ;;  %v8394_v47 = vstv %s4498_s29 }
 0x3b1   : > { %v5998_v46 = vunpack.i.h.bf16 %v5996_v44  ;;  %v5997_v54 = vunpack.i.l.bf16 %v5996_v44  ;;  %4124 = vmatmul.mubr.bf16.vlgmr.msra.gmra.mrb[0].mxu1 %v6079_v10  ;;  %v3705_v26 = vsel %vm1739_vm6, %v6002_v8, %v6003_v51  ;;  %v6094_v10 = vld [vmem:[#allocation10 + $0x88] ss:$20 sps:$4 sm:$0xff]   ;;  %v4238_v51 = vld [vmem:[%s6523_s21] sm:$0xff] }
 0x3b2   : > { %v6011_v29 = vpop.permute.xlu1 %6010  ;;  %4868 = vmatprep.subr.msk.bf16.mxu1 %vm8350_vm12, %v4867_v35  ;;  %4133 = vmatprep.mubr.bf16.mxu1 %v6082_v33 }
 0x3b3   : > { %v3703_v57 = vsel %vm1739_vm6, %v5997_v54, %v5998_v46  ;;  %4871 = vmatpush1.bf16.msk.msra.mxu1 %vm8354_vm0, %v4870_v63  ;;  %v6013_v3 = vunpack.i.h.bf16 %v6011_v29  ;;  %v6012_v59 = vunpack.i.l.bf16 %v6011_v29  ;;  %v4240_v46 = vld [vmem:[%s6523_s21 + $0x10] sm:$0xff] }
 0x3b4   : > { %v4873_v31 = vpack.c.bf16 %v3705_v26, %v3703_v57  ;;  %v6006_v50 = vpop.permute.xlu0 %6005  ;;  %v4241_v57 = vld [vmem:[%s6523_s21 + $0x18] sm:$0xff] }
 0x3b5   : > { %v6008_v19 = vunpack.i.h.bf16 %v6006_v50  ;;  %v6007_v23 = vunpack.i.l.bf16 %v6006_v50  ;;  %v3707_v30 = vsel %vm1739_vm6, %v6012_v59, %v6013_v3 }
 0x3b6   : > { %v6021_v27 = vpop.permute.xlu1 %6020  ;;  %4874 = vmatprep.subr.msk.bf16.mxu1 %vm8350_vm12, %v4873_v31 }
 0x3b7   : > { %v3702_v48 = vsel %vm1739_vm6, %v6007_v23, %v5997_v54  ;;  %v3704_v52 = vsel %vm1739_vm6, %v6008_v19, %v6002_v8  ;;  %v6022_v25 = vunpack.i.l.bf16 %v6021_v27  ;;  %v6023_v58 = vunpack.i.h.bf16 %v6021_v27 }
 0x3b8   : > { %v4876_v12 = vpack.c.bf16 %v3704_v52, %v3702_v48  ;;  %v6016_v42 = vpop.permute.xlu0 %6015  ;;  %v4242_v48 = vld [vmem:[%s6523_s21 + $0x20] sm:$0xff] }
 0x3b9   : > { %v6018_v34 = vunpack.i.h.bf16 %v6016_v42  ;;  %v6017_v32 = vunpack.i.l.bf16 %v6016_v42  ;;  %4134 = vmatmul.mubr.bf16.gmra.mrb[4].mxu1 %v6084_v20  ;;  %v3706_v49 = vsel %vm1739_vm6, %v6022_v25, %v6012_v59  ;;  %v4243_v42 = vld [vmem:[%s6523_s21 + $0x28] sm:$0xff] }
 0x3ba   : > { %v6031_v39 = vpop.permute.xlu1 %6030  ;;  %4877 = vmatpush1.bf16.msk.msra.mxu1 %vm8354_vm0, %v4876_v12  ;;  %4143 = vmatprep.mubr.bf16.mxu1 %v6085_v36 }
 0x3bb   : > { %v3708_v21 = vsel %vm1739_vm6, %v6023_v58, %v6017_v32  ;;  %v3709_v56 = vsel %vm1739_vm6, %v6017_v32, %v6018_v34  ;;  %v6033_v22 = vunpack.i.h.bf16 %v6031_v39  ;;  %v6032_v14 = vunpack.i.l.bf16 %v6031_v39 }
 0x3bc   : > { %v4879_v37 = vpack.c.bf16 %v3709_v56, %v3707_v30  ;;  %v4882_v6 = vpack.c.bf16 %v3708_v21, %v3706_v49  ;;  %v6026_v53 = vpop.permute.xlu0 %6025  ;;  %v4244_v30 = vld [vmem:[%s6523_s21 + $0x30] sm:$0xff]  ;;  %v4245_v56 = vld [vmem:[%s6523_s21 + $0x38] sm:$0xff] }
 0x3bd   : > { %v6028_v18 = vunpack.i.h.bf16 %v6026_v53  ;;  %v6027_v9 = vunpack.i.l.bf16 %v6026_v53  ;;  %v3713_v28 = vsel %vm1739_vm6, %v6032_v14, %v6033_v22 }
 0x3be   : > { %4880 = vmatprep.subr.msk.bf16.mxu1 %vm8350_vm12, %v4879_v37 }
 0x3bf   : > { %v3711_v2 = vsel %vm1739_vm6, %v6027_v9, %v6028_v18  ;;  %4883 = vmatpush1.bf16.msk.msra.mxu1 %vm8354_vm0, %v4882_v6 }
 0x3c0   : > { %v4885_v55 = vpack.c.bf16 %v3713_v28, %v3711_v2  ;;  %v6036_v38 = vpop.permute.xlu0 %6035  ;;  %v4246_v28 = vld [vmem:[%s6523_s21 + $0x40] sm:$0xff] }
 0x3c1   : > { %v6038_v5 = vunpack.i.h.bf16 %v6036_v38  ;;  %v6037_v7 = vunpack.i.l.bf16 %v6036_v38  ;;  %4144 = vmatmul.mubr.bf16.gmra.mrb[8].mxu1 %v6087_v17 }
 0x3c2   : > { %4886 = vmatprep.subr.msk.bf16.mxu1 %vm8350_vm12, %v4885_v55  ;;  %4153 = vmatprep.mubr.bf16.mxu1 %v6088_v61 }
 0x3c3   : > { %v3710_v0 = vsel %vm1739_vm6, %v6037_v7, %v6027_v9  ;;  %v3712_v24 = vsel %vm1739_vm6, %v6038_v5, %v6032_v14  ;;  %v4247_v5 = vld [vmem:[%s6523_s21 + $0x48] sm:$0xff] }
 0x3c4   : > { %v4888_v4 = vpack.c.bf16 %v3712_v24, %v3710_v0 }
 0x3c6   : > { %4889 = vmatpush1.bf16.msk.msra.mxu1 %vm8354_vm0, %v4888_v4  ;;  %v4248_v4 = vld [vmem:[%s6523_s21 + $0x50] sm:$0xff] }
 0x3c9   : > { %4154 = vmatmul.mubr.bf16.gmra.mrb[12].mxu1 %v6090_v41 }
 0x3ca   : > { %4196 = vmatprep.mubr.bf16.mxu1 %v6280_v11 }
 0x3cb   : > { %v3869_v62 = vpop.permute.xlu1 %3868 }
 0x3cf   : > { %v3879_v23 = vpop.permute.xlu1 %3878 }
 0x3d1   : > { %4494 = vmatmul.mubr.msk.bf16.vlgmr.msra.gmra.mrb[0].mxu1 %vm2048_vm15, %v6091_v13  ;;  %v3874_v40 = vpop.permute.xlu0 %3873 }
 0x3d2   : > { %4206 = vmatprep.mubr.bf16.mxu1 %v6280_v11 }
 0x3d3   : > { %v3889_v6 = vpop.permute.xlu1 %3888 }
 0x3d5   : > { %v3884_v36 = vpop.permute.xlu0 %3883 }
 0x3d9   : > { %4495 = vmatmul.mubr.msk.bf16.gmra.mrb[4].mxu1 %vm2048_vm15, %v6092_v60  ;;  %v3894_v61 = vpop.permute.xlu0 %3893 }
 0x3da   : > { %4216 = vmatprep.mubr.bf16.mxu1 %v6280_v11 }
 0x3e1   : > { %4496 = vmatmul.mubr.msk.bf16.gmra.mrb[8].mxu1 %vm2048_vm15, %v6093_v16  ;;  %v4249_v16 = vld [vmem:[%s6523_s21 + $0x58] sm:$0xff] }
 0x3e2   : > { %4226 = vmatprep.mubr.bf16.mxu1 %v6280_v11  ;;  %v4239_v11 = vld [vmem:[%s6523_s21 + $0x8] sm:$0xff] }
 0x3e9   : > { %4497 = vmatmul.mubr.msk.bf16.gmra.mrb[12].mxu1 %vm2048_vm15, %v6094_v10 }
 0x4a4   : > { %v4198_v45 = vpop.f32.mrb[0].mxu1 }
 0x4a5   : > { %v4906_v33 = vadd.f32 %v4198_v45, %v3869_v62  ;;  %v4200_v1 = vpop.f32.mrb[1].mxu1 }
 0x4a6   : > { %v4907_v8 = vadd.f32 %v4200_v1, %v3869_v62  ;;  %v4202_v43 = vpop.f32.mrb[2].mxu1 }
 0x4a7   : > { %v4255_v35 = vmul.f32 %v4906_v33, %v8394_v47  ;;  %v4908_v63 = vadd.f32 %v4202_v43, %v3874_v40  ;;  %v4204_v44 = vpop.f32.mrb[3].mxu1  ;;  %v3899_v33 = vpop.permute.xlu1 %3898 }
 0x4a8   : > { %v4256_v15 = vmul.f32 %v4907_v8, %v8394_v47  ;;  %v4909_v54 = vadd.f32 %v4204_v44, %v3874_v40  ;;  %v3904_v43 = vpop.permute.xlu0 %3903 }
 0x4a9   : > { %v4271_v29 = vadd.f32 %v4255_v35, %v4238_v51  ;;  %v4257_v26 = vmul.f32 %v4908_v63, %v8394_v47  ;;  %v4250_v35 = vld [vmem:[%s6523_s21 + $0x60] sm:$0xff] }
 0x4aa   : > { %v4272_v31 = vadd.f32 %v4256_v15, %v4239_v11  ;;  %v4258_v50 = vmul.f32 %v4909_v54, %v8394_v47  ;;  %v4251_v15 = vld [vmem:[%s6523_s21 + $0x68] sm:$0xff] }
 0x4ab   : > { %4287 = vst [vmem:[%s8406_s17] sm:$0xff] %v4271_v29  ;;  %v4273_v19 = vadd.f32 %v4257_v26, %v4240_v46  ;;  %v4252_v26 = vld [vmem:[%s6523_s21 + $0x70] sm:$0xff] }
 0x4ac   : > { %4288 = vst [vmem:[%s8406_s17 + $0x8] sm:$0xff] %v4272_v31  ;;  %v4274_v20 = vadd.f32 %v4258_v50, %v4241_v57  ;;  %v4208_v3 = vpop.f32.mrb[4].mxu1 }
 0x4ad   : > { %4289 = vst [vmem:[%s8406_s17 + $0x10] sm:$0xff] %v4273_v19  ;;  %v4910_v59 = vadd.f32 %v4208_v3, %v3879_v23  ;;  %v4210_v27 = vpop.f32.mrb[5].mxu1  ;;  %v4253_v19 = vld [vmem:[%s6523_s21 + $0x78] sm:$0xff]  ;;  %s6196_s21 = scalar_lea.vmem %s8453_s13, 2048 }
 0x4ae   : > { %4290 = vst [vmem:[%s8406_s17 + $0x18] sm:$0xff] %v4274_v20  ;;  %v4911_v52 = vadd.f32 %v4210_v27, %v3879_v23  ;;  %v4212_v25 = vpop.f32.mrb[6].mxu1  ;;  %p6197_p12 = scmp.ne.s32.totalorder %s8453_s13, %s6196_s21  ;;  %p6204_p9 = scmp.lt.s32.totalorder %s6202_s23, %s6196_s21 }
 0x4af   : > { %v4259_v12 = vmul.f32 %v4910_v59, %v8394_v47  ;;  %v4912_v58 = vadd.f32 %v4212_v25, %v3884_v36  ;;  %v4214_v34 = vpop.f32.mrb[7].mxu1 }
 0x4b0   : > { %v4260_v32 = vmul.f32 %v4911_v52, %v8394_v47  ;;  %v4913_v49 = vadd.f32 %v4214_v34, %v3884_v36  ;;  %p6198_p6 = pnand %p6197_p12, %p8631_p1  ;;  %p6205_p13 = por %p6204_p9, %p6203_p5 }
 0x4b1   : > { %v4275_v39 = vadd.f32 %v4259_v12, %v4242_v48  ;;  %v4261_v21 = vmul.f32 %v4912_v58, %v8394_v47 }
 0x4b2   : > { %v4276_v22 = vadd.f32 %v4260_v32, %v4243_v42  ;;  %v4262_v14 = vmul.f32 %v4913_v49, %v8394_v47  ;;  %p6199_p10 = pneg %p6198_p6 }
 0x4b3   : > { %4291 = vst [vmem:[%s8406_s17 + $0x20] sm:$0xff] %v4275_v39  ;;  %v4277_v37 = vadd.f32 %v4261_v21, %v4244_v30 }
 0x4b4   : > { %4292 = vst [vmem:[%s8406_s17 + $0x28] sm:$0xff] %v4276_v22  ;;  %v4278_v53 = vadd.f32 %v4262_v14, %v4245_v56  ;;  %v4218_v18 = vpop.f32.mrb[8].mxu1  ;;  %p6206_p0 = pnand %p6205_p13, %p6199_p10 }
 0x4b5   : > { %4293 = vst [vmem:[%s8406_s17 + $0x30] sm:$0xff] %v4277_v37  ;;  %v4914_v9 = vadd.f32 %v4218_v18, %v3889_v6  ;;  %v4220_v17 = vpop.f32.mrb[9].mxu1 }
 0x4b6   : > { %4294 = vst [vmem:[%s8406_s17 + $0x38] sm:$0xff] %v4278_v53  ;;  %v4915_v2 = vadd.f32 %v4220_v17, %v3889_v6  ;;  %v4222_v55 = vpop.f32.mrb[10].mxu1 }
 0x4b7   : > { %v4263_v38 = vmul.f32 %v4914_v9, %v8394_v47  ;;  %v4916_v7 = vadd.f32 %v4222_v55, %v3894_v61  ;;  %v4224_v0 = vpop.f32.mrb[11].mxu1 }
 0x4b8   : > { %v4264_v24 = vmul.f32 %v4915_v2, %v8394_v47  ;;  %v4917_v41 = vadd.f32 %v4224_v0, %v3894_v61 }
 0x4b9   : > { %v4279_v13 = vadd.f32 %v4263_v38, %v4246_v28  ;;  %v4265_v60 = vmul.f32 %v4916_v7, %v8394_v47 }
 0x4ba   : > { %v4280_v10 = vadd.f32 %v4264_v24, %v4247_v5  ;;  %v4266_v62 = vmul.f32 %v4917_v41, %v8394_v47 }
 0x4bb   : > { %4295 = vst [vmem:[%s8406_s17 + $0x40] sm:$0xff] %v4279_v13  ;;  %v4281_v45 = vadd.f32 %v4265_v60, %v4248_v4 }
 0x4bc   : > { %4296 = vst [vmem:[%s8406_s17 + $0x48] sm:$0xff] %v4280_v10  ;;  %v4282_v1 = vadd.f32 %v4266_v62, %v4249_v16  ;;  %v4228_v40 = vpop.f32.mrb[12].mxu1 }
 0x4bd   : > { %4297 = vst [vmem:[%s8406_s17 + $0x50] sm:$0xff] %v4281_v45  ;;  %v4918_v51 = vadd.f32 %v4228_v40, %v3899_v33  ;;  %v4230_v8 = vpop.f32.mrb[13].mxu1 }
 0x4be   : > { %4298 = vst [vmem:[%s8406_s17 + $0x58] sm:$0xff] %v4282_v1  ;;  %v4919_v11 = vadd.f32 %v4230_v8, %v3899_v33  ;;  %v4232_v63 = vpop.f32.mrb[14].mxu1 }
 0x4bf   : > { %v4267_v44 = vmul.f32 %v4918_v51, %v8394_v47  ;;  %v4920_v46 = vadd.f32 %v4232_v63, %v3904_v43  ;;  %v4234_v54 = vpop.f32.mrb[15].mxu1 }
 0x4c0   : > { %v4268_v29 = vmul.f32 %v4919_v11, %v8394_v47  ;;  %v4921_v57 = vadd.f32 %v4234_v54, %v3904_v43 }
 0x4c1   : > { %v4283_v31 = vadd.f32 %v4267_v44, %v4250_v35  ;;  %v4269_v50 = vmul.f32 %v4920_v46, %v8394_v47 }
 0x4c2   : > { %v4284_v23 = vadd.f32 %v4268_v29, %v4251_v15  ;;  %v4270_v20 = vmul.f32 %v4921_v57, %v8394_v47 }
 0x4c3   : > { %4299 = vst [vmem:[%s8406_s17 + $0x60] sm:$0xff] %v4283_v31  ;;  %v4285_v3 = vadd.f32 %v4269_v50, %v4252_v26 }
 0x4c4   : > { %4300 = vst [vmem:[%s8406_s17 + $0x68] sm:$0xff] %v4284_v23  ;;  %v4286_v59 = vadd.f32 %v4270_v20, %v4253_v19 }
 0x4c5   : > { %4301 = vst [vmem:[%s8406_s17 + $0x70] sm:$0xff] %v4285_v3 }
 0x4c6   : > { %4302 = vst [vmem:[%s8406_s17 + $0x78] sm:$0xff] %v4286_v59 }
 0x4c7   : > { %6209 = shalt.err (!%p6206_p0)
}
 0x4c8   : > { %s6210_s20 = scalar_lea.hbm %s8450_s11, 2048  ;;  %s6214_s17 = scalar_lea.hbm %s8507_s7, 4096 }
 0x4c9   : > { %p6211_p2 = scmp.ne.s32.totalorder %s8450_s11, %s6210_s20  ;;  %p6215_p8 = scmp.lt.u32.totalorder %s8450_s11, %s8507_s7 }
 0x4ca   : > { %p6216_p11 = scmp.lt.u32.totalorder %s6214_s17, %s6210_s20  ;;  %p6218_p12 = scmp.lt.u32.totalorder %s6210_s20, %s8450_s11 }
 0x4cb   : > { %p6212_p4 = pnand %p6211_p2, %p8631_p1 }
 0x4cc   : > { %p6217_p7 = por %p6216_p11, %p6215_p8 }
 0x4cd   : > { %p6213_p3 = pneg %p6212_p4 }
 0x4ce   : > { %p6219_p6 = por %p6218_p12, %p6217_p7 }
 0x4d0   : > { %p6220_p10 = pnand %p6219_p6, %p6213_p3 }
 0x4d2   : > { %6223 = shalt.err (!%p6220_p10)
}
 0x4d3   : > { %s6290_s18 = smov 256  }
 0x4d4   : > { %5000 = dma.vmem_to_hbm [thread:$0]  (%p8631_p1), %s8453_s13, 2048, %s8450_s11, %s4304_s28, %s6290_s18, %s6290_s18, %s6282_s9  }
 0x4d5 PF: > { %s4332_s21 = sand.u32 1, %s6258_s24   ;;  %p8632_p5 = scmp.ne.s32.totalorder %s8516_s8, 0 }
 0x4d6   : > { %p8633_p9 = scmp.ge.s32.totalorder %s6270_s27, 2  ;;  %s4333_s15 = scalar_lea.sflag [#allocation6], %s4332_s21 }
 0x4d8   : > { %p5017_p13 = pnand %p8633_p9, %p8632_p5 }
 0x4da   : > { %6253 = dma.done.wait (!%p5017_p13), %s4333_s15, 2048  }
 0x4db   : > { %6255 = vsyncadd (!%p5017_p13), %s4333_s15, 4294965248  ;;  %p22_p0 = scmp.ge.s32.totalorder %s6455_s14, 4   ;;  %s8634_s24 = smov %s6262_s25 }
 0x4dc   : > { %s8635_s25 = smov %s6266_s26  ;;  %s8636_s26 = smov %s6465_s12 }
 0x4dd   : > { %s8637_s27 = smov %s6455_s14  ;;  %24 = sbr.rel (!%p22_p0) target bundleno = 9 (0x9), region = 113 }
 0x4e4   :  { %4338 = vsyncpa [#allocation5], 1 }
 0x4e5   :  { %4340 = vsyncpa [#allocation5 + $0x1], 1 }
 0x4e6   :  { %4341 = vsyncpa [#allocation9], 1 }
 0x4e7   :  { %4342 = vsyncpa [#allocation6], 1 }
 0x4e8   :  { %4344 = vsyncpa [#allocation6 + $0x1], 1 }
 0x4e9   :  { %4345 = vsyncpa [#allocation7], 1 }
 0x4ea   :  { %4347 = vsyncpa [#allocation7 + $0x1], 1 }

</bundles_post_ra>
